<compile_context>
chip_gen: v6e
topology: v6e:2x2x1
jax: 0.10.0
libtpu: 0.0.40
codegen_flags: <defaults>
</compile_context>

<pallas_src>
import functools
import math

import jax
import jax.numpy as jnp
from jax import lax
from jax.experimental import pallas as pl
from jax.experimental.pallas import tpu as pltpu


def _vmem_spec():
    return pl.BlockSpec(memory_space=pltpu.MemorySpace.VMEM)


# ----------------------------------------------------------------------------
# Single fused kernel: HGCN x2  ->  stacked shared projection  ->  contrastive loss
# ----------------------------------------------------------------------------
def fused_forward_kernel(
    x1_ref, adj1_ref, w1_ref, b1_ref,
    x2_ref, adj2_ref, w2_ref, b2_ref,
    fc1w_ref, fc1b_ref, fc2w_ref, fc2b_ref,
    z1_ref, z2_ref, loss_ref,
    *, tau, alpha,
):
    n = x1_ref.shape[0]

    def hgcn_branch(x_ref, g_ref, w_ref, b_ref):
        xw = jnp.dot(x_ref[...], w_ref[...], preferred_element_type=jnp.float32)
        xw = xw + b_ref[...]
        gx = jnp.dot(g_ref[...], xw, preferred_element_type=jnp.float32)
        return jnp.where(gx >= 0.0, gx, 0.25 * gx)          # LeakyReLU(0.25)

    z1 = hgcn_branch(x1_ref, adj1_ref, w1_ref, b1_ref)
    z2 = hgcn_branch(x2_ref, adj2_ref, w2_ref, b2_ref)
    z1_ref[...] = z1
    z2_ref[...] = z2

    # --- shared projection; stack both branches to fatten the MXU M dimension ---
    zs = jnp.concatenate([z1, z2], axis=0)                                   # (2N, H)
    h = jnp.dot(zs, fc1w_ref[...], preferred_element_type=jnp.float32) + fc1b_ref[...]
    h = jnp.where(h > 0.0, h, jnp.exp(h) - 1.0)                              # ELU(alpha=1)
    h = jnp.dot(h, fc2w_ref[...], preferred_element_type=jnp.float32) + fc2b_ref[...]

    # --- row-L2 normalize (F.normalize, eps=1e-12) using rsqrt (EUP) ---
    sumsq = jnp.sum(h * h, axis=1, keepdims=True)
    hn = h * lax.rsqrt(jnp.maximum(sumsq, 1e-24))
    h1n = hn[:n]
    h2n = hn[n:]

    # --- contrastive similarity (both directions, s21 derived from s12) ---
    inv_tau = 1.0 / tau
    e_diag = math.exp(inv_tau)  # analytic diag of the refl sims (unit-norm rows)

    def exp_scores(a, b):       # exp((a @ b.T) / tau), contracting the feature dim
        s = lax.dot_general(a, b, (((1,), (1,)), ((), ())),
                            preferred_element_type=jnp.float32)
        return jnp.exp(s * inv_tau)

    s11 = exp_scores(h1n, h1n)
    s22 = exp_scores(h2n, h2n)
    s12 = exp_scores(h1n, h2n)                      # s21 == s12.T — never formed

    r11 = jnp.sum(s11, axis=1, keepdims=True)       # (N, 1)  rowsums of refl(1)
    b12 = jnp.sum(s12, axis=1, keepdims=True)       # (N, 1)  rowsums of between(1->2)
    r22 = jnp.sum(s22, axis=0, keepdims=True)       # (1, N)  rowsums of refl(2) (symmetric)
    c12 = jnp.sum(s12, axis=0, keepdims=True)       # (1, N)  == rowsums of s21

    # sum_i log(diag(s12)_i) = sum(h1n*h2n)/tau — shared by both directions
    d12 = jnp.sum(h1n * h2n, axis=1, keepdims=True)              # (N, 1)
    sum_logd = jnp.sum(d12, axis=0, keepdims=True) * inv_tau     # (1, 1)

    # sum_i log(denominator_i) for each direction, reduced in-kernel to (1,1)
    loss12 = jnp.sum(jnp.log(r11 + b12 - e_diag), axis=0, keepdims=True)   # (1, 1)
    loss21 = jnp.sum(jnp.log(r22 + c12 - e_diag), axis=1, keepdims=True)   # (1, 1)

    # alpha*(loss12 - sum_logd) + (1-alpha)*(loss21 - sum_logd)
    loss_ref[...] = alpha * loss12 + (1.0 - alpha) * loss21 - sum_logd


def cl_hgcn_forward(x1, adj1, x2, adj2, params, *, tau=0.5, alpha=0.5):
    n = x1.shape[0]
    hid = params["w_hg1"].shape[1]
    kernel = functools.partial(fused_forward_kernel, tau=tau, alpha=alpha)
    z1, z2, loss = pl.pallas_call(
        kernel,
        out_shape=(
            jax.ShapeDtypeStruct((n, hid), jnp.float32),
            jax.ShapeDtypeStruct((n, hid), jnp.float32),
            jax.ShapeDtypeStruct((1, 1), jnp.float32),
        ),
        in_specs=[_vmem_spec()] * 12,
        out_specs=(_vmem_spec(), _vmem_spec(), _vmem_spec()),
    )(
        x1, adj1, params["w_hg1"], params["b_hg1"].reshape(1, -1),
        x2, adj2, params["w_hg2"], params["b_hg2"].reshape(1, -1),
        params["fc1_wT"], params["fc1_b"].reshape(1, -1),
        params["fc2_wT"], params["fc2_b"].reshape(1, -1),
    )
    return z1, z2, loss[0, 0]


# ----------------------------------------------------------------------------
# Module wrapper with deterministic parameter initialization
# ----------------------------------------------------------------------------
class CLHGCNMiOriginal:
    IN_FT = 2346  # HGNN_conv_mi_original hard-codes a (2346, 256) weight
    HID = 256

    def __init__(self, key, num_proj_hidden=128, alpha=0.5):
        self.alpha = alpha
        self.tau = 0.5
        H, P = self.HID, num_proj_hidden
        ks = jax.random.split(key, 8)

        stdv = 1.0 / math.sqrt(H)
        s1 = 1.0 / math.sqrt(H)
        s2 = 1.0 / math.sqrt(P)
        self.params = dict(
            w_hg1=jax.random.uniform(ks[0], (self.IN_FT, H), jnp.float32, -stdv, stdv),
            b_hg1=jax.random.uniform(ks[1], (H,), jnp.float32, -stdv, stdv),
            w_hg2=jax.random.uniform(ks[2], (self.IN_FT, H), jnp.float32, -stdv, stdv),
            b_hg2=jax.random.uniform(ks[3], (H,), jnp.float32, -stdv, stdv),
            # fc1: Linear(H -> P), fc2: Linear(P -> H); weights stored pre-transposed.
            fc1_wT=jax.random.uniform(ks[4], (H, P), jnp.float32, -s1, s1),
            fc1_b=jax.random.uniform(ks[5], (P,), jnp.float32, -s1, s1),
            fc2_wT=jax.random.uniform(ks[6], (P, H), jnp.float32, -s2, s2),
            fc2_b=jax.random.uniform(ks[7], (H,), jnp.float32, -s2, s2),
        )

    def __call__(self, x1, adj1, x2, adj2):
        return cl_hgcn_forward(x1, adj1, x2, adj2, self.params,
                               tau=self.tau, alpha=self.alpha)


if __name__ == "__main__":
    key = jax.random.PRNGKey(0)
    k_model, k_x1, k_x2, k_a1, k_a2 = jax.random.split(key, 5)

    N = 8          # number of nodes (small test size)
    IN_FT = 2346   # fixed by the module's hard-coded (2346, 256) weight
    H = 256        # hid_list[-1]
    P = 128        # num_proj_hidden

    model = CLHGCNMiOriginal(k_model, num_proj_hidden=P, alpha=0.5)

    x1 = jax.random.normal(k_x1, (N, IN_FT), jnp.float32)
    x2 = jax.random.normal(k_x2, (N, IN_FT), jnp.float32)
    adj1 = jax.random.uniform(k_a1, (N, N), jnp.float32)
    adj2 = jax.random.uniform(k_a2, (N, N), jnp.float32)

    z1, z2, loss = model(x1, adj1, x2, adj2)
    jax.block_until_ready((z1, z2, loss))

    assert z1.shape == (N, H) and z2.shape == (N, H) and loss.shape == ()
    assert bool(jnp.isfinite(loss))
    print("KERNEL_OK")
</pallas_src>

<mosaic_0001>
module attributes {stable_mosaic.version = 11 : i64} {
  func.func @fused_forward_kernel(%arg0: memref<8x2346xf32, #tpu.memory_space<vmem>>, %arg1: memref<8x8xf32, #tpu.memory_space<vmem>>, %arg2: memref<2346x256xf32, #tpu.memory_space<vmem>>, %arg3: memref<1x256xf32, #tpu.memory_space<vmem>>, %arg4: memref<8x2346xf32, #tpu.memory_space<vmem>>, %arg5: memref<8x8xf32, #tpu.memory_space<vmem>>, %arg6: memref<2346x256xf32, #tpu.memory_space<vmem>>, %arg7: memref<1x256xf32, #tpu.memory_space<vmem>>, %arg8: memref<256x128xf32, #tpu.memory_space<vmem>>, %arg9: memref<1x128xf32, #tpu.memory_space<vmem>>, %arg10: memref<128x256xf32, #tpu.memory_space<vmem>>, %arg11: memref<1x256xf32, #tpu.memory_space<vmem>>, %arg12: memref<8x256xf32, #tpu.memory_space<vmem>>, %arg13: memref<8x256xf32, #tpu.memory_space<vmem>>, %arg14: memref<1x1xf32, #tpu.memory_space<vmem>>) attributes {dimension_semantics = [], scalar_prefetch = 0 : i64, scratch_operands = 0 : i64, tpu.core_type = #tpu.core_type<tc>} {
    %c0 = arith.constant 0 : index
    %c0_0 = arith.constant 0 : index
    %0 = vector.load %arg0[%c0, %c0_0] : memref<8x2346xf32, #tpu.memory_space<vmem>>, vector<8x2346xf32>
    %c0_1 = arith.constant 0 : index
    %c0_2 = arith.constant 0 : index
    %1 = vector.load %arg2[%c0_1, %c0_2] : memref<2346x256xf32, #tpu.memory_space<vmem>>, vector<2346x256xf32>
    %cst = arith.constant dense<0.000000e+00> : vector<8x256xf32>
    %2 = tpu.matmul %0, %1, %cst {dimension_numbers = #tpu.dot_dimension_numbers<[1], [0], [0], [1], [0, 0, 1, 1], [], []>} : vector<8x2346xf32>, vector<2346x256xf32>, vector<8x256xf32> -> vector<8x256xf32>
    %c0_3 = arith.constant 0 : index
    %c0_4 = arith.constant 0 : index
    %3 = vector.load %arg3[%c0_3, %c0_4] : memref<1x256xf32, #tpu.memory_space<vmem>>, vector<1x256xf32>
    %4 = vector.broadcast %3 : vector<1x256xf32> to vector<8x256xf32>
    %5 = arith.addf %2, %4 : vector<8x256xf32>
    %c0_5 = arith.constant 0 : index
    %c0_6 = arith.constant 0 : index
    %6 = vector.load %arg1[%c0_5, %c0_6] : memref<8x8xf32, #tpu.memory_space<vmem>>, vector<8x8xf32>
    %cst_7 = arith.constant dense<0.000000e+00> : vector<8x256xf32>
    %7 = tpu.matmul %6, %5, %cst_7 {dimension_numbers = #tpu.dot_dimension_numbers<[1], [0], [0], [1], [0, 0, 1, 1], [], []>} : vector<8x8xf32>, vector<8x256xf32>, vector<8x256xf32> -> vector<8x256xf32>
    %cst_8 = arith.constant 0.000000e+00 : f32
    %8 = vector.broadcast %cst_8 : f32 to vector<8x256xf32>
    %9 = arith.cmpf oge, %7, %8 : vector<8x256xf32>
    %cst_9 = arith.constant 2.500000e-01 : f32
    %10 = vector.broadcast %cst_9 : f32 to vector<8x256xf32>
    %11 = arith.mulf %10, %7 : vector<8x256xf32>
    %12 = arith.select %9, %7, %11 : vector<8x256xi1>, vector<8x256xf32>
    %c0_10 = arith.constant 0 : index
    %c0_11 = arith.constant 0 : index
    %13 = vector.load %arg4[%c0_10, %c0_11] : memref<8x2346xf32, #tpu.memory_space<vmem>>, vector<8x2346xf32>
    %c0_12 = arith.constant 0 : index
    %c0_13 = arith.constant 0 : index
    %14 = vector.load %arg6[%c0_12, %c0_13] : memref<2346x256xf32, #tpu.memory_space<vmem>>, vector<2346x256xf32>
    %cst_14 = arith.constant dense<0.000000e+00> : vector<8x256xf32>
    %15 = tpu.matmul %13, %14, %cst_14 {dimension_numbers = #tpu.dot_dimension_numbers<[1], [0], [0], [1], [0, 0, 1, 1], [], []>} : vector<8x2346xf32>, vector<2346x256xf32>, vector<8x256xf32> -> vector<8x256xf32>
    %c0_15 = arith.constant 0 : index
    %c0_16 = arith.constant 0 : index
    %16 = vector.load %arg7[%c0_15, %c0_16] : memref<1x256xf32, #tpu.memory_space<vmem>>, vector<1x256xf32>
    %17 = vector.broadcast %16 : vector<1x256xf32> to vector<8x256xf32>
    %18 = arith.addf %15, %17 : vector<8x256xf32>
    %c0_17 = arith.constant 0 : index
    %c0_18 = arith.constant 0 : index
    %19 = vector.load %arg5[%c0_17, %c0_18] : memref<8x8xf32, #tpu.memory_space<vmem>>, vector<8x8xf32>
    %cst_19 = arith.constant dense<0.000000e+00> : vector<8x256xf32>
    %20 = tpu.matmul %19, %18, %cst_19 {dimension_numbers = #tpu.dot_dimension_numbers<[1], [0], [0], [1], [0, 0, 1, 1], [], []>} : vector<8x8xf32>, vector<8x256xf32>, vector<8x256xf32> -> vector<8x256xf32>
    %cst_20 = arith.constant 0.000000e+00 : f32
    %21 = vector.broadcast %cst_20 : f32 to vector<8x256xf32>
    %22 = arith.cmpf oge, %20, %21 : vector<8x256xf32>
    %cst_21 = arith.constant 2.500000e-01 : f32
    %23 = vector.broadcast %cst_21 : f32 to vector<8x256xf32>
    %24 = arith.mulf %23, %20 : vector<8x256xf32>
    %25 = arith.select %22, %20, %24 : vector<8x256xi1>, vector<8x256xf32>
    %c0_22 = arith.constant 0 : index
    %c0_23 = arith.constant 0 : index
    %26 = vector.load %arg12[%c0_22, %c0_23] : memref<8x256xf32, #tpu.memory_space<vmem>>, vector<8x256xf32>
    tpu.vector_store %arg12[%c0_22, %c0_23], %12 {strides = array<i32>} : memref<8x256xf32, #tpu.memory_space<vmem>>, vector<8x256xf32>,
    %c0_24 = arith.constant 0 : index
    %c0_25 = arith.constant 0 : index
    %27 = vector.load %arg13[%c0_24, %c0_25] : memref<8x256xf32, #tpu.memory_space<vmem>>, vector<8x256xf32>
    tpu.vector_store %arg13[%c0_24, %c0_25], %25 {strides = array<i32>} : memref<8x256xf32, #tpu.memory_space<vmem>>, vector<8x256xf32>,
    %28 = tpu.concatenate %12, %25 in 0 : vector<8x256xf32>, vector<8x256xf32> -> vector<16x256xf32>
    %c0_26 = arith.constant 0 : index
    %c0_27 = arith.constant 0 : index
    %29 = vector.load %arg8[%c0_26, %c0_27] : memref<256x128xf32, #tpu.memory_space<vmem>>, vector<256x128xf32>
    %cst_28 = arith.constant dense<0.000000e+00> : vector<16x128xf32>
    %30 = tpu.matmul %28, %29, %cst_28 {dimension_numbers = #tpu.dot_dimension_numbers<[1], [0], [0], [1], [0, 0, 1, 1], [], []>} : vector<16x256xf32>, vector<256x128xf32>, vector<16x128xf32> -> vector<16x128xf32>
    %c0_29 = arith.constant 0 : index
    %c0_30 = arith.constant 0 : index
    %31 = vector.load %arg9[%c0_29, %c0_30] : memref<1x128xf32, #tpu.memory_space<vmem>>, vector<1x128xf32>
    %32 = vector.broadcast %31 : vector<1x128xf32> to vector<16x128xf32>
    %33 = arith.addf %30, %32 : vector<16x128xf32>
    %cst_31 = arith.constant 0.000000e+00 : f32
    %34 = vector.broadcast %cst_31 : f32 to vector<16x128xf32>
    %35 = arith.cmpf ogt, %33, %34 : vector<16x128xf32>
    %36 = math.exp %33 : vector<16x128xf32>
    %cst_32 = arith.constant 1.000000e+00 : f32
    %37 = vector.broadcast %cst_32 : f32 to vector<16x128xf32>
    %38 = arith.subf %36, %37 : vector<16x128xf32>
    %39 = arith.select %35, %33, %38 : vector<16x128xi1>, vector<16x128xf32>
    %c0_33 = arith.constant 0 : index
    %c0_34 = arith.constant 0 : index
    %40 = vector.load %arg10[%c0_33, %c0_34] : memref<128x256xf32, #tpu.memory_space<vmem>>, vector<128x256xf32>
    %cst_35 = arith.constant dense<0.000000e+00> : vector<16x256xf32>
    %41 = tpu.matmul %39, %40, %cst_35 {dimension_numbers = #tpu.dot_dimension_numbers<[1], [0], [0], [1], [0, 0, 1, 1], [], []>} : vector<16x128xf32>, vector<128x256xf32>, vector<16x256xf32> -> vector<16x256xf32>
    %c0_36 = arith.constant 0 : index
    %c0_37 = arith.constant 0 : index
    %42 = vector.load %arg11[%c0_36, %c0_37] : memref<1x256xf32, #tpu.memory_space<vmem>>, vector<1x256xf32>
    %43 = vector.broadcast %42 : vector<1x256xf32> to vector<16x256xf32>
    %44 = arith.addf %41, %43 : vector<16x256xf32>
    %45 = arith.mulf %44, %44 : vector<16x256xf32>
    %cst_38 = arith.constant dense<0.000000e+00> : vector<16xf32>
    %46 = vector.multi_reduction <add>, %45, %cst_38 [1] : vector<16x256xf32> to vector<16xf32>
    %47 = vector.shape_cast %46 : vector<16xf32> to vector<16x1xf32>
    %cst_39 = arith.constant 1.000000e-24 : f32
    %48 = vector.broadcast %cst_39 : f32 to vector<16x1xf32>
    %49 = arith.maximumf %47, %48 : vector<16x1xf32>
    %50 = math.rsqrt %49 : vector<16x1xf32>
    %51 = vector.broadcast %50 : vector<16x1xf32> to vector<16x256xf32>
    %52 = arith.mulf %44, %51 : vector<16x256xf32>
    %53 = vector.extract_strided_slice %52 {offsets = [0, 0], sizes = [8, 256], strides = [1, 1]} : vector<16x256xf32> to vector<8x256xf32>
    %54 = vector.extract_strided_slice %52 {offsets = [8, 0], sizes = [8, 256], strides = [1, 1]} : vector<16x256xf32> to vector<8x256xf32>
    %cst_40 = arith.constant dense<0.000000e+00> : vector<8x8xf32>
    %55 = tpu.matmul %53, %53, %cst_40 {dimension_numbers = #tpu.dot_dimension_numbers<[1], [1], [0], [0], [0, 0, 1, 0], [], []>} : vector<8x256xf32>, vector<8x256xf32>, vector<8x8xf32> -> vector<8x8xf32>
    %cst_41 = arith.constant 2.000000e+00 : f32
    %56 = vector.broadcast %cst_41 : f32 to vector<8x8xf32>
    %57 = arith.mulf %55, %56 : vector<8x8xf32>
    %58 = math.exp %57 : vector<8x8xf32>
    %cst_42 = arith.constant dense<0.000000e+00> : vector<8x8xf32>
    %59 = tpu.matmul %54, %54, %cst_42 {dimension_numbers = #tpu.dot_dimension_numbers<[1], [1], [0], [0], [0, 0, 1, 0], [], []>} : vector<8x256xf32>, vector<8x256xf32>, vector<8x8xf32> -> vector<8x8xf32>
    %cst_43 = arith.constant 2.000000e+00 : f32
    %60 = vector.broadcast %cst_43 : f32 to vector<8x8xf32>
    %61 = arith.mulf %59, %60 : vector<8x8xf32>
    %62 = math.exp %61 : vector<8x8xf32>
    %cst_44 = arith.constant dense<0.000000e+00> : vector<8x8xf32>
    %63 = tpu.matmul %53, %54, %cst_44 {dimension_numbers = #tpu.dot_dimension_numbers<[1], [1], [0], [0], [0, 0, 1, 0], [], []>} : vector<8x256xf32>, vector<8x256xf32>, vector<8x8xf32> -> vector<8x8xf32>
    %cst_45 = arith.constant 2.000000e+00 : f32
    %64 = vector.broadcast %cst_45 : f32 to vector<8x8xf32>
    %65 = arith.mulf %63, %64 : vector<8x8xf32>
    %66 = math.exp %65 : vector<8x8xf32>
    %cst_46 = arith.constant dense<0.000000e+00> : vector<8xf32>
    %67 = vector.multi_reduction <add>, %58, %cst_46 [1] : vector<8x8xf32> to vector<8xf32>
    %68 = vector.shape_cast %67 : vector<8xf32> to vector<8x1xf32>
    %cst_47 = arith.constant dense<0.000000e+00> : vector<8xf32>
    %69 = vector.multi_reduction <add>, %66, %cst_47 [1] : vector<8x8xf32> to vector<8xf32>
    %70 = vector.shape_cast %69 : vector<8xf32> to vector<8x1xf32>
    %cst_48 = arith.constant dense<0.000000e+00> : vector<8xf32>
    %71 = vector.multi_reduction <add>, %62, %cst_48 [0] : vector<8x8xf32> to vector<8xf32>
    %72 = vector.shape_cast %71 : vector<8xf32> to vector<1x8xf32>
    %cst_49 = arith.constant dense<0.000000e+00> : vector<8xf32>
    %73 = vector.multi_reduction <add>, %66, %cst_49 [0] : vector<8x8xf32> to vector<8xf32>
    %74 = vector.shape_cast %73 : vector<8xf32> to vector<1x8xf32>
    %75 = arith.mulf %53, %54 : vector<8x256xf32>
    %cst_50 = arith.constant dense<0.000000e+00> : vector<8xf32>
    %76 = vector.multi_reduction <add>, %75, %cst_50 [1] : vector<8x256xf32> to vector<8xf32>
    %77 = vector.shape_cast %76 : vector<8xf32> to vector<8x1xf32>
    %cst_51 = arith.constant dense<0.000000e+00> : vector<1xf32>
    %78 = vector.multi_reduction <add>, %77, %cst_51 [0] : vector<8x1xf32> to vector<1xf32>
    %79 = vector.shape_cast %78 : vector<1xf32> to vector<1x1xf32>
    %cst_52 = arith.constant 2.000000e+00 : f32
    %80 = vector.broadcast %cst_52 : f32 to vector<1x1xf32>
    %81 = arith.mulf %79, %80 : vector<1x1xf32>
    %82 = arith.addf %68, %70 : vector<8x1xf32>
    %cst_53 = arith.constant 7.3890562 : f32
    %83 = vector.broadcast %cst_53 : f32 to vector<8x1xf32>
    %84 = arith.subf %82, %83 : vector<8x1xf32>
    %85 = math.log %84 : vector<8x1xf32>
    %cst_54 = arith.constant dense<0.000000e+00> : vector<1xf32>
    %86 = vector.multi_reduction <add>, %85, %cst_54 [0] : vector<8x1xf32> to vector<1xf32>
    %87 = vector.shape_cast %86 : vector<1xf32> to vector<1x1xf32>
    %88 = arith.addf %72, %74 : vector<1x8xf32>
    %cst_55 = arith.constant 7.3890562 : f32
    %89 = vector.broadcast %cst_55 : f32 to vector<1x8xf32>
    %90 = arith.subf %88, %89 : vector<1x8xf32>
    %91 = math.log %90 : vector<1x8xf32>
    %cst_56 = arith.constant dense<0.000000e+00> : vector<1xf32>
    %92 = vector.multi_reduction <add>, %91, %cst_56 [1] : vector<1x8xf32> to vector<1xf32>
    %93 = vector.shape_cast %92 : vector<1xf32> to vector<1x1xf32>
    %cst_57 = arith.constant 5.000000e-01 : f32
    %94 = vector.broadcast %cst_57 : f32 to vector<1x1xf32>
    %95 = arith.mulf %94, %87 : vector<1x1xf32>
    %cst_58 = arith.constant 5.000000e-01 : f32
    %96 = vector.broadcast %cst_58 : f32 to vector<1x1xf32>
    %97 = arith.mulf %96, %93 : vector<1x1xf32>
    %98 = arith.addf %95, %97 : vector<1x1xf32>
    %99 = arith.subf %98, %81 : vector<1x1xf32>
    %c0_59 = arith.constant 0 : index
    %c0_60 = arith.constant 0 : index
    %100 = vector.load %arg14[%c0_59, %c0_60] : memref<1x1xf32, #tpu.memory_space<vmem>>, vector<1x1xf32>
    tpu.vector_store %arg14[%c0_59, %c0_60], %99 {strides = array<i32>} : memref<1x1xf32, #tpu.memory_space<vmem>>, vector<1x1xf32>,
    return
  }
}

</mosaic_0001>

<bundles_post_ra>
// kernel: tpu_custom_call.1
= control target key start
LH: loop header
LB: loop body
LE: loop exit
PB: predicated region body
PF: predicated region fallthrough
CT: control target
= control target key end

     0   :  { %20 = vsyncpa [#allocation3], 0  ;;  %s4214_s0 = inlined_call_operand.hbm [shape: f32[8,2346], index: 0, kind: input, shape index: {}]   ;;  %s4215_s1 = inlined_call_operand.hbm [shape: f32[8,8], index: 1, kind: input, shape index: {}]   ;;  %s4216_s2 = inlined_call_operand.hbm [shape: f32[2346,256], index: 2, kind: input, shape index: {}]   ;;  %s4217_s3 = inlined_call_operand.hbm [shape: f32[1,256], index: 3, kind: input, shape index: {}]   ;;  %s4218_s4 = inlined_call_operand.hbm [shape: f32[8,2346], index: 4, kind: input, shape index: {}]   ;;  %s4219_s5 = inlined_call_operand.hbm [shape: f32[8,8], index: 5, kind: input, shape index: {}]   ;;  %s4220_s6 = inlined_call_operand.hbm [shape: f32[2346,256], index: 6, kind: input, shape index: {}]   ;;  %s4221_s7 = inlined_call_operand.hbm [shape: f32[1,256], index: 7, kind: input, shape index: {}]   ;;  %s4222_s8 = inlined_call_operand.hbm [shape: f32[256,128], index: 8, kind: input, shape index: {}]   ;;  %s4223_s9 = inlined_call_operand.hbm [shape: f32[1,128], index: 9, kind: input, shape index: {}]   ;;  %s4224_s10 = inlined_call_operand.hbm [shape: f32[128,256], index: 10, kind: input, shape index: {}]   ;;  %s4225_s11 = inlined_call_operand.hbm [shape: f32[1,256], index: 11, kind: input, shape index: {}]   ;;  %s4226_s12 = inlined_call_operand.hbm [shape: f32[8,256], index: 12, kind: output, shape index: {0}]   ;;  %s4227_s13 = inlined_call_operand.hbm [shape: f32[8,256], index: 13, kind: output, shape index: {1}]   ;;  %s4228_s14 = inlined_call_operand.hbm [shape: f32[1,1], index: 14, kind: output, shape index: {2}]  }
   0x1   :  { %21 = vsyncpa [#allocation6], 0 }
   0x2   :  { %22 = vsyncpa [#allocation9], 0 }
   0x3   :  { %23 = vsyncpa [#allocation12], 0 }
   0x4   :  { %24 = vsyncpa [#allocation15], 0 }
   0x5   :  { %25 = vsyncpa [#allocation18], 0 }
   0x6   :  { %26 = vsyncpa [#allocation21], 0 }
   0x7   :  { %27 = vsyncpa [#allocation4], 0 }
   0x8   :  { %28 = vsyncpa [#allocation24], 0  ;;  %s4029_s29 = smov [#allocation5]   ;;  %s4030_s15 = smov [#allocation8]  }
   0x9   :  { %s45_s30 = sshll.u32 %s4029_s29, 4  ;;  %s67_s16 = sshll.u32 %s4030_s15, 4  ;;  %s46_s30 = int_to_ptr.vmem [resolvable:$true] %s45_s30  ;;  %s68_s16 = int_to_ptr.vmem [resolvable:$true] %s67_s16 }
   0xa   :  { %s3719_s17 = scalar_lea.vmem %s46_s30, 128  ;;  %p3724_p1 = scmp.lt.s32.totalorder %s46_s30, %s46_s30 }
   0xb   :  { %p3720_p0 = scmp.ne.s32.totalorder %s46_s30, %s3719_s17  ;;  %p3725_p2 = scmp.lt.s32.totalorder %s3719_s17, %s3719_s17 }
   0xd   :  { %p3726_p3 = por %p3725_p2, %p3724_p1 }
   0xf   :  { %p3727_p4 = pnand %p3726_p3, %p3720_p0 }
  0x11   :  { %3730 = shalt.err (!%p3727_p4)
}
  0x12   :  { %48 = dma.hbm_to_vmem [thread:$0]  %s4215_s1, 128, %s46_s30, [#allocation6]  }
  0x13   :  { %s3739_s20 = scalar_lea.vmem %s68_s16, 32  ;;  %p3744_p6 = scmp.lt.s32.totalorder %s68_s16, %s68_s16 }
  0x14   :  { %p3740_p5 = scmp.ne.s32.totalorder %s68_s16, %s3739_s20  ;;  %p3745_p7 = scmp.lt.s32.totalorder %s3739_s20, %s3739_s20 }
  0x16   :  { %p3746_p8 = por %p3745_p7, %p3744_p6 }
  0x18   :  { %p3747_p9 = pnand %p3746_p8, %p3740_p5 }
  0x1a   :  { %3750 = shalt.err (!%p3747_p9)
}
  0x1b   :  { %70 = dma.hbm_to_vmem [thread:$0]  %s4217_s3, 32, %s68_s16, [#allocation9]  }
  0x1c   :  { %s4031_s23 = smov [#allocation11]   ;;  %s4032_s25 = smov [#allocation14]  }
  0x1d   :  { %s87_s24 = sshll.u32 %s4031_s23, 4  ;;  %s109_s26 = sshll.u32 %s4032_s25, 4  ;;  %s88_s24 = int_to_ptr.vmem [resolvable:$true] %s87_s24  ;;  %s110_s26 = int_to_ptr.vmem [resolvable:$true] %s109_s26 }
  0x1e   :  { %s3759_s27 = scalar_lea.vmem %s88_s24, 128  ;;  %p3764_p11 = scmp.lt.s32.totalorder %s88_s24, %s88_s24 }
  0x1f   :  { %p3760_p10 = scmp.ne.s32.totalorder %s88_s24, %s3759_s27  ;;  %p3765_p12 = scmp.lt.s32.totalorder %s3759_s27, %s3759_s27 }
  0x21   :  { %p3766_p13 = por %p3765_p12, %p3764_p11 }
  0x23   :  { %p3767_p0 = pnand %p3766_p13, %p3760_p10 }
  0x25   :  { %3770 = shalt.err (!%p3767_p0)
}
  0x26   :  { %90 = dma.hbm_to_vmem [thread:$0]  %s4219_s5, 128, %s88_s24, [#allocation12]  }
  0x27   :  { %s3779_s29 = scalar_lea.vmem %s110_s26, 32  ;;  %p3784_p2 = scmp.lt.s32.totalorder %s110_s26, %s110_s26 }
  0x28   :  { %p3780_p1 = scmp.ne.s32.totalorder %s110_s26, %s3779_s29  ;;  %p3785_p3 = scmp.lt.s32.totalorder %s3779_s29, %s3779_s29 }
  0x2a   :  { %p3786_p4 = por %p3785_p3, %p3784_p2 }
  0x2c   :  { %p3787_p5 = pnand %p3786_p4, %p3780_p1 }
  0x2e   :  { %3790 = shalt.err (!%p3787_p5)
}
  0x2f   :  { %112 = dma.hbm_to_vmem [thread:$0]  %s4221_s7, 32, %s110_s26, [#allocation15]  }
  0x30   :  { %s4033_s15 = smov [#allocation17]   ;;  %s4034_s17 = smov [#allocation2]  }
  0x31   :  { %s131_s16 = sshll.u32 %s4033_s15, 4  ;;  %s35_s18 = sshll.u32 %s4034_s17, 4  ;;  %s132_s16 = int_to_ptr.vmem [resolvable:$true] %s131_s16  ;;  %s36_s18 = int_to_ptr.vmem [resolvable:$true] %s35_s18 }
  0x32   :  { %s3799_s19 = scalar_lea.vmem %s132_s16, 16  ;;  %s3803_s5 = scalar_lea.vmem %s132_s16, 32 }
  0x33   :  { %p3800_p6 = scmp.ne.s32.totalorder %s132_s16, %s3799_s19  ;;  %p3804_p7 = scmp.lt.s32.totalorder %s132_s16, %s132_s16 }
  0x34   :  { %p3805_p8 = scmp.lt.s32.totalorder %s3803_s5, %s3799_s19 }
  0x36   :  { %p3806_p9 = por %p3805_p8, %p3804_p7 }
  0x38   :  { %p3807_p10 = pnand %p3806_p9, %p3800_p6 }
  0x3a   :  { %3810 = shalt.err (!%p3807_p10)
}
  0x3b   :  { %134 = dma.hbm_to_vmem [thread:$0]  %s4223_s9, 16, %s132_s16, [#allocation18]  }
  0x3c   :  { %s3819_s22 = scalar_lea.vmem %s36_s18, 2432  ;;  %p3824_p12 = scmp.lt.s32.totalorder %s36_s18, %s36_s18 }
  0x3d   :  { %p3820_p11 = scmp.ne.s32.totalorder %s36_s18, %s3819_s22  ;;  %p3825_p13 = scmp.lt.s32.totalorder %s3819_s22, %s3819_s22 }
  0x3f   :  { %p3826_p0 = por %p3825_p13, %p3824_p12 }
  0x41   :  { %p3827_p1 = pnand %p3826_p0, %p3820_p11 }
  0x43   :  { %3830 = shalt.err (!%p3827_p1)
}
  0x44   :  { %38 = dma.hbm_to_vmem [thread:$0]  %s4214_s0, 2432, %s36_s18, [#allocation3]  }
  0x45   :  { %s4035_s24 = smov [#allocation7]  }
  0x46   :  { %s54_s25 = sshll.u32 %s4035_s24, 4  ;;  %s55_s25 = int_to_ptr.vmem [resolvable:$true] %s54_s25 }
  0x47   :  { %s3839_s26 = scalar_lea.vmem %s55_s25, 75264  ;;  %p3844_p3 = scmp.lt.s32.totalorder %s55_s25, %s55_s25 }
  0x48   :  { %p3840_p2 = scmp.ne.s32.totalorder %s55_s25, %s3839_s26  ;;  %p3845_p4 = scmp.lt.s32.totalorder %s3839_s26, %s3839_s26 }
  0x4a   :  { %p3846_p5 = por %p3845_p4, %p3844_p3 }
  0x4c   :  { %p3847_p6 = pnand %p3846_p5, %p3840_p2 }
  0x4e   :  { %3850 = shalt.err (!%p3847_p6)
}
  0x4f   :  { %s4036_s9 = smov 256   ;;  %s4037_s27 = smov 16  }
  0x50   :  { %60 = dma.hbm_to_vmem [thread:$0]  %s4216_s2, 75264, %s55_s25, [#allocation6], %s4036_s9, %s4036_s9, %s4037_s27  }
  0x51   :  { %s4038_s0 = smov [#allocation10]   ;;  %s4039_s3 = smov [#allocation13]  }
  0x52   :  { %s77_s29 = sshll.u32 %s4038_s0, 4  ;;  %s96_s30 = sshll.u32 %s4039_s3, 4  ;;  %s78_s29 = int_to_ptr.vmem [resolvable:$true] %s77_s29  ;;  %s97_s30 = int_to_ptr.vmem [resolvable:$true] %s96_s30 }
  0x53   :  { %s3859_s15 = scalar_lea.vmem %s78_s29, 2432  ;;  %p3864_p8 = scmp.lt.s32.totalorder %s78_s29, %s78_s29 }
  0x54   :  { %p3860_p7 = scmp.ne.s32.totalorder %s78_s29, %s3859_s15  ;;  %p3865_p9 = scmp.lt.s32.totalorder %s3859_s15, %s3859_s15 }
  0x56   :  { %p3866_p10 = por %p3865_p9, %p3864_p8 }
  0x58   :  { %p3867_p11 = pnand %p3866_p10, %p3860_p7 }
  0x5a   :  { %3870 = shalt.err (!%p3867_p11)
}
  0x5b   :  { %80 = dma.hbm_to_vmem [thread:$0]  %s4218_s4, 2432, %s78_s29, [#allocation9]  }
  0x5c   :  { %s3879_s18 = scalar_lea.vmem %s97_s30, 75264  ;;  %p3884_p13 = scmp.lt.s32.totalorder %s97_s30, %s97_s30 }
  0x5d   :  { %p3880_p12 = scmp.ne.s32.totalorder %s97_s30, %s3879_s18  ;;  %p3885_p0 = scmp.lt.s32.totalorder %s3879_s18, %s3879_s18 }
  0x5f   :  { %p3886_p1 = por %p3885_p0, %p3884_p13 }
  0x61   :  { %p3887_p2 = pnand %p3886_p1, %p3880_p12 }
  0x63   :  { %3890 = shalt.err (!%p3887_p2)
}
  0x64   :  { %102 = dma.hbm_to_vmem [thread:$0]  %s4220_s6, 75264, %s97_s30, [#allocation12], %s4036_s9, %s4036_s9, %s4037_s27  }
  0x65   :  { %s4040_s5 = smov [#allocation16]  }
  0x66   :  { %s118_s20 = sshll.u32 %s4040_s5, 4  ;;  %s119_s20 = int_to_ptr.vmem [resolvable:$true] %s118_s20 }
  0x67   :  { %s3899_s21 = scalar_lea.vmem %s119_s20, 4096  ;;  %p3904_p4 = scmp.lt.s32.totalorder %s119_s20, %s119_s20 }
  0x68   :  { %p3900_p3 = scmp.ne.s32.totalorder %s119_s20, %s3899_s21  ;;  %p3905_p5 = scmp.lt.s32.totalorder %s3899_s21, %s3899_s21 }
  0x6a   :  { %p3906_p6 = por %p3905_p5, %p3904_p4 }
  0x6c   :  { %p3907_p7 = pnand %p3906_p6, %p3900_p3 }
  0x6e   :  { %3910 = shalt.err (!%p3907_p7)
}
  0x6f   :  { %s4041_s4 = smov 128   ;;  %s4042_s22 = smov 8  }
  0x70   :  { %124 = dma.hbm_to_vmem [thread:$0]  %s4222_s8, 4096, %s119_s20, [#allocation15], %s4041_s4, %s4041_s4, %s4042_s22  }
  0x71   :  { %s4043_s24 = smov [#allocation19]   ;;  %s4044_s26 = smov [#allocation20]  }
  0x72   :  { %s140_s25 = sshll.u32 %s4043_s24, 4  ;;  %s153_s6 = sshll.u32 %s4044_s26, 4  ;;  %s141_s25 = int_to_ptr.vmem [resolvable:$true] %s140_s25  ;;  %s154_s6 = int_to_ptr.vmem [resolvable:$true] %s153_s6 }
  0x73   :  { %s3919_s1 = scalar_lea.vmem %s141_s25, 4096  ;;  %p3924_p9 = scmp.lt.s32.totalorder %s141_s25, %s141_s25 }
  0x74   :  { %p3920_p8 = scmp.ne.s32.totalorder %s141_s25, %s3919_s1  ;;  %p3925_p10 = scmp.lt.s32.totalorder %s3919_s1, %s3919_s1 }
  0x76   :  { %p3926_p11 = por %p3925_p10, %p3924_p9 }
  0x78   :  { %p3927_p12 = pnand %p3926_p11, %p3920_p8 }
  0x7a   :  { %3930 = shalt.err (!%p3927_p12)
}
  0x7b   :  { %146 = dma.hbm_to_vmem [thread:$0]  %s4224_s10, 4096, %s141_s25, [#allocation18], %s4036_s9, %s4036_s9, %s4037_s27  }
  0x7c   :  { %s3939_s8 = scalar_lea.vmem %s154_s6, 32  ;;  %p3944_p0 = scmp.lt.s32.totalorder %s154_s6, %s154_s6 }
  0x7d   :  { %p3940_p13 = scmp.ne.s32.totalorder %s154_s6, %s3939_s8  ;;  %p3945_p1 = scmp.lt.s32.totalorder %s3939_s8, %s3939_s8 }
  0x7f   :  { %p3946_p2 = por %p3945_p1, %p3944_p0 }
  0x81   :  { %p3947_p3 = pnand %p3946_p2, %p3940_p13 }
  0x83   :  { %3950 = shalt.err (!%p3947_p3)
}
  0x84   :  { %156 = dma.hbm_to_vmem [thread:$0]  %s4225_s11, 32, %s154_s6, [#allocation21]  }
  0x85   :  { %4011 = dma.done.wait [#allocation3], 2432  }
  0x86   :  { %4012 = vsyncadd [#allocation3], 4294964864 }
  0x87   :  { %4013 = dma.done.wait [#allocation6], 75392  }
  0x88   :  { %4014 = vsyncadd [#allocation6], 4294891904 }
  0x89   :  { %4015 = dma.done.wait [#allocation9], 2464  }
  0x8a   :  { %4016 = vsyncadd [#allocation9], 4294964832 }
  0x8b   :  { %4017 = dma.done.wait [#allocation12], 75392  }
  0x8c   :  { %4018 = vsyncadd [#allocation12], 4294891904 }
  0x8d   :  { %4019 = dma.done.wait [#allocation15], 4128  }
  0x8e   :  { %4020 = vsyncadd [#allocation15], 4294963168 }
  0x8f   :  { %4021 = dma.done.wait [#allocation18], 4112  }
  0x90   :  { %4022 = vsyncadd [#allocation18], 4294963184 }
  0x91   :  { %4023 = dma.done.wait [#allocation21], 32  }
  0x92   :  { %4024 = vsyncadd [#allocation21], 4294967264  ;;  %v243_v0 = vld [vmem:[#allocation7 + $0xf8] sm:$0xff]  ;;  %v242_v1 = vld [vmem:[#allocation7 + $0xf0] sm:$0xff]  ;;  %vm816_vm0 = vcmask 1041408   ;;  %vm812_vm1 = vcmask 343040  }
  0x93   :  { %v241_v2 = vld [vmem:[#allocation7 + $0xe8] sm:$0xff]  ;;  %823 = vmatprep.subr.mxu0 %v243_v0  ;;  %v307_v3 = vld [vmem:[#allocation7 + $0x2f8] sm:$0xff]  ;;  %v240_v4 = vld [vmem:[#allocation7 + $0xe0] sm:$0xff]  ;;  %vm1534_vm2 = vcmask 64512   ;;  %s4046_s10 = smov [#allocation23]   ;;  %s4047_s9 = smov [#allocation22]  }
  0x94   :  { %v306_v5 = vld [vmem:[#allocation7 + $0x2f0] sm:$0xff]  ;;  %824 = vmatpush1.msra.mxu0 %v242_v1  ;;  %894 = vmatprep.subr.mxu1 %v307_v3  ;;  %v239_v6 = vld [vmem:[#allocation7 + $0xd8] sm:$0xff]  ;;  %v305_v7 = vld [vmem:[#allocation7 + $0x2e8] sm:$0xff]  ;;  %s3590_s11 = sshll.u32 %s4046_s10, 4  ;;  %s3580_s27 = sshll.u32 %s4047_s9, 4  ;;  %s3591_s11 = int_to_ptr.vmem [resolvable:$true] %s3590_s11  ;;  %s3581_s27 = int_to_ptr.vmem [resolvable:$true] %s3580_s27 }
  0x95   :  { %825 = vmatprep.subr.mxu0 %v241_v2  ;;  %895 = vmatpush1.msra.mxu1 %v306_v5  ;;  %v238_v8 = vld [vmem:[#allocation7 + $0xd0] sm:$0xff]  ;;  %v304_v9 = vld [vmem:[#allocation7 + $0x2e0] sm:$0xff]  ;;  %v303_v10 = vld [vmem:[#allocation7 + $0x2d8] sm:$0xff]  ;;  %s3951_s30 = scalar_lea.vmem %s3591_s11, 256  ;;  %p3956_p5 = scmp.lt.s32.totalorder %s3591_s11, %s3591_s11 }
  0x96   :  { %826 = vmatpush1.msra.mxu0 %v240_v4  ;;  %896 = vmatprep.subr.mxu1 %v305_v7  ;;  %v237_v11 = vld [vmem:[#allocation7 + $0xc8] sm:$0xff]  ;;  %v302_v12 = vld [vmem:[#allocation7 + $0x2d0] sm:$0xff]  ;;  %v236_v13 = vld [vmem:[#allocation7 + $0xc0] sm:$0xff]  ;;  %p3952_p4 = scmp.ne.s32.totalorder %s3591_s11, %s3951_s30  ;;  %p3957_p6 = scmp.lt.s32.totalorder %s3951_s30, %s3951_s30 }
  0x97   :  { %827 = vmatprep.subr.mxu0 %v239_v6  ;;  %897 = vmatpush1.msra.mxu1 %v304_v9  ;;  %v301_v14 = vld [vmem:[#allocation7 + $0x2c8] sm:$0xff]  ;;  %v235_v15 = vld [vmem:[#allocation7 + $0xb8] sm:$0xff]  ;;  %v300_v16 = vld [vmem:[#allocation7 + $0x2c0] sm:$0xff] }
  0x98   :  { %828 = vmatpush1.msra.mxu0 %v238_v8  ;;  %898 = vmatprep.subr.mxu1 %v303_v10  ;;  %v234_v17 = vld [vmem:[#allocation7 + $0xb0] sm:$0xff]  ;;  %v299_v18 = vld [vmem:[#allocation7 + $0x2b8] sm:$0xff]  ;;  %v233_v19 = vld [vmem:[#allocation7 + $0xa8] sm:$0xff]  ;;  %p3958_p7 = por %p3957_p6, %p3956_p5 }
  0x99   :  { %829 = vmatprep.subr.mxu0 %v237_v11  ;;  %899 = vmatpush1.msra.mxu1 %v302_v12  ;;  %v298_v20 = vld [vmem:[#allocation7 + $0x2b0] sm:$0xff]  ;;  %v232_v21 = vld [vmem:[#allocation7 + $0xa0] sm:$0xff]  ;;  %v297_v22 = vld [vmem:[#allocation7 + $0x2a8] sm:$0xff] }
  0x9a   :  { %830 = vmatpush1.msra.mxu0 %v236_v13  ;;  %900 = vmatprep.subr.mxu1 %v301_v14  ;;  %v231_v23 = vld [vmem:[#allocation7 + $0x98] sm:$0xff]  ;;  %v296_v24 = vld [vmem:[#allocation7 + $0x2a0] sm:$0xff]  ;;  %v230_v25 = vld [vmem:[#allocation7 + $0x90] sm:$0xff]  ;;  %p3959_p8 = pnand %p3958_p7, %p3952_p4 }
  0x9b   :  { %831 = vmatprep.subr.mxu0 %v235_v15  ;;  %901 = vmatpush1.msra.mxu1 %v300_v16  ;;  %v295_v26 = vld [vmem:[#allocation7 + $0x298] sm:$0xff]  ;;  %v229_v27 = vld [vmem:[#allocation7 + $0x88] sm:$0xff]  ;;  %v294_v28 = vld [vmem:[#allocation7 + $0x290] sm:$0xff] }
  0x9c   :  { %832 = vmatpush1.msra.mxu0 %v234_v17  ;;  %902 = vmatprep.subr.mxu1 %v299_v18  ;;  %v228_v29 = vld [vmem:[#allocation7 + $0x80] sm:$0xff]  ;;  %v293_v30 = vld [vmem:[#allocation7 + $0x288] sm:$0xff]  ;;  %v227_v31 = vld [vmem:[#allocation7 + $0x78] sm:$0xff] }
  0x9d   :  { %833 = vmatprep.subr.mxu0 %v233_v19  ;;  %903 = vmatpush1.msra.mxu1 %v298_v20  ;;  %v292_v32 = vld [vmem:[#allocation7 + $0x280] sm:$0xff]  ;;  %v226_v33 = vld [vmem:[#allocation7 + $0x70] sm:$0xff]  ;;  %v291_v34 = vld [vmem:[#allocation7 + $0x278] sm:$0xff] }
  0x9e   :  { %834 = vmatpush1.msra.mxu0 %v232_v21  ;;  %904 = vmatprep.subr.mxu1 %v297_v22  ;;  %v225_v35 = vld [vmem:[#allocation7 + $0x68] sm:$0xff]  ;;  %v290_v36 = vld [vmem:[#allocation7 + $0x270] sm:$0xff]  ;;  %v224_v37 = vld [vmem:[#allocation7 + $0x60] sm:$0xff] }
  0x9f   :  { %835 = vmatprep.subr.mxu0 %v231_v23  ;;  %905 = vmatpush1.msra.mxu1 %v296_v24  ;;  %v289_v38 = vld [vmem:[#allocation7 + $0x268] sm:$0xff]  ;;  %v223_v39 = vld [vmem:[#allocation7 + $0x58] sm:$0xff]  ;;  %v288_v40 = vld [vmem:[#allocation7 + $0x260] sm:$0xff] }
  0xa0   :  { %836 = vmatpush1.msra.mxu0 %v230_v25  ;;  %906 = vmatprep.subr.mxu1 %v295_v26  ;;  %v222_v41 = vld [vmem:[#allocation7 + $0x50] sm:$0xff]  ;;  %v287_v42 = vld [vmem:[#allocation7 + $0x258] sm:$0xff]  ;;  %v221_v43 = vld [vmem:[#allocation7 + $0x48] sm:$0xff] }
  0xa1   :  { %837 = vmatprep.subr.mxu0 %v229_v27  ;;  %907 = vmatpush1.msra.mxu1 %v294_v28  ;;  %v286_v44 = vld [vmem:[#allocation7 + $0x250] sm:$0xff]  ;;  %v220_v45 = vld [vmem:[#allocation7 + $0x40] sm:$0xff]  ;;  %v285_v46 = vld [vmem:[#allocation7 + $0x248] sm:$0xff] }
  0xa2   :  { %838 = vmatpush1.msra.mxu0 %v228_v29  ;;  %908 = vmatprep.subr.mxu1 %v293_v30  ;;  %v219_v47 = vld [vmem:[#allocation7 + $0x38] sm:$0xff]  ;;  %v284_v48 = vld [vmem:[#allocation7 + $0x240] sm:$0xff]  ;;  %v218_v49 = vld [vmem:[#allocation7 + $0x30] sm:$0xff] }
  0xa3   :  { %839 = vmatprep.subr.mxu0 %v227_v31  ;;  %909 = vmatpush1.msra.mxu1 %v292_v32  ;;  %v283_v50 = vld [vmem:[#allocation7 + $0x238] sm:$0xff]  ;;  %v217_v51 = vld [vmem:[#allocation7 + $0x28] sm:$0xff]  ;;  %v282_v52 = vld [vmem:[#allocation7 + $0x230] sm:$0xff] }
  0xa4   :  { %840 = vmatpush1.msra.mxu0 %v226_v33  ;;  %910 = vmatprep.subr.mxu1 %v291_v34  ;;  %v216_v53 = vld [vmem:[#allocation7 + $0x20] sm:$0xff]  ;;  %v281_v54 = vld [vmem:[#allocation7 + $0x228] sm:$0xff]  ;;  %v215_v55 = vld [vmem:[#allocation7 + $0x18] sm:$0xff] }
  0xa5   :  { %841 = vmatprep.subr.mxu0 %v225_v35  ;;  %911 = vmatpush1.msra.mxu1 %v290_v36  ;;  %v280_v56 = vld [vmem:[#allocation7 + $0x220] sm:$0xff]  ;;  %v214_v57 = vld [vmem:[#allocation7 + $0x10] sm:$0xff]  ;;  %v279_v58 = vld [vmem:[#allocation7 + $0x218] sm:$0xff] }
  0xa6   :  { %842 = vmatpush1.msra.mxu0 %v224_v37  ;;  %912 = vmatprep.subr.mxu1 %v289_v38  ;;  %v213_v59 = vld [vmem:[#allocation7 + $0x8] sm:$0xff]  ;;  %v278_v60 = vld [vmem:[#allocation7 + $0x210] sm:$0xff]  ;;  %v212_v61 = vld [vmem:[#allocation7] sm:$0xff] }
  0xa7   :  { %843 = vmatprep.subr.mxu0 %v223_v39  ;;  %913 = vmatpush1.msra.mxu1 %v288_v40  ;;  %v277_v62 = vld [vmem:[#allocation7 + $0x208] sm:$0xff]  ;;  %v275_v63 = vld [vmem:[#allocation7 + $0x1f8] sm:$0xff]  ;;  %v276_v0 = vld [vmem:[#allocation7 + $0x200] sm:$0xff] }
  0xa8   :  { %844 = vmatpush1.msra.mxu0 %v222_v41  ;;  %914 = vmatprep.subr.mxu1 %v287_v42  ;;  %v274_v1 = vld [vmem:[#allocation7 + $0x1f0] sm:$0xff]  ;;  %v339_v2 = vld [vmem:[#allocation7 + $0x3f8] sm:$0xff]  ;;  %v273_v3 = vld [vmem:[#allocation7 + $0x1e8] sm:$0xff] }
  0xa9   :  { %845 = vmatprep.subr.mxu0 %v221_v43  ;;  %915 = vmatpush1.msra.mxu1 %v286_v44  ;;  %v338_v4 = vld [vmem:[#allocation7 + $0x3f0] sm:$0xff]  ;;  %v272_v5 = vld [vmem:[#allocation7 + $0x1e0] sm:$0xff]  ;;  %v337_v6 = vld [vmem:[#allocation7 + $0x3e8] sm:$0xff] }
  0xaa   :  { %846 = vmatpush1.msra.mxu0 %v220_v45  ;;  %916 = vmatprep.subr.mxu1 %v285_v46  ;;  %v271_v7 = vld [vmem:[#allocation7 + $0x1d8] sm:$0xff]  ;;  %v336_v8 = vld [vmem:[#allocation7 + $0x3e0] sm:$0xff]  ;;  %v270_v9 = vld [vmem:[#allocation7 + $0x1d0] sm:$0xff] }
  0xab   :  { %847 = vmatprep.subr.mxu0 %v219_v47  ;;  %917 = vmatpush1.msra.mxu1 %v284_v48  ;;  %v335_v10 = vld [vmem:[#allocation7 + $0x3d8] sm:$0xff]  ;;  %v269_v11 = vld [vmem:[#allocation7 + $0x1c8] sm:$0xff]  ;;  %v334_v12 = vld [vmem:[#allocation7 + $0x3d0] sm:$0xff] }
  0xac   :  { %848 = vmatpush1.msra.mxu0 %v218_v49  ;;  %918 = vmatprep.subr.mxu1 %v283_v50  ;;  %v268_v13 = vld [vmem:[#allocation7 + $0x1c0] sm:$0xff]  ;;  %v333_v14 = vld [vmem:[#allocation7 + $0x3c8] sm:$0xff]  ;;  %v267_v15 = vld [vmem:[#allocation7 + $0x1b8] sm:$0xff] }
  0xad   :  { %849 = vmatprep.subr.mxu0 %v217_v51  ;;  %919 = vmatpush1.msra.mxu1 %v282_v52  ;;  %v332_v16 = vld [vmem:[#allocation7 + $0x3c0] sm:$0xff]  ;;  %v266_v17 = vld [vmem:[#allocation7 + $0x1b0] sm:$0xff]  ;;  %v331_v18 = vld [vmem:[#allocation7 + $0x3b8] sm:$0xff] }
  0xae   :  { %850 = vmatpush1.msra.mxu0 %v216_v53  ;;  %920 = vmatprep.subr.mxu1 %v281_v54  ;;  %v265_v19 = vld [vmem:[#allocation7 + $0x1a8] sm:$0xff]  ;;  %v330_v20 = vld [vmem:[#allocation7 + $0x3b0] sm:$0xff]  ;;  %v264_v21 = vld [vmem:[#allocation7 + $0x1a0] sm:$0xff] }
  0xaf   :  { %851 = vmatprep.subr.mxu0 %v215_v55  ;;  %921 = vmatpush1.msra.mxu1 %v280_v56  ;;  %v329_v22 = vld [vmem:[#allocation7 + $0x3a8] sm:$0xff]  ;;  %v263_v23 = vld [vmem:[#allocation7 + $0x198] sm:$0xff]  ;;  %v328_v24 = vld [vmem:[#allocation7 + $0x3a0] sm:$0xff] }
  0xb0   :  { %852 = vmatpush1.msra.mxu0 %v214_v57  ;;  %922 = vmatprep.subr.mxu1 %v279_v58  ;;  %v262_v25 = vld [vmem:[#allocation7 + $0x190] sm:$0xff]  ;;  %v327_v26 = vld [vmem:[#allocation7 + $0x398] sm:$0xff]  ;;  %v261_v27 = vld [vmem:[#allocation7 + $0x188] sm:$0xff] }
  0xb1   :  { %853 = vmatprep.subr.mxu0 %v213_v59  ;;  %923 = vmatpush1.msra.mxu1 %v278_v60  ;;  %v326_v28 = vld [vmem:[#allocation7 + $0x390] sm:$0xff]  ;;  %v260_v29 = vld [vmem:[#allocation7 + $0x180] sm:$0xff]  ;;  %v325_v30 = vld [vmem:[#allocation7 + $0x388] sm:$0xff] }
  0xb2   :  { %854 = vmatpush1.msra.mxu0 %v212_v61  ;;  %924 = vmatprep.subr.mxu1 %v277_v62  ;;  %v259_v31 = vld [vmem:[#allocation7 + $0x178] sm:$0xff]  ;;  %v324_v32 = vld [vmem:[#allocation7 + $0x380] sm:$0xff]  ;;  %v258_v33 = vld [vmem:[#allocation7 + $0x170] sm:$0xff] }
  0xb3   :  { %855 = vmatprep.subr.mxu0 %v275_v63  ;;  %925 = vmatpush1.msra.mxu1 %v276_v0  ;;  %v323_v34 = vld [vmem:[#allocation7 + $0x378] sm:$0xff]  ;;  %v257_v35 = vld [vmem:[#allocation7 + $0x168] sm:$0xff]  ;;  %v322_v36 = vld [vmem:[#allocation7 + $0x370] sm:$0xff] }
  0xb4   :  { %856 = vmatpush2.msra.mxu0 %v274_v1  ;;  %926 = vmatprep.subr.mxu1 %v339_v2  ;;  %v256_v37 = vld [vmem:[#allocation7 + $0x160] sm:$0xff]  ;;  %v321_v38 = vld [vmem:[#allocation7 + $0x368] sm:$0xff]  ;;  %v255_v39 = vld [vmem:[#allocation7 + $0x158] sm:$0xff] }
  0xb5   :  { %857 = vmatprep.subr.mxu0 %v273_v3  ;;  %927 = vmatpush2.msra.mxu1 %v338_v4  ;;  %v320_v40 = vld [vmem:[#allocation7 + $0x360] sm:$0xff]  ;;  %v254_v41 = vld [vmem:[#allocation7 + $0x150] sm:$0xff]  ;;  %v319_v42 = vld [vmem:[#allocation7 + $0x358] sm:$0xff] }
  0xb6   :  { %858 = vmatpush2.msra.mxu0 %v272_v5  ;;  %928 = vmatprep.subr.mxu1 %v337_v6  ;;  %v253_v43 = vld [vmem:[#allocation7 + $0x148] sm:$0xff]  ;;  %v318_v44 = vld [vmem:[#allocation7 + $0x350] sm:$0xff]  ;;  %v252_v45 = vld [vmem:[#allocation7 + $0x140] sm:$0xff] }
  0xb7   :  { %859 = vmatprep.subr.mxu0 %v271_v7  ;;  %929 = vmatpush2.msra.mxu1 %v336_v8  ;;  %v317_v46 = vld [vmem:[#allocation7 + $0x348] sm:$0xff]  ;;  %v251_v47 = vld [vmem:[#allocation7 + $0x138] sm:$0xff]  ;;  %v316_v48 = vld [vmem:[#allocation7 + $0x340] sm:$0xff] }
  0xb8   :  { %860 = vmatpush2.msra.mxu0 %v270_v9  ;;  %930 = vmatprep.subr.mxu1 %v335_v10  ;;  %v250_v49 = vld [vmem:[#allocation7 + $0x130] sm:$0xff]  ;;  %v315_v50 = vld [vmem:[#allocation7 + $0x338] sm:$0xff]  ;;  %v249_v51 = vld [vmem:[#allocation7 + $0x128] sm:$0xff] }
  0xb9   :  { %861 = vmatprep.subr.mxu0 %v269_v11  ;;  %931 = vmatpush2.msra.mxu1 %v334_v12  ;;  %v314_v52 = vld [vmem:[#allocation7 + $0x330] sm:$0xff]  ;;  %v248_v53 = vld [vmem:[#allocation7 + $0x120] sm:$0xff]  ;;  %v313_v54 = vld [vmem:[#allocation7 + $0x328] sm:$0xff] }
  0xba   :  { %862 = vmatpush2.msra.mxu0 %v268_v13  ;;  %932 = vmatprep.subr.mxu1 %v333_v14  ;;  %v247_v55 = vld [vmem:[#allocation7 + $0x118] sm:$0xff]  ;;  %v312_v56 = vld [vmem:[#allocation7 + $0x320] sm:$0xff]  ;;  %v246_v57 = vld [vmem:[#allocation7 + $0x110] sm:$0xff] }
  0xbb   :  { %863 = vmatprep.subr.mxu0 %v267_v15  ;;  %933 = vmatpush2.msra.mxu1 %v332_v16  ;;  %v311_v58 = vld [vmem:[#allocation7 + $0x318] sm:$0xff]  ;;  %v245_v59 = vld [vmem:[#allocation7 + $0x108] sm:$0xff]  ;;  %v244_v61 = vld [vmem:[#allocation7 + $0x100] sm:$0xff] }
  0xbc   :  { %864 = vmatpush2.msra.mxu0 %v266_v17  ;;  %934 = vmatprep.subr.mxu1 %v331_v18  ;;  %v194_v60 = vld [vmem:[#allocation2 + $0x8] sm:$0xff]  ;;  %v310_v62 = vld [vmem:[#allocation7 + $0x310] sm:$0xff]  ;;  %v193_v63 = vld [vmem:[#allocation2] sm:$0xff] }
  0xbd   :  { %865 = vmatprep.subr.mxu0 %v265_v19  ;;  %935 = vmatpush2.msra.mxu1 %v330_v20  ;;  %v309_v0 = vld [vmem:[#allocation7 + $0x308] sm:$0xff]  ;;  %v371_v1 = vld [vmem:[#allocation7 + $0x4f8] sm:$0xff]  ;;  %v308_v2 = vld [vmem:[#allocation7 + $0x300] sm:$0xff] }
  0xbe   :  { %866 = vmatpush2.msra.mxu0 %v264_v21  ;;  %936 = vmatprep.subr.mxu1 %v329_v22  ;;  %v196_v3 = vld [vmem:[#allocation2 + $0x18] sm:$0xff]  ;;  %v370_v4 = vld [vmem:[#allocation7 + $0x4f0] sm:$0xff]  ;;  %v369_v6 = vld [vmem:[#allocation7 + $0x4e8] sm:$0xff] }
  0xbf   :  { %867 = vmatprep.subr.mxu0 %v263_v23  ;;  %937 = vmatpush2.msra.mxu1 %v328_v24  ;;  %v195_v5 = vld [vmem:[#allocation2 + $0x10] sm:$0xff]  ;;  %v435_v7 = vld [vmem:[#allocation7 + $0x6f8] sm:$0xff]  ;;  %v368_v8 = vld [vmem:[#allocation7 + $0x4e0] sm:$0xff] }
  0xc0   :  { %868 = vmatpush2.msra.mxu0 %v262_v25  ;;  %938 = vmatprep.subr.mxu1 %v327_v26  ;;  %v434_v9 = vld [vmem:[#allocation7 + $0x6f0] sm:$0xff]  ;;  %v367_v10 = vld [vmem:[#allocation7 + $0x4d8] sm:$0xff]  ;;  %v433_v11 = vld [vmem:[#allocation7 + $0x6e8] sm:$0xff] }
  0xc1   :  { %869 = vmatprep.subr.mxu0 %v261_v27  ;;  %939 = vmatpush2.msra.mxu1 %v326_v28  ;;  %v366_v12 = vld [vmem:[#allocation7 + $0x4d0] sm:$0xff]  ;;  %v432_v13 = vld [vmem:[#allocation7 + $0x6e0] sm:$0xff]  ;;  %v365_v14 = vld [vmem:[#allocation7 + $0x4c8] sm:$0xff] }
  0xc2   :  { %870 = vmatpush2.msra.mxu0 %v260_v29  ;;  %940 = vmatprep.subr.mxu1 %v325_v30  ;;  %v431_v15 = vld [vmem:[#allocation7 + $0x6d8] sm:$0xff]  ;;  %v364_v16 = vld [vmem:[#allocation7 + $0x4c0] sm:$0xff]  ;;  %v430_v17 = vld [vmem:[#allocation7 + $0x6d0] sm:$0xff] }
  0xc3   :  { %871 = vmatprep.subr.mxu0 %v259_v31  ;;  %941 = vmatpush2.msra.mxu1 %v324_v32  ;;  %v363_v18 = vld [vmem:[#allocation7 + $0x4b8] sm:$0xff]  ;;  %v429_v19 = vld [vmem:[#allocation7 + $0x6c8] sm:$0xff]  ;;  %v362_v20 = vld [vmem:[#allocation7 + $0x4b0] sm:$0xff] }
  0xc4   :  { %872 = vmatpush2.msra.mxu0 %v258_v33  ;;  %942 = vmatprep.subr.mxu1 %v323_v34  ;;  %v428_v21 = vld [vmem:[#allocation7 + $0x6c0] sm:$0xff]  ;;  %v361_v22 = vld [vmem:[#allocation7 + $0x4a8] sm:$0xff]  ;;  %v427_v23 = vld [vmem:[#allocation7 + $0x6b8] sm:$0xff] }
  0xc5   :  { %873 = vmatprep.subr.mxu0 %v257_v35  ;;  %943 = vmatpush2.msra.mxu1 %v322_v36  ;;  %v360_v24 = vld [vmem:[#allocation7 + $0x4a0] sm:$0xff]  ;;  %v426_v25 = vld [vmem:[#allocation7 + $0x6b0] sm:$0xff]  ;;  %v359_v26 = vld [vmem:[#allocation7 + $0x498] sm:$0xff] }
  0xc6   :  { %874 = vmatpush2.msra.mxu0 %v256_v37  ;;  %944 = vmatprep.subr.mxu1 %v321_v38  ;;  %v425_v27 = vld [vmem:[#allocation7 + $0x6a8] sm:$0xff]  ;;  %v358_v28 = vld [vmem:[#allocation7 + $0x490] sm:$0xff]  ;;  %v424_v29 = vld [vmem:[#allocation7 + $0x6a0] sm:$0xff] }
  0xc7   :  { %875 = vmatprep.subr.mxu0 %v255_v39  ;;  %945 = vmatpush2.msra.mxu1 %v320_v40  ;;  %v357_v30 = vld [vmem:[#allocation7 + $0x488] sm:$0xff]  ;;  %v423_v31 = vld [vmem:[#allocation7 + $0x698] sm:$0xff]  ;;  %v356_v32 = vld [vmem:[#allocation7 + $0x480] sm:$0xff] }
  0xc8   :  { %876 = vmatpush2.msra.mxu0 %v254_v41  ;;  %946 = vmatprep.subr.mxu1 %v319_v42  ;;  %v422_v33 = vld [vmem:[#allocation7 + $0x690] sm:$0xff]  ;;  %v355_v34 = vld [vmem:[#allocation7 + $0x478] sm:$0xff]  ;;  %v421_v35 = vld [vmem:[#allocation7 + $0x688] sm:$0xff] }
  0xc9   :  { %877 = vmatprep.subr.mxu0 %v253_v43  ;;  %947 = vmatpush2.msra.mxu1 %v318_v44  ;;  %v354_v36 = vld [vmem:[#allocation7 + $0x470] sm:$0xff]  ;;  %v420_v37 = vld [vmem:[#allocation7 + $0x680] sm:$0xff]  ;;  %v353_v38 = vld [vmem:[#allocation7 + $0x468] sm:$0xff] }
  0xca   :  { %878 = vmatpush2.msra.mxu0 %v252_v45  ;;  %948 = vmatprep.subr.mxu1 %v317_v46  ;;  %v419_v39 = vld [vmem:[#allocation7 + $0x678] sm:$0xff]  ;;  %v352_v40 = vld [vmem:[#allocation7 + $0x460] sm:$0xff]  ;;  %v418_v41 = vld [vmem:[#allocation7 + $0x670] sm:$0xff] }
  0xcb   :  { %879 = vmatprep.subr.mxu0 %v251_v47  ;;  %949 = vmatpush2.msra.mxu1 %v316_v48  ;;  %v351_v42 = vld [vmem:[#allocation7 + $0x458] sm:$0xff]  ;;  %v417_v43 = vld [vmem:[#allocation7 + $0x668] sm:$0xff]  ;;  %v350_v44 = vld [vmem:[#allocation7 + $0x450] sm:$0xff] }
  0xcc   :  { %880 = vmatpush2.msra.mxu0 %v250_v49  ;;  %950 = vmatprep.subr.mxu1 %v315_v50  ;;  %v416_v45 = vld [vmem:[#allocation7 + $0x660] sm:$0xff]  ;;  %v349_v46 = vld [vmem:[#allocation7 + $0x448] sm:$0xff]  ;;  %v415_v47 = vld [vmem:[#allocation7 + $0x658] sm:$0xff] }
  0xcd   :  { %881 = vmatprep.subr.mxu0 %v249_v51  ;;  %951 = vmatpush2.msra.mxu1 %v314_v52  ;;  %v348_v48 = vld [vmem:[#allocation7 + $0x440] sm:$0xff]  ;;  %v414_v49 = vld [vmem:[#allocation7 + $0x650] sm:$0xff]  ;;  %v347_v50 = vld [vmem:[#allocation7 + $0x438] sm:$0xff] }
  0xce   :  { %882 = vmatpush2.msra.mxu0 %v248_v53  ;;  %952 = vmatprep.subr.mxu1 %v313_v54  ;;  %v413_v51 = vld [vmem:[#allocation7 + $0x648] sm:$0xff]  ;;  %v346_v52 = vld [vmem:[#allocation7 + $0x430] sm:$0xff]  ;;  %v412_v53 = vld [vmem:[#allocation7 + $0x640] sm:$0xff] }
  0xcf   :  { %883 = vmatprep.subr.mxu0 %v247_v55  ;;  %953 = vmatpush2.msra.mxu1 %v312_v56  ;;  %v345_v54 = vld [vmem:[#allocation7 + $0x428] sm:$0xff]  ;;  %v411_v55 = vld [vmem:[#allocation7 + $0x638] sm:$0xff]  ;;  %v344_v56 = vld [vmem:[#allocation7 + $0x420] sm:$0xff] }
  0xd0   :  { %884 = vmatpush2.msra.mxu0 %v246_v57  ;;  %954 = vmatprep.subr.mxu1 %v311_v58  ;;  %v410_v57 = vld [vmem:[#allocation7 + $0x630] sm:$0xff]  ;;  %v343_v58 = vld [vmem:[#allocation7 + $0x418] sm:$0xff] }
  0xd1   :  { %885 = vmatprep.subr.mxu0 %v245_v59  ;;  %887 = vmatprep.mubr.f32.mxu0 %v194_v60  ;;  %v409_v59 = vld [vmem:[#allocation7 + $0x628] sm:$0xff]  ;;  %v342_v60 = vld [vmem:[#allocation7 + $0x410] sm:$0xff] }
  0xd2   :  { %886 = vmatpush2.msra.mxu0 %v244_v61  ;;  %955 = vmatpush2.msra.mxu1 %v310_v62  ;;  %v408_v61 = vld [vmem:[#allocation7 + $0x620] sm:$0xff]  ;;  %v341_v62 = vld [vmem:[#allocation7 + $0x408] sm:$0xff] }
  0xd3   :  { %888 = vmatmul.mubr.f32.vlgmr.msra.gmra.mxu0 %v193_v63  ;;  %956 = vmatprep.subr.mxu1 %v309_v0  ;;  %v407_v63 = vld [vmem:[#allocation7 + $0x618] sm:$0xff]  ;;  %v340_v0 = vld [vmem:[#allocation7 + $0x400] sm:$0xff] }
  0xd4   :  { %965 = vmatprep.subr.mxu0 %v371_v1  ;;  %957 = vmatpush2.msra.mxu1 %v308_v2  ;;  %v406_v1 = vld [vmem:[#allocation7 + $0x610] sm:$0xff]  ;;  %v403_v2 = vld [vmem:[#allocation7 + $0x5f8] sm:$0xff] }
  0xd5   :  { %958 = vmatprep.mubr.f32.mxu1 %v196_v3  ;;  %966 = vmatpush1.msra.mxu0 %v370_v4  ;;  %v405_v3 = vld [vmem:[#allocation7 + $0x608] sm:$0xff]  ;;  %v402_v4 = vld [vmem:[#allocation7 + $0x5f0] sm:$0xff] }
  0xd6   :  { %959 = vmatmul.mubr.f32.vlgmr.msra.gmra.mxu1 %v195_v5  ;;  %967 = vmatprep.subr.mxu0 %v369_v6  ;;  %v404_v5 = vld [vmem:[#allocation7 + $0x600] sm:$0xff]  ;;  %v401_v6 = vld [vmem:[#allocation7 + $0x5e8] sm:$0xff] }
  0xd7   :  { %1036 = vmatprep.subr.mxu1 %v435_v7  ;;  %968 = vmatpush1.msra.mxu0 %v368_v8  ;;  %v467_v7 = vld [vmem:[#allocation7 + $0x7f8] sm:$0xff]  ;;  %v400_v8 = vld [vmem:[#allocation7 + $0x5e0] sm:$0xff] }
  0xd8   :  { %1037 = vmatpush1.msra.mxu1 %v434_v9  ;;  %969 = vmatprep.subr.mxu0 %v367_v10  ;;  %v466_v9 = vld [vmem:[#allocation7 + $0x7f0] sm:$0xff]  ;;  %v399_v10 = vld [vmem:[#allocation7 + $0x5d8] sm:$0xff] }
  0xd9   :  { %1038 = vmatprep.subr.mxu1 %v433_v11  ;;  %970 = vmatpush1.msra.mxu0 %v366_v12  ;;  %v465_v11 = vld [vmem:[#allocation7 + $0x7e8] sm:$0xff]  ;;  %v398_v12 = vld [vmem:[#allocation7 + $0x5d0] sm:$0xff] }
  0xda   :  { %1039 = vmatpush1.msra.mxu1 %v432_v13  ;;  %971 = vmatprep.subr.mxu0 %v365_v14  ;;  %v464_v13 = vld [vmem:[#allocation7 + $0x7e0] sm:$0xff]  ;;  %v397_v14 = vld [vmem:[#allocation7 + $0x5c8] sm:$0xff] }
  0xdb   :  { %1040 = vmatprep.subr.mxu1 %v431_v15  ;;  %972 = vmatpush1.msra.mxu0 %v364_v16  ;;  %v463_v15 = vld [vmem:[#allocation7 + $0x7d8] sm:$0xff]  ;;  %v396_v16 = vld [vmem:[#allocation7 + $0x5c0] sm:$0xff] }
  0xdc   :  { %1041 = vmatpush1.msra.mxu1 %v430_v17  ;;  %973 = vmatprep.subr.mxu0 %v363_v18  ;;  %v462_v17 = vld [vmem:[#allocation7 + $0x7d0] sm:$0xff]  ;;  %v395_v18 = vld [vmem:[#allocation7 + $0x5b8] sm:$0xff] }
  0xdd   :  { %1042 = vmatprep.subr.mxu1 %v429_v19  ;;  %974 = vmatpush1.msra.mxu0 %v362_v20  ;;  %v461_v19 = vld [vmem:[#allocation7 + $0x7c8] sm:$0xff]  ;;  %v394_v20 = vld [vmem:[#allocation7 + $0x5b0] sm:$0xff] }
  0xde   :  { %1043 = vmatpush1.msra.mxu1 %v428_v21  ;;  %975 = vmatprep.subr.mxu0 %v361_v22  ;;  %v460_v21 = vld [vmem:[#allocation7 + $0x7c0] sm:$0xff]  ;;  %v393_v22 = vld [vmem:[#allocation7 + $0x5a8] sm:$0xff] }
  0xdf   :  { %1044 = vmatprep.subr.mxu1 %v427_v23  ;;  %976 = vmatpush1.msra.mxu0 %v360_v24  ;;  %v459_v23 = vld [vmem:[#allocation7 + $0x7b8] sm:$0xff]  ;;  %v392_v24 = vld [vmem:[#allocation7 + $0x5a0] sm:$0xff] }
  0xe0   :  { %1045 = vmatpush1.msra.mxu1 %v426_v25  ;;  %977 = vmatprep.subr.mxu0 %v359_v26  ;;  %v458_v25 = vld [vmem:[#allocation7 + $0x7b0] sm:$0xff]  ;;  %v391_v26 = vld [vmem:[#allocation7 + $0x598] sm:$0xff] }
  0xe1   :  { %1046 = vmatprep.subr.mxu1 %v425_v27  ;;  %978 = vmatpush1.msra.mxu0 %v358_v28  ;;  %v457_v27 = vld [vmem:[#allocation7 + $0x7a8] sm:$0xff]  ;;  %v390_v28 = vld [vmem:[#allocation7 + $0x590] sm:$0xff] }
  0xe2   :  { %1047 = vmatpush1.msra.mxu1 %v424_v29  ;;  %979 = vmatprep.subr.mxu0 %v357_v30  ;;  %v456_v29 = vld [vmem:[#allocation7 + $0x7a0] sm:$0xff]  ;;  %v389_v30 = vld [vmem:[#allocation7 + $0x588] sm:$0xff] }
  0xe3   :  { %1048 = vmatprep.subr.mxu1 %v423_v31  ;;  %980 = vmatpush1.msra.mxu0 %v356_v32  ;;  %v455_v31 = vld [vmem:[#allocation7 + $0x798] sm:$0xff]  ;;  %v388_v32 = vld [vmem:[#allocation7 + $0x580] sm:$0xff] }
  0xe4   :  { %1049 = vmatpush1.msra.mxu1 %v422_v33  ;;  %981 = vmatprep.subr.mxu0 %v355_v34  ;;  %v454_v33 = vld [vmem:[#allocation7 + $0x790] sm:$0xff]  ;;  %v387_v34 = vld [vmem:[#allocation7 + $0x578] sm:$0xff] }
  0xe5   :  { %1050 = vmatprep.subr.mxu1 %v421_v35  ;;  %982 = vmatpush1.msra.mxu0 %v354_v36  ;;  %v453_v35 = vld [vmem:[#allocation7 + $0x788] sm:$0xff]  ;;  %v386_v36 = vld [vmem:[#allocation7 + $0x570] sm:$0xff] }
  0xe6   :  { %1051 = vmatpush1.msra.mxu1 %v420_v37  ;;  %983 = vmatprep.subr.mxu0 %v353_v38  ;;  %v452_v37 = vld [vmem:[#allocation7 + $0x780] sm:$0xff]  ;;  %v385_v38 = vld [vmem:[#allocation7 + $0x568] sm:$0xff] }
  0xe7   :  { %1052 = vmatprep.subr.mxu1 %v419_v39  ;;  %984 = vmatpush1.msra.mxu0 %v352_v40  ;;  %v451_v39 = vld [vmem:[#allocation7 + $0x778] sm:$0xff]  ;;  %v384_v40 = vld [vmem:[#allocation7 + $0x560] sm:$0xff] }
  0xe8   :  { %1053 = vmatpush1.msra.mxu1 %v418_v41  ;;  %985 = vmatprep.subr.mxu0 %v351_v42  ;;  %v450_v41 = vld [vmem:[#allocation7 + $0x770] sm:$0xff]  ;;  %v383_v42 = vld [vmem:[#allocation7 + $0x558] sm:$0xff] }
  0xe9   :  { %1054 = vmatprep.subr.mxu1 %v417_v43  ;;  %986 = vmatpush1.msra.mxu0 %v350_v44  ;;  %v449_v43 = vld [vmem:[#allocation7 + $0x768] sm:$0xff]  ;;  %v382_v44 = vld [vmem:[#allocation7 + $0x550] sm:$0xff] }
  0xea   :  { %1055 = vmatpush1.msra.mxu1 %v416_v45  ;;  %987 = vmatprep.subr.mxu0 %v349_v46  ;;  %v448_v45 = vld [vmem:[#allocation7 + $0x760] sm:$0xff]  ;;  %v381_v46 = vld [vmem:[#allocation7 + $0x548] sm:$0xff] }
  0xeb   :  { %1056 = vmatprep.subr.mxu1 %v415_v47  ;;  %988 = vmatpush1.msra.mxu0 %v348_v48  ;;  %v447_v47 = vld [vmem:[#allocation7 + $0x758] sm:$0xff]  ;;  %v380_v48 = vld [vmem:[#allocation7 + $0x540] sm:$0xff] }
  0xec   :  { %1057 = vmatpush1.msra.mxu1 %v414_v49  ;;  %989 = vmatprep.subr.mxu0 %v347_v50  ;;  %v446_v49 = vld [vmem:[#allocation7 + $0x750] sm:$0xff]  ;;  %v379_v50 = vld [vmem:[#allocation7 + $0x538] sm:$0xff] }
  0xed   :  { %1058 = vmatprep.subr.mxu1 %v413_v51  ;;  %990 = vmatpush1.msra.mxu0 %v346_v52  ;;  %v445_v51 = vld [vmem:[#allocation7 + $0x748] sm:$0xff]  ;;  %v378_v52 = vld [vmem:[#allocation7 + $0x530] sm:$0xff] }
  0xee   :  { %1059 = vmatpush1.msra.mxu1 %v412_v53  ;;  %991 = vmatprep.subr.mxu0 %v345_v54  ;;  %v444_v53 = vld [vmem:[#allocation7 + $0x740] sm:$0xff]  ;;  %v377_v54 = vld [vmem:[#allocation7 + $0x528] sm:$0xff] }
  0xef   :  { %1060 = vmatprep.subr.mxu1 %v411_v55  ;;  %992 = vmatpush1.msra.mxu0 %v344_v56  ;;  %v443_v55 = vld [vmem:[#allocation7 + $0x738] sm:$0xff]  ;;  %v376_v56 = vld [vmem:[#allocation7 + $0x520] sm:$0xff] }
  0xf0   :  { %1061 = vmatpush1.msra.mxu1 %v410_v57  ;;  %993 = vmatprep.subr.mxu0 %v343_v58  ;;  %v442_v57 = vld [vmem:[#allocation7 + $0x730] sm:$0xff]  ;;  %v375_v58 = vld [vmem:[#allocation7 + $0x518] sm:$0xff] }
  0xf1   :  { %1062 = vmatprep.subr.mxu1 %v409_v59  ;;  %994 = vmatpush1.msra.mxu0 %v342_v60  ;;  %v441_v59 = vld [vmem:[#allocation7 + $0x728] sm:$0xff]  ;;  %v374_v60 = vld [vmem:[#allocation7 + $0x510] sm:$0xff] }
  0xf2   :  { %1063 = vmatpush1.msra.mxu1 %v408_v61  ;;  %995 = vmatprep.subr.mxu0 %v341_v62  ;;  %v440_v61 = vld [vmem:[#allocation7 + $0x720] sm:$0xff]  ;;  %v373_v62 = vld [vmem:[#allocation7 + $0x508] sm:$0xff] }
  0xf3   :  { %1064 = vmatprep.subr.mxu1 %v407_v63  ;;  %996 = vmatpush1.msra.mxu0 %v340_v0  ;;  %v439_v63 = vld [vmem:[#allocation7 + $0x718] sm:$0xff]  ;;  %v372_v0 = vld [vmem:[#allocation7 + $0x500] sm:$0xff] }
  0xf4   :  { %1065 = vmatpush1.msra.mxu1 %v406_v1  ;;  %997 = vmatprep.subr.mxu0 %v403_v2  ;;  %v198_v1 = vld [vmem:[#allocation2 + $0x28] sm:$0xff]  ;;  %v438_v2 = vld [vmem:[#allocation7 + $0x710] sm:$0xff] }
  0xf5   :  { %1066 = vmatprep.subr.mxu1 %v405_v3  ;;  %998 = vmatpush2.msra.mxu0 %v402_v4  ;;  %v197_v3 = vld [vmem:[#allocation2 + $0x20] sm:$0xff]  ;;  %v437_v4 = vld [vmem:[#allocation7 + $0x708] sm:$0xff] }
  0xf6   :  { %1067 = vmatpush1.msra.mxu1 %v404_v5  ;;  %999 = vmatprep.subr.mxu0 %v401_v6  ;;  %v499_v5 = vld [vmem:[#allocation7 + $0x8f8] sm:$0xff]  ;;  %v436_v6 = vld [vmem:[#allocation7 + $0x700] sm:$0xff] }
  0xf7   :  { %1068 = vmatprep.subr.mxu1 %v467_v7  ;;  %1000 = vmatpush2.msra.mxu0 %v400_v8  ;;  %v200_v7 = vld [vmem:[#allocation2 + $0x38] sm:$0xff]  ;;  %v498_v8 = vld [vmem:[#allocation7 + $0x8f0] sm:$0xff] }
  0xf8   :  { %1069 = vmatpush2.msra.mxu1 %v466_v9  ;;  %1001 = vmatprep.subr.mxu0 %v399_v10  ;;  %v199_v9 = vld [vmem:[#allocation2 + $0x30] sm:$0xff]  ;;  %v497_v10 = vld [vmem:[#allocation7 + $0x8e8] sm:$0xff] }
  0xf9   :  { %1070 = vmatprep.subr.mxu1 %v465_v11  ;;  %1002 = vmatpush2.msra.mxu0 %v398_v12  ;;  %v563_v11 = vld [vmem:[#allocation7 + $0xaf8] sm:$0xff]  ;;  %v496_v12 = vld [vmem:[#allocation7 + $0x8e0] sm:$0xff] }
  0xfa   :  { %1071 = vmatpush2.msra.mxu1 %v464_v13  ;;  %1003 = vmatprep.subr.mxu0 %v397_v14  ;;  %v562_v13 = vld [vmem:[#allocation7 + $0xaf0] sm:$0xff]  ;;  %v495_v14 = vld [vmem:[#allocation7 + $0x8d8] sm:$0xff] }
  0xfb   :  { %1072 = vmatprep.subr.mxu1 %v463_v15  ;;  %1004 = vmatpush2.msra.mxu0 %v396_v16  ;;  %v561_v15 = vld [vmem:[#allocation7 + $0xae8] sm:$0xff]  ;;  %v494_v16 = vld [vmem:[#allocation7 + $0x8d0] sm:$0xff] }
  0xfc   :  { %1073 = vmatpush2.msra.mxu1 %v462_v17  ;;  %1005 = vmatprep.subr.mxu0 %v395_v18  ;;  %v560_v17 = vld [vmem:[#allocation7 + $0xae0] sm:$0xff]  ;;  %v493_v18 = vld [vmem:[#allocation7 + $0x8c8] sm:$0xff] }
  0xfd   :  { %1074 = vmatprep.subr.mxu1 %v461_v19  ;;  %1006 = vmatpush2.msra.mxu0 %v394_v20  ;;  %v559_v19 = vld [vmem:[#allocation7 + $0xad8] sm:$0xff]  ;;  %v492_v20 = vld [vmem:[#allocation7 + $0x8c0] sm:$0xff] }
  0xfe   :  { %1075 = vmatpush2.msra.mxu1 %v460_v21  ;;  %1007 = vmatprep.subr.mxu0 %v393_v22  ;;  %v558_v21 = vld [vmem:[#allocation7 + $0xad0] sm:$0xff]  ;;  %v491_v22 = vld [vmem:[#allocation7 + $0x8b8] sm:$0xff] }
  0xff   :  { %1076 = vmatprep.subr.mxu1 %v459_v23  ;;  %1008 = vmatpush2.msra.mxu0 %v392_v24  ;;  %v557_v23 = vld [vmem:[#allocation7 + $0xac8] sm:$0xff]  ;;  %v490_v24 = vld [vmem:[#allocation7 + $0x8b0] sm:$0xff] }
 0x100   :  { %1077 = vmatpush2.msra.mxu1 %v458_v25  ;;  %1009 = vmatprep.subr.mxu0 %v391_v26  ;;  %v556_v25 = vld [vmem:[#allocation7 + $0xac0] sm:$0xff]  ;;  %v489_v26 = vld [vmem:[#allocation7 + $0x8a8] sm:$0xff] }
 0x101   :  { %1078 = vmatprep.subr.mxu1 %v457_v27  ;;  %1010 = vmatpush2.msra.mxu0 %v390_v28  ;;  %v555_v27 = vld [vmem:[#allocation7 + $0xab8] sm:$0xff]  ;;  %v488_v28 = vld [vmem:[#allocation7 + $0x8a0] sm:$0xff] }
 0x102   :  { %1079 = vmatpush2.msra.mxu1 %v456_v29  ;;  %1011 = vmatprep.subr.mxu0 %v389_v30  ;;  %v554_v29 = vld [vmem:[#allocation7 + $0xab0] sm:$0xff]  ;;  %v487_v30 = vld [vmem:[#allocation7 + $0x898] sm:$0xff] }
 0x103   :  { %1080 = vmatprep.subr.mxu1 %v455_v31  ;;  %1012 = vmatpush2.msra.mxu0 %v388_v32  ;;  %v553_v31 = vld [vmem:[#allocation7 + $0xaa8] sm:$0xff]  ;;  %v486_v32 = vld [vmem:[#allocation7 + $0x890] sm:$0xff] }
 0x104   :  { %1081 = vmatpush2.msra.mxu1 %v454_v33  ;;  %1013 = vmatprep.subr.mxu0 %v387_v34  ;;  %v552_v33 = vld [vmem:[#allocation7 + $0xaa0] sm:$0xff]  ;;  %v485_v34 = vld [vmem:[#allocation7 + $0x888] sm:$0xff] }
 0x105   :  { %1082 = vmatprep.subr.mxu1 %v453_v35  ;;  %1014 = vmatpush2.msra.mxu0 %v386_v36  ;;  %v551_v35 = vld [vmem:[#allocation7 + $0xa98] sm:$0xff]  ;;  %v484_v36 = vld [vmem:[#allocation7 + $0x880] sm:$0xff] }
 0x106   :  { %1083 = vmatpush2.msra.mxu1 %v452_v37  ;;  %1015 = vmatprep.subr.mxu0 %v385_v38  ;;  %v550_v37 = vld [vmem:[#allocation7 + $0xa90] sm:$0xff]  ;;  %v483_v38 = vld [vmem:[#allocation7 + $0x878] sm:$0xff] }
 0x107   :  { %1084 = vmatprep.subr.mxu1 %v451_v39  ;;  %1016 = vmatpush2.msra.mxu0 %v384_v40  ;;  %v549_v39 = vld [vmem:[#allocation7 + $0xa88] sm:$0xff]  ;;  %v482_v40 = vld [vmem:[#allocation7 + $0x870] sm:$0xff] }
 0x108   :  { %1085 = vmatpush2.msra.mxu1 %v450_v41  ;;  %1017 = vmatprep.subr.mxu0 %v383_v42  ;;  %v548_v41 = vld [vmem:[#allocation7 + $0xa80] sm:$0xff]  ;;  %v481_v42 = vld [vmem:[#allocation7 + $0x868] sm:$0xff] }
 0x109   :  { %1086 = vmatprep.subr.mxu1 %v449_v43  ;;  %1018 = vmatpush2.msra.mxu0 %v382_v44  ;;  %v547_v43 = vld [vmem:[#allocation7 + $0xa78] sm:$0xff]  ;;  %v480_v44 = vld [vmem:[#allocation7 + $0x860] sm:$0xff] }
 0x10a   :  { %1087 = vmatpush2.msra.mxu1 %v448_v45  ;;  %1019 = vmatprep.subr.mxu0 %v381_v46  ;;  %v546_v45 = vld [vmem:[#allocation7 + $0xa70] sm:$0xff]  ;;  %v479_v46 = vld [vmem:[#allocation7 + $0x858] sm:$0xff] }
 0x10b   :  { %1088 = vmatprep.subr.mxu1 %v447_v47  ;;  %1020 = vmatpush2.msra.mxu0 %v380_v48  ;;  %v545_v47 = vld [vmem:[#allocation7 + $0xa68] sm:$0xff]  ;;  %v478_v48 = vld [vmem:[#allocation7 + $0x850] sm:$0xff] }
 0x10c   :  { %1089 = vmatpush2.msra.mxu1 %v446_v49  ;;  %1021 = vmatprep.subr.mxu0 %v379_v50  ;;  %v544_v49 = vld [vmem:[#allocation7 + $0xa60] sm:$0xff]  ;;  %v477_v50 = vld [vmem:[#allocation7 + $0x848] sm:$0xff] }
 0x10d   :  { %1090 = vmatprep.subr.mxu1 %v445_v51  ;;  %1022 = vmatpush2.msra.mxu0 %v378_v52  ;;  %v543_v51 = vld [vmem:[#allocation7 + $0xa58] sm:$0xff]  ;;  %v476_v52 = vld [vmem:[#allocation7 + $0x840] sm:$0xff] }
 0x10e   :  { %1091 = vmatpush2.msra.mxu1 %v444_v53  ;;  %1023 = vmatprep.subr.mxu0 %v377_v54  ;;  %v542_v53 = vld [vmem:[#allocation7 + $0xa50] sm:$0xff]  ;;  %v475_v54 = vld [vmem:[#allocation7 + $0x838] sm:$0xff] }
 0x10f   :  { %1092 = vmatprep.subr.mxu1 %v443_v55  ;;  %1024 = vmatpush2.msra.mxu0 %v376_v56  ;;  %v541_v55 = vld [vmem:[#allocation7 + $0xa48] sm:$0xff]  ;;  %v474_v56 = vld [vmem:[#allocation7 + $0x830] sm:$0xff] }
 0x110   :  { %1093 = vmatpush2.msra.mxu1 %v442_v57  ;;  %1025 = vmatprep.subr.mxu0 %v375_v58  ;;  %v540_v57 = vld [vmem:[#allocation7 + $0xa40] sm:$0xff]  ;;  %v473_v58 = vld [vmem:[#allocation7 + $0x828] sm:$0xff] }
 0x111   :  { %1094 = vmatprep.subr.mxu1 %v441_v59  ;;  %1026 = vmatpush2.msra.mxu0 %v374_v60  ;;  %v539_v59 = vld [vmem:[#allocation7 + $0xa38] sm:$0xff]  ;;  %v472_v60 = vld [vmem:[#allocation7 + $0x820] sm:$0xff] }
 0x112   :  { %1095 = vmatpush2.msra.mxu1 %v440_v61  ;;  %1027 = vmatprep.subr.mxu0 %v373_v62  ;;  %v538_v61 = vld [vmem:[#allocation7 + $0xa30] sm:$0xff]  ;;  %v471_v62 = vld [vmem:[#allocation7 + $0x818] sm:$0xff] }
 0x113   :  { %1096 = vmatprep.subr.mxu1 %v439_v63  ;;  %1028 = vmatpush2.msra.mxu0 %v372_v0  ;;  %v537_v63 = vld [vmem:[#allocation7 + $0xa28] sm:$0xff]  ;;  %v470_v0 = vld [vmem:[#allocation7 + $0x810] sm:$0xff] }
 0x114   :  { %1029 = vmatprep.mubr.f32.mxu0 %v198_v1  ;;  %1097 = vmatpush2.msra.mxu1 %v438_v2  ;;  %v536_v1 = vld [vmem:[#allocation7 + $0xa20] sm:$0xff]  ;;  %v469_v2 = vld [vmem:[#allocation7 + $0x808] sm:$0xff] }
 0x115   :  { %1030 = vmatmul.mubr.f32.vlgmr.msra.gmra.mxu0 %v197_v3  ;;  %1098 = vmatprep.subr.mxu1 %v437_v4  ;;  %v535_v3 = vld [vmem:[#allocation7 + $0xa18] sm:$0xff]  ;;  %v468_v4 = vld [vmem:[#allocation7 + $0x800] sm:$0xff] }
 0x116   :  { %1107 = vmatprep.subr.mxu0 %v499_v5  ;;  %1099 = vmatpush2.msra.mxu1 %v436_v6  ;;  %v534_v5 = vld [vmem:[#allocation7 + $0xa10] sm:$0xff]  ;;  %v531_v6 = vld [vmem:[#allocation7 + $0x9f8] sm:$0xff] }
 0x117   :  { %1100 = vmatprep.mubr.f32.mxu1 %v200_v7  ;;  %1108 = vmatpush1.msra.mxu0 %v498_v8  ;;  %v533_v7 = vld [vmem:[#allocation7 + $0xa08] sm:$0xff]  ;;  %v530_v8 = vld [vmem:[#allocation7 + $0x9f0] sm:$0xff] }
 0x118   :  { %1101 = vmatmul.mubr.f32.vlgmr.msra.gmra.mxu1 %v199_v9  ;;  %1109 = vmatprep.subr.mxu0 %v497_v10  ;;  %v532_v9 = vld [vmem:[#allocation7 + $0xa00] sm:$0xff]  ;;  %v529_v10 = vld [vmem:[#allocation7 + $0x9e8] sm:$0xff] }
 0x119   :  { %1178 = vmatprep.subr.mxu1 %v563_v11  ;;  %1110 = vmatpush1.msra.mxu0 %v496_v12  ;;  %v595_v11 = vld [vmem:[#allocation7 + $0xbf8] sm:$0xff]  ;;  %v528_v12 = vld [vmem:[#allocation7 + $0x9e0] sm:$0xff] }
 0x11a   :  { %1179 = vmatpush1.msra.mxu1 %v562_v13  ;;  %1111 = vmatprep.subr.mxu0 %v495_v14  ;;  %v594_v13 = vld [vmem:[#allocation7 + $0xbf0] sm:$0xff]  ;;  %v527_v14 = vld [vmem:[#allocation7 + $0x9d8] sm:$0xff] }
 0x11b   :  { %1180 = vmatprep.subr.mxu1 %v561_v15  ;;  %1112 = vmatpush1.msra.mxu0 %v494_v16  ;;  %v593_v15 = vld [vmem:[#allocation7 + $0xbe8] sm:$0xff]  ;;  %v526_v16 = vld [vmem:[#allocation7 + $0x9d0] sm:$0xff] }
 0x11c   :  { %1181 = vmatpush1.msra.mxu1 %v560_v17  ;;  %1113 = vmatprep.subr.mxu0 %v493_v18  ;;  %v592_v17 = vld [vmem:[#allocation7 + $0xbe0] sm:$0xff]  ;;  %v525_v18 = vld [vmem:[#allocation7 + $0x9c8] sm:$0xff] }
 0x11d   :  { %1182 = vmatprep.subr.mxu1 %v559_v19  ;;  %1114 = vmatpush1.msra.mxu0 %v492_v20  ;;  %v591_v19 = vld [vmem:[#allocation7 + $0xbd8] sm:$0xff]  ;;  %v524_v20 = vld [vmem:[#allocation7 + $0x9c0] sm:$0xff] }
 0x11e   :  { %1183 = vmatpush1.msra.mxu1 %v558_v21  ;;  %1115 = vmatprep.subr.mxu0 %v491_v22  ;;  %v590_v21 = vld [vmem:[#allocation7 + $0xbd0] sm:$0xff]  ;;  %v523_v22 = vld [vmem:[#allocation7 + $0x9b8] sm:$0xff] }
 0x11f   :  { %1184 = vmatprep.subr.mxu1 %v557_v23  ;;  %1116 = vmatpush1.msra.mxu0 %v490_v24  ;;  %v589_v23 = vld [vmem:[#allocation7 + $0xbc8] sm:$0xff]  ;;  %v522_v24 = vld [vmem:[#allocation7 + $0x9b0] sm:$0xff] }
 0x120   :  { %1185 = vmatpush1.msra.mxu1 %v556_v25  ;;  %1117 = vmatprep.subr.mxu0 %v489_v26  ;;  %v588_v25 = vld [vmem:[#allocation7 + $0xbc0] sm:$0xff]  ;;  %v521_v26 = vld [vmem:[#allocation7 + $0x9a8] sm:$0xff] }
 0x121   :  { %1186 = vmatprep.subr.mxu1 %v555_v27  ;;  %1118 = vmatpush1.msra.mxu0 %v488_v28  ;;  %v587_v27 = vld [vmem:[#allocation7 + $0xbb8] sm:$0xff]  ;;  %v520_v28 = vld [vmem:[#allocation7 + $0x9a0] sm:$0xff] }
 0x122   :  { %1187 = vmatpush1.msra.mxu1 %v554_v29  ;;  %1119 = vmatprep.subr.mxu0 %v487_v30  ;;  %v586_v29 = vld [vmem:[#allocation7 + $0xbb0] sm:$0xff]  ;;  %v519_v30 = vld [vmem:[#allocation7 + $0x998] sm:$0xff] }
 0x123   :  { %1188 = vmatprep.subr.mxu1 %v553_v31  ;;  %1120 = vmatpush1.msra.mxu0 %v486_v32  ;;  %v585_v31 = vld [vmem:[#allocation7 + $0xba8] sm:$0xff]  ;;  %v518_v32 = vld [vmem:[#allocation7 + $0x990] sm:$0xff] }
 0x124   :  { %1189 = vmatpush1.msra.mxu1 %v552_v33  ;;  %1121 = vmatprep.subr.mxu0 %v485_v34  ;;  %v584_v33 = vld [vmem:[#allocation7 + $0xba0] sm:$0xff]  ;;  %v517_v34 = vld [vmem:[#allocation7 + $0x988] sm:$0xff] }
 0x125   :  { %1190 = vmatprep.subr.mxu1 %v551_v35  ;;  %1122 = vmatpush1.msra.mxu0 %v484_v36  ;;  %v583_v35 = vld [vmem:[#allocation7 + $0xb98] sm:$0xff]  ;;  %v516_v36 = vld [vmem:[#allocation7 + $0x980] sm:$0xff] }
 0x126   :  { %1191 = vmatpush1.msra.mxu1 %v550_v37  ;;  %1123 = vmatprep.subr.mxu0 %v483_v38  ;;  %v582_v37 = vld [vmem:[#allocation7 + $0xb90] sm:$0xff]  ;;  %v515_v38 = vld [vmem:[#allocation7 + $0x978] sm:$0xff] }
 0x127   :  { %1192 = vmatprep.subr.mxu1 %v549_v39  ;;  %1124 = vmatpush1.msra.mxu0 %v482_v40  ;;  %v581_v39 = vld [vmem:[#allocation7 + $0xb88] sm:$0xff]  ;;  %v514_v40 = vld [vmem:[#allocation7 + $0x970] sm:$0xff] }
 0x128   :  { %1193 = vmatpush1.msra.mxu1 %v548_v41  ;;  %1125 = vmatprep.subr.mxu0 %v481_v42  ;;  %v580_v41 = vld [vmem:[#allocation7 + $0xb80] sm:$0xff]  ;;  %v513_v42 = vld [vmem:[#allocation7 + $0x968] sm:$0xff] }
 0x129   :  { %1194 = vmatprep.subr.mxu1 %v547_v43  ;;  %1126 = vmatpush1.msra.mxu0 %v480_v44  ;;  %v579_v43 = vld [vmem:[#allocation7 + $0xb78] sm:$0xff]  ;;  %v512_v44 = vld [vmem:[#allocation7 + $0x960] sm:$0xff] }
 0x12a   :  { %1195 = vmatpush1.msra.mxu1 %v546_v45  ;;  %1127 = vmatprep.subr.mxu0 %v479_v46  ;;  %v578_v45 = vld [vmem:[#allocation7 + $0xb70] sm:$0xff]  ;;  %v511_v46 = vld [vmem:[#allocation7 + $0x958] sm:$0xff] }
 0x12b   :  { %1196 = vmatprep.subr.mxu1 %v545_v47  ;;  %1128 = vmatpush1.msra.mxu0 %v478_v48  ;;  %v577_v47 = vld [vmem:[#allocation7 + $0xb68] sm:$0xff]  ;;  %v510_v48 = vld [vmem:[#allocation7 + $0x950] sm:$0xff] }
 0x12c   :  { %1197 = vmatpush1.msra.mxu1 %v544_v49  ;;  %1129 = vmatprep.subr.mxu0 %v477_v50  ;;  %v576_v49 = vld [vmem:[#allocation7 + $0xb60] sm:$0xff]  ;;  %v509_v50 = vld [vmem:[#allocation7 + $0x948] sm:$0xff] }
 0x12d   :  { %1198 = vmatprep.subr.mxu1 %v543_v51  ;;  %1130 = vmatpush1.msra.mxu0 %v476_v52  ;;  %v575_v51 = vld [vmem:[#allocation7 + $0xb58] sm:$0xff]  ;;  %v508_v52 = vld [vmem:[#allocation7 + $0x940] sm:$0xff] }
 0x12e   :  { %1199 = vmatpush1.msra.mxu1 %v542_v53  ;;  %1131 = vmatprep.subr.mxu0 %v475_v54  ;;  %v574_v53 = vld [vmem:[#allocation7 + $0xb50] sm:$0xff]  ;;  %v507_v54 = vld [vmem:[#allocation7 + $0x938] sm:$0xff] }
 0x12f   :  { %1200 = vmatprep.subr.mxu1 %v541_v55  ;;  %1132 = vmatpush1.msra.mxu0 %v474_v56  ;;  %v573_v55 = vld [vmem:[#allocation7 + $0xb48] sm:$0xff]  ;;  %v506_v56 = vld [vmem:[#allocation7 + $0x930] sm:$0xff] }
 0x130   :  { %1201 = vmatpush1.msra.mxu1 %v540_v57  ;;  %1133 = vmatprep.subr.mxu0 %v473_v58  ;;  %v572_v57 = vld [vmem:[#allocation7 + $0xb40] sm:$0xff]  ;;  %v505_v58 = vld [vmem:[#allocation7 + $0x928] sm:$0xff] }
 0x131   :  { %1202 = vmatprep.subr.mxu1 %v539_v59  ;;  %1134 = vmatpush1.msra.mxu0 %v472_v60  ;;  %v571_v59 = vld [vmem:[#allocation7 + $0xb38] sm:$0xff]  ;;  %v504_v60 = vld [vmem:[#allocation7 + $0x920] sm:$0xff] }
 0x132   :  { %1203 = vmatpush1.msra.mxu1 %v538_v61  ;;  %1135 = vmatprep.subr.mxu0 %v471_v62  ;;  %v570_v61 = vld [vmem:[#allocation7 + $0xb30] sm:$0xff]  ;;  %v503_v62 = vld [vmem:[#allocation7 + $0x918] sm:$0xff] }
 0x133   :  { %1204 = vmatprep.subr.mxu1 %v537_v63  ;;  %1136 = vmatpush1.msra.mxu0 %v470_v0  ;;  %v569_v63 = vld [vmem:[#allocation7 + $0xb28] sm:$0xff]  ;;  %v502_v0 = vld [vmem:[#allocation7 + $0x910] sm:$0xff] }
 0x134   :  { %1205 = vmatpush1.msra.mxu1 %v536_v1  ;;  %1137 = vmatprep.subr.mxu0 %v469_v2  ;;  %v568_v1 = vld [vmem:[#allocation7 + $0xb20] sm:$0xff]  ;;  %v501_v2 = vld [vmem:[#allocation7 + $0x908] sm:$0xff] }
 0x135   :  { %1206 = vmatprep.subr.mxu1 %v535_v3  ;;  %1138 = vmatpush1.msra.mxu0 %v468_v4  ;;  %v567_v3 = vld [vmem:[#allocation7 + $0xb18] sm:$0xff]  ;;  %v500_v4 = vld [vmem:[#allocation7 + $0x900] sm:$0xff] }
 0x136   :  { %1207 = vmatpush1.msra.mxu1 %v534_v5  ;;  %1139 = vmatprep.subr.mxu0 %v531_v6  ;;  %v202_v5 = vld [vmem:[#allocation2 + $0x48] sm:$0xff]  ;;  %v566_v6 = vld [vmem:[#allocation7 + $0xb10] sm:$0xff] }
 0x137   :  { %1208 = vmatprep.subr.mxu1 %v533_v7  ;;  %1140 = vmatpush2.msra.mxu0 %v530_v8  ;;  %v201_v7 = vld [vmem:[#allocation2 + $0x40] sm:$0xff]  ;;  %v565_v8 = vld [vmem:[#allocation7 + $0xb08] sm:$0xff] }
 0x138   :  { %1209 = vmatpush1.msra.mxu1 %v532_v9  ;;  %1141 = vmatprep.subr.mxu0 %v529_v10  ;;  %v627_v9 = vld [vmem:[#allocation7 + $0xcf8] sm:$0xff]  ;;  %v564_v10 = vld [vmem:[#allocation7 + $0xb00] sm:$0xff] }
 0x139   :  { %1210 = vmatprep.subr.mxu1 %v595_v11  ;;  %1142 = vmatpush2.msra.mxu0 %v528_v12  ;;  %v204_v11 = vld [vmem:[#allocation2 + $0x58] sm:$0xff]  ;;  %v626_v12 = vld [vmem:[#allocation7 + $0xcf0] sm:$0xff] }
 0x13a   :  { %1211 = vmatpush2.msra.mxu1 %v594_v13  ;;  %1143 = vmatprep.subr.mxu0 %v527_v14  ;;  %v203_v13 = vld [vmem:[#allocation2 + $0x50] sm:$0xff]  ;;  %v625_v14 = vld [vmem:[#allocation7 + $0xce8] sm:$0xff] }
 0x13b   :  { %1212 = vmatprep.subr.mxu1 %v593_v15  ;;  %1144 = vmatpush2.msra.mxu0 %v526_v16  ;;  %v691_v15 = vld [vmem:[#allocation7 + $0xef8] sm:$0xff]  ;;  %v624_v16 = vld [vmem:[#allocation7 + $0xce0] sm:$0xff] }
 0x13c   :  { %1213 = vmatpush2.msra.mxu1 %v592_v17  ;;  %1145 = vmatprep.subr.mxu0 %v525_v18  ;;  %v690_v17 = vld [vmem:[#allocation7 + $0xef0] sm:$0xff]  ;;  %v623_v18 = vld [vmem:[#allocation7 + $0xcd8] sm:$0xff] }
 0x13d   :  { %1214 = vmatprep.subr.mxu1 %v591_v19  ;;  %1146 = vmatpush2.msra.mxu0 %v524_v20  ;;  %v689_v19 = vld [vmem:[#allocation7 + $0xee8] sm:$0xff]  ;;  %v622_v20 = vld [vmem:[#allocation7 + $0xcd0] sm:$0xff] }
 0x13e   :  { %1215 = vmatpush2.msra.mxu1 %v590_v21  ;;  %1147 = vmatprep.subr.mxu0 %v523_v22  ;;  %v688_v21 = vld [vmem:[#allocation7 + $0xee0] sm:$0xff]  ;;  %v621_v22 = vld [vmem:[#allocation7 + $0xcc8] sm:$0xff] }
 0x13f   :  { %1216 = vmatprep.subr.mxu1 %v589_v23  ;;  %1148 = vmatpush2.msra.mxu0 %v522_v24  ;;  %v687_v23 = vld [vmem:[#allocation7 + $0xed8] sm:$0xff]  ;;  %v620_v24 = vld [vmem:[#allocation7 + $0xcc0] sm:$0xff] }
 0x140   :  { %1217 = vmatpush2.msra.mxu1 %v588_v25  ;;  %1149 = vmatprep.subr.mxu0 %v521_v26  ;;  %v686_v25 = vld [vmem:[#allocation7 + $0xed0] sm:$0xff]  ;;  %v619_v26 = vld [vmem:[#allocation7 + $0xcb8] sm:$0xff] }
 0x141   :  { %1218 = vmatprep.subr.mxu1 %v587_v27  ;;  %1150 = vmatpush2.msra.mxu0 %v520_v28  ;;  %v685_v27 = vld [vmem:[#allocation7 + $0xec8] sm:$0xff]  ;;  %v618_v28 = vld [vmem:[#allocation7 + $0xcb0] sm:$0xff] }
 0x142   :  { %1219 = vmatpush2.msra.mxu1 %v586_v29  ;;  %1151 = vmatprep.subr.mxu0 %v519_v30  ;;  %v684_v29 = vld [vmem:[#allocation7 + $0xec0] sm:$0xff]  ;;  %v617_v30 = vld [vmem:[#allocation7 + $0xca8] sm:$0xff] }
 0x143   :  { %1220 = vmatprep.subr.mxu1 %v585_v31  ;;  %1152 = vmatpush2.msra.mxu0 %v518_v32  ;;  %v683_v31 = vld [vmem:[#allocation7 + $0xeb8] sm:$0xff]  ;;  %v616_v32 = vld [vmem:[#allocation7 + $0xca0] sm:$0xff] }
 0x144   :  { %1221 = vmatpush2.msra.mxu1 %v584_v33  ;;  %1153 = vmatprep.subr.mxu0 %v517_v34  ;;  %v682_v33 = vld [vmem:[#allocation7 + $0xeb0] sm:$0xff]  ;;  %v615_v34 = vld [vmem:[#allocation7 + $0xc98] sm:$0xff] }
 0x145   :  { %1222 = vmatprep.subr.mxu1 %v583_v35  ;;  %1154 = vmatpush2.msra.mxu0 %v516_v36  ;;  %v681_v35 = vld [vmem:[#allocation7 + $0xea8] sm:$0xff]  ;;  %v614_v36 = vld [vmem:[#allocation7 + $0xc90] sm:$0xff] }
 0x146   :  { %1223 = vmatpush2.msra.mxu1 %v582_v37  ;;  %1155 = vmatprep.subr.mxu0 %v515_v38  ;;  %v680_v37 = vld [vmem:[#allocation7 + $0xea0] sm:$0xff]  ;;  %v613_v38 = vld [vmem:[#allocation7 + $0xc88] sm:$0xff] }
 0x147   :  { %1224 = vmatprep.subr.mxu1 %v581_v39  ;;  %1156 = vmatpush2.msra.mxu0 %v514_v40  ;;  %v679_v39 = vld [vmem:[#allocation7 + $0xe98] sm:$0xff]  ;;  %v612_v40 = vld [vmem:[#allocation7 + $0xc80] sm:$0xff] }
 0x148   :  { %1225 = vmatpush2.msra.mxu1 %v580_v41  ;;  %1157 = vmatprep.subr.mxu0 %v513_v42  ;;  %v678_v41 = vld [vmem:[#allocation7 + $0xe90] sm:$0xff]  ;;  %v611_v42 = vld [vmem:[#allocation7 + $0xc78] sm:$0xff] }
 0x149   :  { %1226 = vmatprep.subr.mxu1 %v579_v43  ;;  %1158 = vmatpush2.msra.mxu0 %v512_v44  ;;  %v677_v43 = vld [vmem:[#allocation7 + $0xe88] sm:$0xff]  ;;  %v610_v44 = vld [vmem:[#allocation7 + $0xc70] sm:$0xff] }
 0x14a   :  { %1227 = vmatpush2.msra.mxu1 %v578_v45  ;;  %1159 = vmatprep.subr.mxu0 %v511_v46  ;;  %v676_v45 = vld [vmem:[#allocation7 + $0xe80] sm:$0xff]  ;;  %v609_v46 = vld [vmem:[#allocation7 + $0xc68] sm:$0xff] }
 0x14b   :  { %1228 = vmatprep.subr.mxu1 %v577_v47  ;;  %1160 = vmatpush2.msra.mxu0 %v510_v48  ;;  %v675_v47 = vld [vmem:[#allocation7 + $0xe78] sm:$0xff]  ;;  %v608_v48 = vld [vmem:[#allocation7 + $0xc60] sm:$0xff] }
 0x14c   :  { %1229 = vmatpush2.msra.mxu1 %v576_v49  ;;  %1161 = vmatprep.subr.mxu0 %v509_v50  ;;  %v674_v49 = vld [vmem:[#allocation7 + $0xe70] sm:$0xff]  ;;  %v607_v50 = vld [vmem:[#allocation7 + $0xc58] sm:$0xff] }
 0x14d   :  { %1230 = vmatprep.subr.mxu1 %v575_v51  ;;  %1162 = vmatpush2.msra.mxu0 %v508_v52  ;;  %v673_v51 = vld [vmem:[#allocation7 + $0xe68] sm:$0xff]  ;;  %v606_v52 = vld [vmem:[#allocation7 + $0xc50] sm:$0xff] }
 0x14e   :  { %1231 = vmatpush2.msra.mxu1 %v574_v53  ;;  %1163 = vmatprep.subr.mxu0 %v507_v54  ;;  %v672_v53 = vld [vmem:[#allocation7 + $0xe60] sm:$0xff]  ;;  %v605_v54 = vld [vmem:[#allocation7 + $0xc48] sm:$0xff] }
 0x14f   :  { %1232 = vmatprep.subr.mxu1 %v573_v55  ;;  %1164 = vmatpush2.msra.mxu0 %v506_v56  ;;  %v671_v55 = vld [vmem:[#allocation7 + $0xe58] sm:$0xff]  ;;  %v604_v56 = vld [vmem:[#allocation7 + $0xc40] sm:$0xff] }
 0x150   :  { %1233 = vmatpush2.msra.mxu1 %v572_v57  ;;  %1165 = vmatprep.subr.mxu0 %v505_v58  ;;  %v670_v57 = vld [vmem:[#allocation7 + $0xe50] sm:$0xff]  ;;  %v603_v58 = vld [vmem:[#allocation7 + $0xc38] sm:$0xff] }
 0x151   :  { %1234 = vmatprep.subr.mxu1 %v571_v59  ;;  %1166 = vmatpush2.msra.mxu0 %v504_v60  ;;  %v669_v59 = vld [vmem:[#allocation7 + $0xe48] sm:$0xff]  ;;  %v602_v60 = vld [vmem:[#allocation7 + $0xc30] sm:$0xff] }
 0x152   :  { %1235 = vmatpush2.msra.mxu1 %v570_v61  ;;  %1167 = vmatprep.subr.mxu0 %v503_v62  ;;  %v668_v61 = vld [vmem:[#allocation7 + $0xe40] sm:$0xff]  ;;  %v601_v62 = vld [vmem:[#allocation7 + $0xc28] sm:$0xff] }
 0x153   :  { %1236 = vmatprep.subr.mxu1 %v569_v63  ;;  %1168 = vmatpush2.msra.mxu0 %v502_v0  ;;  %v667_v63 = vld [vmem:[#allocation7 + $0xe38] sm:$0xff]  ;;  %v600_v0 = vld [vmem:[#allocation7 + $0xc20] sm:$0xff] }
 0x154   :  { %1237 = vmatpush2.msra.mxu1 %v568_v1  ;;  %1169 = vmatprep.subr.mxu0 %v501_v2  ;;  %v666_v1 = vld [vmem:[#allocation7 + $0xe30] sm:$0xff]  ;;  %v599_v2 = vld [vmem:[#allocation7 + $0xc18] sm:$0xff] }
 0x155   :  { %1238 = vmatprep.subr.mxu1 %v567_v3  ;;  %1170 = vmatpush2.msra.mxu0 %v500_v4  ;;  %v665_v3 = vld [vmem:[#allocation7 + $0xe28] sm:$0xff]  ;;  %v598_v4 = vld [vmem:[#allocation7 + $0xc10] sm:$0xff] }
 0x156   :  { %1171 = vmatprep.mubr.f32.mxu0 %v202_v5  ;;  %1239 = vmatpush2.msra.mxu1 %v566_v6  ;;  %v664_v5 = vld [vmem:[#allocation7 + $0xe20] sm:$0xff]  ;;  %v597_v6 = vld [vmem:[#allocation7 + $0xc08] sm:$0xff] }
 0x157   :  { %1172 = vmatmul.mubr.f32.vlgmr.msra.gmra.mxu0 %v201_v7  ;;  %1240 = vmatprep.subr.mxu1 %v565_v8  ;;  %v663_v7 = vld [vmem:[#allocation7 + $0xe18] sm:$0xff]  ;;  %v596_v8 = vld [vmem:[#allocation7 + $0xc00] sm:$0xff] }
 0x158   :  { %1249 = vmatprep.subr.mxu0 %v627_v9  ;;  %1241 = vmatpush2.msra.mxu1 %v564_v10  ;;  %v662_v9 = vld [vmem:[#allocation7 + $0xe10] sm:$0xff]  ;;  %v659_v10 = vld [vmem:[#allocation7 + $0xdf8] sm:$0xff] }
 0x159   :  { %1242 = vmatprep.mubr.f32.mxu1 %v204_v11  ;;  %1250 = vmatpush1.msra.mxu0 %v626_v12  ;;  %v661_v11 = vld [vmem:[#allocation7 + $0xe08] sm:$0xff]  ;;  %v658_v12 = vld [vmem:[#allocation7 + $0xdf0] sm:$0xff] }
 0x15a   :  { %1243 = vmatmul.mubr.f32.vlgmr.msra.gmra.mxu1 %v203_v13  ;;  %1251 = vmatprep.subr.mxu0 %v625_v14  ;;  %v660_v13 = vld [vmem:[#allocation7 + $0xe00] sm:$0xff]  ;;  %v657_v14 = vld [vmem:[#allocation7 + $0xde8] sm:$0xff] }
 0x15b   :  { %1320 = vmatprep.subr.mxu1 %v691_v15  ;;  %1252 = vmatpush1.msra.mxu0 %v624_v16  ;;  %v723_v15 = vld [vmem:[#allocation7 + $0xff8] sm:$0xff]  ;;  %v656_v16 = vld [vmem:[#allocation7 + $0xde0] sm:$0xff] }
 0x15c   :  { %1321 = vmatpush1.msra.mxu1 %v690_v17  ;;  %1253 = vmatprep.subr.mxu0 %v623_v18  ;;  %v722_v17 = vld [vmem:[#allocation7 + $0xff0] sm:$0xff]  ;;  %v655_v18 = vld [vmem:[#allocation7 + $0xdd8] sm:$0xff] }
 0x15d   :  { %1322 = vmatprep.subr.mxu1 %v689_v19  ;;  %1254 = vmatpush1.msra.mxu0 %v622_v20  ;;  %v721_v19 = vld [vmem:[#allocation7 + $0xfe8] sm:$0xff]  ;;  %v654_v20 = vld [vmem:[#allocation7 + $0xdd0] sm:$0xff] }
 0x15e   :  { %1323 = vmatpush1.msra.mxu1 %v688_v21  ;;  %1255 = vmatprep.subr.mxu0 %v621_v22  ;;  %v720_v21 = vld [vmem:[#allocation7 + $0xfe0] sm:$0xff]  ;;  %v653_v22 = vld [vmem:[#allocation7 + $0xdc8] sm:$0xff] }
 0x15f   :  { %1324 = vmatprep.subr.mxu1 %v687_v23  ;;  %1256 = vmatpush1.msra.mxu0 %v620_v24  ;;  %v719_v23 = vld [vmem:[#allocation7 + $0xfd8] sm:$0xff]  ;;  %v652_v24 = vld [vmem:[#allocation7 + $0xdc0] sm:$0xff] }
 0x160   :  { %1325 = vmatpush1.msra.mxu1 %v686_v25  ;;  %1257 = vmatprep.subr.mxu0 %v619_v26  ;;  %v718_v25 = vld [vmem:[#allocation7 + $0xfd0] sm:$0xff]  ;;  %v651_v26 = vld [vmem:[#allocation7 + $0xdb8] sm:$0xff] }
 0x161   :  { %1326 = vmatprep.subr.mxu1 %v685_v27  ;;  %1258 = vmatpush1.msra.mxu0 %v618_v28  ;;  %v717_v27 = vld [vmem:[#allocation7 + $0xfc8] sm:$0xff]  ;;  %v650_v28 = vld [vmem:[#allocation7 + $0xdb0] sm:$0xff] }
 0x162   :  { %1327 = vmatpush1.msra.mxu1 %v684_v29  ;;  %1259 = vmatprep.subr.mxu0 %v617_v30  ;;  %v716_v29 = vld [vmem:[#allocation7 + $0xfc0] sm:$0xff]  ;;  %v649_v30 = vld [vmem:[#allocation7 + $0xda8] sm:$0xff] }
 0x163   :  { %1328 = vmatprep.subr.mxu1 %v683_v31  ;;  %1260 = vmatpush1.msra.mxu0 %v616_v32  ;;  %v715_v31 = vld [vmem:[#allocation7 + $0xfb8] sm:$0xff]  ;;  %v648_v32 = vld [vmem:[#allocation7 + $0xda0] sm:$0xff] }
 0x164   :  { %1329 = vmatpush1.msra.mxu1 %v682_v33  ;;  %1261 = vmatprep.subr.mxu0 %v615_v34  ;;  %v714_v33 = vld [vmem:[#allocation7 + $0xfb0] sm:$0xff]  ;;  %v647_v34 = vld [vmem:[#allocation7 + $0xd98] sm:$0xff] }
 0x165   :  { %1330 = vmatprep.subr.mxu1 %v681_v35  ;;  %1262 = vmatpush1.msra.mxu0 %v614_v36  ;;  %v713_v35 = vld [vmem:[#allocation7 + $0xfa8] sm:$0xff]  ;;  %v646_v36 = vld [vmem:[#allocation7 + $0xd90] sm:$0xff] }
 0x166   :  { %1331 = vmatpush1.msra.mxu1 %v680_v37  ;;  %1263 = vmatprep.subr.mxu0 %v613_v38  ;;  %v712_v37 = vld [vmem:[#allocation7 + $0xfa0] sm:$0xff]  ;;  %v645_v38 = vld [vmem:[#allocation7 + $0xd88] sm:$0xff] }
 0x167   :  { %1332 = vmatprep.subr.mxu1 %v679_v39  ;;  %1264 = vmatpush1.msra.mxu0 %v612_v40  ;;  %v711_v39 = vld [vmem:[#allocation7 + $0xf98] sm:$0xff]  ;;  %v644_v40 = vld [vmem:[#allocation7 + $0xd80] sm:$0xff] }
 0x168   :  { %1333 = vmatpush1.msra.mxu1 %v678_v41  ;;  %1265 = vmatprep.subr.mxu0 %v611_v42  ;;  %v710_v41 = vld [vmem:[#allocation7 + $0xf90] sm:$0xff]  ;;  %v643_v42 = vld [vmem:[#allocation7 + $0xd78] sm:$0xff] }
 0x169   :  { %1334 = vmatprep.subr.mxu1 %v677_v43  ;;  %1266 = vmatpush1.msra.mxu0 %v610_v44  ;;  %v709_v43 = vld [vmem:[#allocation7 + $0xf88] sm:$0xff]  ;;  %v642_v44 = vld [vmem:[#allocation7 + $0xd70] sm:$0xff] }
 0x16a   :  { %1335 = vmatpush1.msra.mxu1 %v676_v45  ;;  %1267 = vmatprep.subr.mxu0 %v609_v46  ;;  %v708_v45 = vld [vmem:[#allocation7 + $0xf80] sm:$0xff]  ;;  %v641_v46 = vld [vmem:[#allocation7 + $0xd68] sm:$0xff] }
 0x16b   :  { %1336 = vmatprep.subr.mxu1 %v675_v47  ;;  %1268 = vmatpush1.msra.mxu0 %v608_v48  ;;  %v707_v47 = vld [vmem:[#allocation7 + $0xf78] sm:$0xff]  ;;  %v640_v48 = vld [vmem:[#allocation7 + $0xd60] sm:$0xff] }
 0x16c   :  { %1337 = vmatpush1.msra.mxu1 %v674_v49  ;;  %1269 = vmatprep.subr.mxu0 %v607_v50  ;;  %v706_v49 = vld [vmem:[#allocation7 + $0xf70] sm:$0xff]  ;;  %v639_v50 = vld [vmem:[#allocation7 + $0xd58] sm:$0xff] }
 0x16d   :  { %1338 = vmatprep.subr.mxu1 %v673_v51  ;;  %1270 = vmatpush1.msra.mxu0 %v606_v52  ;;  %v705_v51 = vld [vmem:[#allocation7 + $0xf68] sm:$0xff]  ;;  %v638_v52 = vld [vmem:[#allocation7 + $0xd50] sm:$0xff] }
 0x16e   :  { %1339 = vmatpush1.msra.mxu1 %v672_v53  ;;  %1271 = vmatprep.subr.mxu0 %v605_v54  ;;  %v704_v53 = vld [vmem:[#allocation7 + $0xf60] sm:$0xff]  ;;  %v637_v54 = vld [vmem:[#allocation7 + $0xd48] sm:$0xff] }
 0x16f   :  { %1340 = vmatprep.subr.mxu1 %v671_v55  ;;  %1272 = vmatpush1.msra.mxu0 %v604_v56  ;;  %v703_v55 = vld [vmem:[#allocation7 + $0xf58] sm:$0xff]  ;;  %v636_v56 = vld [vmem:[#allocation7 + $0xd40] sm:$0xff] }
 0x170   :  { %1341 = vmatpush1.msra.mxu1 %v670_v57  ;;  %1273 = vmatprep.subr.mxu0 %v603_v58  ;;  %v702_v57 = vld [vmem:[#allocation7 + $0xf50] sm:$0xff]  ;;  %v635_v58 = vld [vmem:[#allocation7 + $0xd38] sm:$0xff] }
 0x171   :  { %1342 = vmatprep.subr.mxu1 %v669_v59  ;;  %1274 = vmatpush1.msra.mxu0 %v602_v60  ;;  %v701_v59 = vld [vmem:[#allocation7 + $0xf48] sm:$0xff]  ;;  %v634_v60 = vld [vmem:[#allocation7 + $0xd30] sm:$0xff] }
 0x172   :  { %1343 = vmatpush1.msra.mxu1 %v668_v61  ;;  %1275 = vmatprep.subr.mxu0 %v601_v62  ;;  %v700_v61 = vld [vmem:[#allocation7 + $0xf40] sm:$0xff]  ;;  %v633_v62 = vld [vmem:[#allocation7 + $0xd28] sm:$0xff] }
 0x173   :  { %1344 = vmatprep.subr.mxu1 %v667_v63  ;;  %1276 = vmatpush1.msra.mxu0 %v600_v0  ;;  %v699_v63 = vld [vmem:[#allocation7 + $0xf38] sm:$0xff]  ;;  %v632_v0 = vld [vmem:[#allocation7 + $0xd20] sm:$0xff] }
 0x174   :  { %1345 = vmatpush1.msra.mxu1 %v666_v1  ;;  %1277 = vmatprep.subr.mxu0 %v599_v2  ;;  %v698_v1 = vld [vmem:[#allocation7 + $0xf30] sm:$0xff]  ;;  %v631_v2 = vld [vmem:[#allocation7 + $0xd18] sm:$0xff] }
 0x175   :  { %1346 = vmatprep.subr.mxu1 %v665_v3  ;;  %1278 = vmatpush1.msra.mxu0 %v598_v4  ;;  %v697_v3 = vld [vmem:[#allocation7 + $0xf28] sm:$0xff]  ;;  %v630_v4 = vld [vmem:[#allocation7 + $0xd10] sm:$0xff] }
 0x176   :  { %1347 = vmatpush1.msra.mxu1 %v664_v5  ;;  %1279 = vmatprep.subr.mxu0 %v597_v6  ;;  %v696_v5 = vld [vmem:[#allocation7 + $0xf20] sm:$0xff]  ;;  %v629_v6 = vld [vmem:[#allocation7 + $0xd08] sm:$0xff] }
 0x177   :  { %1348 = vmatprep.subr.mxu1 %v663_v7  ;;  %1280 = vmatpush1.msra.mxu0 %v596_v8  ;;  %v695_v7 = vld [vmem:[#allocation7 + $0xf18] sm:$0xff]  ;;  %v628_v8 = vld [vmem:[#allocation7 + $0xd00] sm:$0xff] }
 0x178   :  { %1349 = vmatpush1.msra.mxu1 %v662_v9  ;;  %1281 = vmatprep.subr.mxu0 %v659_v10  ;;  %v206_v9 = vld [vmem:[#allocation2 + $0x68] sm:$0xff]  ;;  %v694_v10 = vld [vmem:[#allocation7 + $0xf10] sm:$0xff] }
 0x179   :  { %1350 = vmatprep.subr.mxu1 %v661_v11  ;;  %1282 = vmatpush2.msra.mxu0 %v658_v12  ;;  %v205_v11 = vld [vmem:[#allocation2 + $0x60] sm:$0xff]  ;;  %v693_v12 = vld [vmem:[#allocation7 + $0xf08] sm:$0xff] }
 0x17a   :  { %1351 = vmatpush1.msra.mxu1 %v660_v13  ;;  %1283 = vmatprep.subr.mxu0 %v657_v14  ;;  %v755_v13 = vld [vmem:[#allocation7 + $0x10f8] sm:$0xff]  ;;  %v692_v14 = vld [vmem:[#allocation7 + $0xf00] sm:$0xff] }
 0x17b   :  { %1352 = vmatprep.subr.mxu1 %v723_v15  ;;  %1284 = vmatpush2.msra.mxu0 %v656_v16  ;;  %v208_v15 = vld [vmem:[#allocation2 + $0x78] sm:$0xff]  ;;  %v754_v16 = vld [vmem:[#allocation7 + $0x10f0] sm:$0xff] }
 0x17c   :  { %1353 = vmatpush2.msra.mxu1 %v722_v17  ;;  %1285 = vmatprep.subr.mxu0 %v655_v18  ;;  %v207_v17 = vld [vmem:[#allocation2 + $0x70] sm:$0xff]  ;;  %v753_v18 = vld [vmem:[#allocation7 + $0x10e8] sm:$0xff] }
 0x17d   :  { %1354 = vmatprep.subr.mxu1 %v721_v19  ;;  %1286 = vmatpush2.msra.mxu0 %v654_v20  ;;  %v752_v19 = vld [vmem:[#allocation7 + $0x10e0] sm:$0xff]  ;;  %v799_v20 = vld [vmem:[#allocation7 + $0x1258] sm:$0x3] }
 0x17e   :  { %1355 = vmatpush2.msra.mxu1 %v720_v21  ;;  %1287 = vmatprep.subr.mxu0 %v653_v22  ;;  %v751_v21 = vld [vmem:[#allocation7 + $0x10d8] sm:$0xff]  ;;  %v798_v22 = vld [vmem:[#allocation7 + $0x1250] sm:$0x3] }
 0x17f   :  { %1356 = vmatprep.subr.mxu1 %v719_v23  ;;  %1288 = vmatpush2.msra.mxu0 %v652_v24  ;;  %v750_v23 = vld [vmem:[#allocation7 + $0x10d0] sm:$0xff]  ;;  %v797_v24 = vld [vmem:[#allocation7 + $0x1248] sm:$0xff] }
 0x180   :  { %1357 = vmatpush2.msra.mxu1 %v718_v25  ;;  %1289 = vmatprep.subr.mxu0 %v651_v26  ;;  %v749_v25 = vld [vmem:[#allocation7 + $0x10c8] sm:$0xff]  ;;  %v796_v26 = vld [vmem:[#allocation7 + $0x1240] sm:$0xff] }
 0x181   :  { %1358 = vmatprep.subr.mxu1 %v717_v27  ;;  %1290 = vmatpush2.msra.mxu0 %v650_v28  ;;  %v748_v27 = vld [vmem:[#allocation7 + $0x10c0] sm:$0xff]  ;;  %v795_v28 = vld [vmem:[#allocation7 + $0x1238] sm:$0xff] }
 0x182   :  { %1359 = vmatpush2.msra.mxu1 %v716_v29  ;;  %1291 = vmatprep.subr.mxu0 %v649_v30  ;;  %v747_v29 = vld [vmem:[#allocation7 + $0x10b8] sm:$0xff]  ;;  %v794_v30 = vld [vmem:[#allocation7 + $0x1230] sm:$0xff] }
 0x183   :  { %1360 = vmatprep.subr.mxu1 %v715_v31  ;;  %1292 = vmatpush2.msra.mxu0 %v648_v32  ;;  %v746_v31 = vld [vmem:[#allocation7 + $0x10b0] sm:$0xff]  ;;  %v793_v32 = vld [vmem:[#allocation7 + $0x1228] sm:$0xff] }
 0x184   :  { %1361 = vmatpush2.msra.mxu1 %v714_v33  ;;  %1293 = vmatprep.subr.mxu0 %v647_v34  ;;  %v745_v33 = vld [vmem:[#allocation7 + $0x10a8] sm:$0xff]  ;;  %v792_v34 = vld [vmem:[#allocation7 + $0x1220] sm:$0xff] }
 0x185   :  { %1362 = vmatprep.subr.mxu1 %v713_v35  ;;  %1294 = vmatpush2.msra.mxu0 %v646_v36  ;;  %v744_v35 = vld [vmem:[#allocation7 + $0x10a0] sm:$0xff]  ;;  %v791_v36 = vld [vmem:[#allocation7 + $0x1218] sm:$0xff] }
 0x186   :  { %1363 = vmatpush2.msra.mxu1 %v712_v37  ;;  %1295 = vmatprep.subr.mxu0 %v645_v38  ;;  %v743_v37 = vld [vmem:[#allocation7 + $0x1098] sm:$0xff]  ;;  %v790_v38 = vld [vmem:[#allocation7 + $0x1210] sm:$0xff] }
 0x187   :  { %1364 = vmatprep.subr.mxu1 %v711_v39  ;;  %1296 = vmatpush2.msra.mxu0 %v644_v40  ;;  %v742_v39 = vld [vmem:[#allocation7 + $0x1090] sm:$0xff]  ;;  %v789_v40 = vld [vmem:[#allocation7 + $0x1208] sm:$0xff] }
 0x188   :  { %1365 = vmatpush2.msra.mxu1 %v710_v41  ;;  %1297 = vmatprep.subr.mxu0 %v643_v42  ;;  %v741_v41 = vld [vmem:[#allocation7 + $0x1088] sm:$0xff] }
 0x189   :  { %1366 = vmatprep.subr.mxu1 %v709_v43  ;;  %1298 = vmatpush2.msra.mxu0 %v642_v44  ;;  %v210_v42 = vld [vmem:[#allocation2 + $0x88] sm:$0xff]  ;;  %v740_v43 = vld [vmem:[#allocation7 + $0x1080] sm:$0xff] }
 0x18a   :  { %1367 = vmatpush2.msra.mxu1 %v708_v45  ;;  %1299 = vmatprep.subr.mxu0 %v641_v46  ;;  %v788_v44 = vld [vmem:[#allocation7 + $0x1200] sm:$0xff]  ;;  %v739_v45 = vld [vmem:[#allocation7 + $0x1078] sm:$0xff]  ;;  %v738_v46 = vld [vmem:[#allocation7 + $0x1070] sm:$0xff] }
 0x18b   :  { %1368 = vmatprep.subr.mxu1 %v707_v47  ;;  %1300 = vmatpush2.msra.mxu0 %v640_v48  ;;  %v211_v47 = vld [vmem:[#allocation2 + $0x90] sm:$0xff]  ;;  %v737_v48 = vld [vmem:[#allocation7 + $0x1068] sm:$0xff] }
 0x18c   :  { %1369 = vmatpush2.msra.mxu1 %v706_v49  ;;  %1301 = vmatprep.subr.mxu0 %v639_v50  ;;  %v736_v49 = vld [vmem:[#allocation7 + $0x1060] sm:$0xff]  ;;  %v4045_v50 = vmov 0.0  }
 0x18d   :  { %1370 = vmatprep.subr.mxu1 %v705_v51  ;;  %1302 = vmatpush2.msra.mxu0 %v638_v52  ;;  %v735_v51 = vld [vmem:[#allocation7 + $0x1058] sm:$0xff]  ;;  %v734_v52 = vld [vmem:[#allocation7 + $0x1050] sm:$0xff] }
 0x18e   :  { %1371 = vmatpush2.msra.mxu1 %v704_v53  ;;  %1303 = vmatprep.subr.mxu0 %v637_v54  ;;  %v733_v53 = vld [vmem:[#allocation7 + $0x1048] sm:$0xff]  ;;  %v732_v54 = vld [vmem:[#allocation7 + $0x1040] sm:$0xff] }
 0x18f   :  { %1372 = vmatprep.subr.mxu1 %v703_v55  ;;  %1304 = vmatpush2.msra.mxu0 %v636_v56  ;;  %v731_v55 = vld [vmem:[#allocation7 + $0x1038] sm:$0xff]  ;;  %v730_v56 = vld [vmem:[#allocation7 + $0x1030] sm:$0xff] }
 0x190   :  { %1373 = vmatpush2.msra.mxu1 %v702_v57  ;;  %1305 = vmatprep.subr.mxu0 %v635_v58  ;;  %v729_v57 = vld [vmem:[#allocation7 + $0x1028] sm:$0xff]  ;;  %v728_v58 = vld [vmem:[#allocation7 + $0x1020] sm:$0xff] }
 0x191   :  { %1374 = vmatprep.subr.mxu1 %v701_v59  ;;  %1306 = vmatpush2.msra.mxu0 %v634_v60  ;;  %v727_v59 = vld [vmem:[#allocation7 + $0x1018] sm:$0xff]  ;;  %v726_v60 = vld [vmem:[#allocation7 + $0x1010] sm:$0xff] }
 0x192   :  { %1375 = vmatpush2.msra.mxu1 %v700_v61  ;;  %1307 = vmatprep.subr.mxu0 %v633_v62  ;;  %v725_v61 = vld [vmem:[#allocation7 + $0x1008] sm:$0xff]  ;;  %v724_v62 = vld [vmem:[#allocation7 + $0x1000] sm:$0xff] }
 0x193   :  { %1376 = vmatprep.subr.mxu1 %v699_v63  ;;  %1308 = vmatpush2.msra.mxu0 %v632_v0  ;;  %v787_v63 = vld [vmem:[#allocation7 + $0x11f8] sm:$0xff]  ;;  %v786_v0 = vld [vmem:[#allocation7 + $0x11f0] sm:$0xff] }
 0x194   :  { %1377 = vmatpush2.msra.mxu1 %v698_v1  ;;  %1309 = vmatprep.subr.mxu0 %v631_v2  ;;  %v785_v1 = vld [vmem:[#allocation7 + $0x11e8] sm:$0xff]  ;;  %v784_v2 = vld [vmem:[#allocation7 + $0x11e0] sm:$0xff] }
 0x195   :  { %1378 = vmatprep.subr.mxu1 %v697_v3  ;;  %1310 = vmatpush2.msra.mxu0 %v630_v4  ;;  %v783_v3 = vld [vmem:[#allocation7 + $0x11d8] sm:$0xff]  ;;  %v782_v4 = vld [vmem:[#allocation7 + $0x11d0] sm:$0xff] }
 0x196   :  { %1379 = vmatpush2.msra.mxu1 %v696_v5  ;;  %1311 = vmatprep.subr.mxu0 %v629_v6  ;;  %v781_v5 = vld [vmem:[#allocation7 + $0x11c8] sm:$0xff]  ;;  %v780_v6 = vld [vmem:[#allocation7 + $0x11c0] sm:$0xff] }
 0x197   :  { %1380 = vmatprep.subr.mxu1 %v695_v7  ;;  %1312 = vmatpush2.msra.mxu0 %v628_v8  ;;  %v779_v7 = vld [vmem:[#allocation7 + $0x11b8] sm:$0xff]  ;;  %v778_v8 = vld [vmem:[#allocation7 + $0x11b0] sm:$0xff] }
 0x198   :  { %1313 = vmatprep.mubr.f32.mxu0 %v206_v9  ;;  %1381 = vmatpush2.msra.mxu1 %v694_v10  ;;  %v777_v9 = vld [vmem:[#allocation7 + $0x11a8] sm:$0xff]  ;;  %v776_v10 = vld [vmem:[#allocation7 + $0x11a0] sm:$0xff] }
 0x199   :  { %1314 = vmatmul.mubr.f32.vlgmr.msra.gmra.mxu0 %v205_v11  ;;  %1382 = vmatprep.subr.mxu1 %v693_v12  ;;  %v775_v11 = vld [vmem:[#allocation7 + $0x1198] sm:$0xff]  ;;  %v774_v12 = vld [vmem:[#allocation7 + $0x1190] sm:$0xff] }
 0x19a   :  { %1391 = vmatprep.subr.mxu0 %v755_v13  ;;  %1383 = vmatpush2.msra.mxu1 %v692_v14  ;;  %v773_v13 = vld [vmem:[#allocation7 + $0x1188] sm:$0xff]  ;;  %v772_v14 = vld [vmem:[#allocation7 + $0x1180] sm:$0xff] }
 0x19b   :  { %1384 = vmatprep.mubr.f32.mxu1 %v208_v15  ;;  %1392 = vmatpush1.msra.mxu0 %v754_v16  ;;  %v771_v15 = vld [vmem:[#allocation7 + $0x1178] sm:$0xff]  ;;  %v770_v16 = vld [vmem:[#allocation7 + $0x1170] sm:$0xff] }
 0x19c   :  { %1385 = vmatmul.mubr.f32.vlgmr.msra.gmra.mxu1 %v207_v17  ;;  %1393 = vmatprep.subr.mxu0 %v753_v18  ;;  %v769_v17 = vld [vmem:[#allocation7 + $0x1168] sm:$0xff]  ;;  %v768_v18 = vld [vmem:[#allocation7 + $0x1160] sm:$0xff] }
 0x19d   :  { %1394 = vmatpush1.msra.mxu0 %v752_v19  ;;  %3622 = vmatprep.subr.msk.mxu1 %vm816_vm0, %v799_v20  ;;  %v767_v19 = vld [vmem:[#allocation7 + $0x1158] sm:$0xff]  ;;  %v766_v20 = vld [vmem:[#allocation7 + $0x1150] sm:$0xff] }
 0x19e   :  { %1395 = vmatprep.subr.mxu0 %v751_v21  ;;  %3623 = vmatpush1.msk.msra.mxu1 %vm816_vm0, %v798_v22  ;;  %v765_v21 = vld [vmem:[#allocation7 + $0x1148] sm:$0xff]  ;;  %v764_v22 = vld [vmem:[#allocation7 + $0x1140] sm:$0xff] }
 0x19f   :  { %1396 = vmatpush1.msra.mxu0 %v750_v23  ;;  %1484 = vmatprep.subr.mxu1 %v797_v24  ;;  %v763_v23 = vld [vmem:[#allocation7 + $0x1138] sm:$0xff]  ;;  %v762_v24 = vld [vmem:[#allocation7 + $0x1130] sm:$0xff] }
 0x1a0   :  { %1397 = vmatprep.subr.mxu0 %v749_v25  ;;  %1485 = vmatpush1.msra.mxu1 %v796_v26  ;;  %v761_v25 = vld [vmem:[#allocation7 + $0x1128] sm:$0xff]  ;;  %v760_v26 = vld [vmem:[#allocation7 + $0x1120] sm:$0xff] }
 0x1a1   :  { %1398 = vmatpush1.msra.mxu0 %v748_v27  ;;  %1486 = vmatprep.subr.mxu1 %v795_v28  ;;  %v759_v27 = vld [vmem:[#allocation7 + $0x1118] sm:$0xff]  ;;  %v758_v28 = vld [vmem:[#allocation7 + $0x1110] sm:$0xff] }
 0x1a2   :  { %1399 = vmatprep.subr.mxu0 %v747_v29  ;;  %1487 = vmatpush1.msra.mxu1 %v794_v30  ;;  %v757_v29 = vld [vmem:[#allocation7 + $0x1108] sm:$0xff]  ;;  %v756_v30 = vld [vmem:[#allocation7 + $0x1100] sm:$0xff] }
 0x1a3   :  { %1400 = vmatpush1.msra.mxu0 %v746_v31  ;;  %1488 = vmatprep.subr.mxu1 %v793_v32  ;;  %v209_v31 = vld [vmem:[#allocation2 + $0x80] sm:$0xff] }
 0x1a4   :  { %1401 = vmatprep.subr.mxu0 %v745_v33  ;;  %1489 = vmatpush1.msra.mxu1 %v792_v34  ;;  %v1729_v32 = vld [vmem:[#allocation13 + $0x2f8] sm:$0xff]  ;;  %v1728_v33 = vld [vmem:[#allocation13 + $0x2f0] sm:$0xff]  ;;  %v1727_v34 = vld [vmem:[#allocation13 + $0x2e8] sm:$0xff] }
 0x1a5   :  { %1402 = vmatpush1.msra.mxu0 %v744_v35  ;;  %1490 = vmatprep.subr.mxu1 %v791_v36  ;;  %v1726_v35 = vld [vmem:[#allocation13 + $0x2e0] sm:$0xff]  ;;  %v1725_v36 = vld [vmem:[#allocation13 + $0x2d8] sm:$0xff] }
 0x1a6   :  { %1403 = vmatprep.subr.mxu0 %v743_v37  ;;  %1491 = vmatpush1.msra.mxu1 %v790_v38  ;;  %v1724_v37 = vld [vmem:[#allocation13 + $0x2d0] sm:$0xff]  ;;  %v1723_v38 = vld [vmem:[#allocation13 + $0x2c8] sm:$0xff] }
 0x1a7   :  { %1404 = vmatpush1.msra.mxu0 %v742_v39  ;;  %1492 = vmatprep.subr.mxu1 %v789_v40  ;;  %v1722_v39 = vld [vmem:[#allocation13 + $0x2c0] sm:$0xff]  ;;  %v1721_v40 = vld [vmem:[#allocation13 + $0x2b8] sm:$0xff] }
 0x1a8   :  { %1405 = vmatprep.subr.mxu0 %v741_v41  ;;  %1455 = vmatprep.mubr.f32.mxu0 %v210_v42  ;;  %v1720_v41 = vld [vmem:[#allocation13 + $0x2b0] sm:$0xff]  ;;  %v1719_v42 = vld [vmem:[#allocation13 + $0x2a8] sm:$0xff] }
 0x1a9   :  { %1406 = vmatpush1.msra.mxu0 %v740_v43  ;;  %1493 = vmatpush1.msra.mxu1 %v788_v44  ;;  %v1718_v43 = vld [vmem:[#allocation13 + $0x2a0] sm:$0xff]  ;;  %v1717_v44 = vld [vmem:[#allocation13 + $0x298] sm:$0xff] }
 0x1aa   :  { %1407 = vmatprep.subr.mxu0 %v739_v45  ;;  %1526 = vmatprep.mubr.f32.mxu1 %v4045_v50  ;;  %v1716_v45 = vld [vmem:[#allocation13 + $0x290] sm:$0xff] }
 0x1ab   :  { %1408 = vmatpush1.msra.mxu0 %v738_v46  ;;  %3624 = vmatmul.mubr.msk.f32.vlgmr.msra.gmra.mxu1 %vm812_vm1, %v211_v47  ;;  %v1715_v46 = vld [vmem:[#allocation13 + $0x288] sm:$0xff]  ;;  %v1714_v47 = vld [vmem:[#allocation13 + $0x280] sm:$0xff] }
 0x1ac   :  { %1409 = vmatprep.subr.mxu0 %v737_v48  ;;  %1602 = vmatprep.mubr.f32.mxu1 %v4045_v50  ;;  %v1713_v48 = vld [vmem:[#allocation13 + $0x278] sm:$0xff] }
 0x1ad   :  { %1410 = vmatpush1.msra.mxu0 %v736_v49  ;;  %v1712_v49 = vld [vmem:[#allocation13 + $0x270] sm:$0xff] }
 0x1ae   :  { %1411 = vmatprep.subr.mxu0 %v735_v51  ;;  %v1711_v51 = vld [vmem:[#allocation13 + $0x268] sm:$0xff] }
 0x1af   :  { %1412 = vmatpush1.msra.mxu0 %v734_v52  ;;  %v1710_v52 = vld [vmem:[#allocation13 + $0x260] sm:$0xff] }
 0x1b0   :  { %1413 = vmatprep.subr.mxu0 %v733_v53  ;;  %v1709_v53 = vld [vmem:[#allocation13 + $0x258] sm:$0xff] }
 0x1b1   :  { %1414 = vmatpush1.msra.mxu0 %v732_v54  ;;  %v1708_v54 = vld [vmem:[#allocation13 + $0x250] sm:$0xff] }
 0x1b2   :  { %1415 = vmatprep.subr.mxu0 %v731_v55  ;;  %v1707_v55 = vld [vmem:[#allocation13 + $0x248] sm:$0xff] }
 0x1b3   :  { %1416 = vmatpush1.msra.mxu0 %v730_v56  ;;  %v1706_v56 = vld [vmem:[#allocation13 + $0x240] sm:$0xff] }
 0x1b4   :  { %1417 = vmatprep.subr.mxu0 %v729_v57  ;;  %v1705_v57 = vld [vmem:[#allocation13 + $0x238] sm:$0xff] }
 0x1b5   :  { %1418 = vmatpush1.msra.mxu0 %v728_v58  ;;  %v1704_v58 = vld [vmem:[#allocation13 + $0x230] sm:$0xff] }
 0x1b6   :  { %1419 = vmatprep.subr.mxu0 %v727_v59  ;;  %v1703_v59 = vld [vmem:[#allocation13 + $0x228] sm:$0xff] }
 0x1b7   :  { %1420 = vmatpush1.msra.mxu0 %v726_v60  ;;  %v1702_v60 = vld [vmem:[#allocation13 + $0x220] sm:$0xff] }
 0x1b8   :  { %1421 = vmatprep.subr.mxu0 %v725_v61  ;;  %v1701_v61 = vld [vmem:[#allocation13 + $0x218] sm:$0xff] }
 0x1b9   :  { %1422 = vmatpush1.msra.mxu0 %v724_v62  ;;  %v1700_v62 = vld [vmem:[#allocation13 + $0x210] sm:$0xff] }
 0x1ba   :  { %1423 = vmatprep.subr.mxu0 %v787_v63  ;;  %v1699_v63 = vld [vmem:[#allocation13 + $0x208] sm:$0xff] }
 0x1bb   :  { %1424 = vmatpush2.msra.mxu0 %v786_v0  ;;  %v1698_v0 = vld [vmem:[#allocation13 + $0x200] sm:$0xff] }
 0x1bc   :  { %1425 = vmatprep.subr.mxu0 %v785_v1  ;;  %v1761_v1 = vld [vmem:[#allocation13 + $0x3f8] sm:$0xff] }
 0x1bd   :  { %1426 = vmatpush2.msra.mxu0 %v784_v2  ;;  %v1760_v2 = vld [vmem:[#allocation13 + $0x3f0] sm:$0xff] }
 0x1be   :  { %1427 = vmatprep.subr.mxu0 %v783_v3  ;;  %v1759_v3 = vld [vmem:[#allocation13 + $0x3e8] sm:$0xff] }
 0x1bf   :  { %1428 = vmatpush2.msra.mxu0 %v782_v4  ;;  %v1758_v4 = vld [vmem:[#allocation13 + $0x3e0] sm:$0xff] }
 0x1c0   :  { %1429 = vmatprep.subr.mxu0 %v781_v5  ;;  %v1757_v5 = vld [vmem:[#allocation13 + $0x3d8] sm:$0xff] }
 0x1c1   :  { %1430 = vmatpush2.msra.mxu0 %v780_v6  ;;  %v1756_v6 = vld [vmem:[#allocation13 + $0x3d0] sm:$0xff] }
 0x1c2   :  { %1431 = vmatprep.subr.mxu0 %v779_v7  ;;  %v1755_v7 = vld [vmem:[#allocation13 + $0x3c8] sm:$0xff] }
 0x1c3   :  { %1432 = vmatpush2.msra.mxu0 %v778_v8  ;;  %v1754_v8 = vld [vmem:[#allocation13 + $0x3c0] sm:$0xff] }
 0x1c4   :  { %1433 = vmatprep.subr.mxu0 %v777_v9  ;;  %v1753_v9 = vld [vmem:[#allocation13 + $0x3b8] sm:$0xff] }
 0x1c5   :  { %1434 = vmatpush2.msra.mxu0 %v776_v10  ;;  %v1752_v10 = vld [vmem:[#allocation13 + $0x3b0] sm:$0xff] }
 0x1c6   :  { %1435 = vmatprep.subr.mxu0 %v775_v11  ;;  %v1751_v11 = vld [vmem:[#allocation13 + $0x3a8] sm:$0xff] }
 0x1c7   :  { %1436 = vmatpush2.msra.mxu0 %v774_v12  ;;  %v1750_v12 = vld [vmem:[#allocation13 + $0x3a0] sm:$0xff] }
 0x1c8   :  { %1437 = vmatprep.subr.mxu0 %v773_v13  ;;  %v1749_v13 = vld [vmem:[#allocation13 + $0x398] sm:$0xff] }
 0x1c9   :  { %1438 = vmatpush2.msra.mxu0 %v772_v14  ;;  %v1748_v14 = vld [vmem:[#allocation13 + $0x390] sm:$0xff] }
 0x1ca   :  { %1439 = vmatprep.subr.mxu0 %v771_v15  ;;  %v1747_v15 = vld [vmem:[#allocation13 + $0x388] sm:$0xff] }
 0x1cb   :  { %1440 = vmatpush2.msra.mxu0 %v770_v16  ;;  %v1746_v16 = vld [vmem:[#allocation13 + $0x380] sm:$0xff] }
 0x1cc   :  { %1441 = vmatprep.subr.mxu0 %v769_v17  ;;  %v1745_v17 = vld [vmem:[#allocation13 + $0x378] sm:$0xff] }
 0x1cd   :  { %1442 = vmatpush2.msra.mxu0 %v768_v18  ;;  %v1744_v18 = vld [vmem:[#allocation13 + $0x370] sm:$0xff] }
 0x1ce   :  { %1443 = vmatprep.subr.mxu0 %v767_v19  ;;  %v1743_v19 = vld [vmem:[#allocation13 + $0x368] sm:$0xff] }
 0x1cf   :  { %1444 = vmatpush2.msra.mxu0 %v766_v20  ;;  %v1742_v20 = vld [vmem:[#allocation13 + $0x360] sm:$0xff] }
 0x1d0   :  { %1445 = vmatprep.subr.mxu0 %v765_v21  ;;  %v1741_v21 = vld [vmem:[#allocation13 + $0x358] sm:$0xff] }
 0x1d1   :  { %1446 = vmatpush2.msra.mxu0 %v764_v22  ;;  %v1740_v22 = vld [vmem:[#allocation13 + $0x350] sm:$0xff] }
 0x1d2   :  { %1447 = vmatprep.subr.mxu0 %v763_v23  ;;  %v1739_v23 = vld [vmem:[#allocation13 + $0x348] sm:$0xff] }
 0x1d3   :  { %1448 = vmatpush2.msra.mxu0 %v762_v24  ;;  %v1738_v24 = vld [vmem:[#allocation13 + $0x340] sm:$0xff] }
 0x1d4   :  { %1449 = vmatprep.subr.mxu0 %v761_v25  ;;  %v1737_v25 = vld [vmem:[#allocation13 + $0x338] sm:$0xff] }
 0x1d5   :  { %1450 = vmatpush2.msra.mxu0 %v760_v26  ;;  %v1736_v26 = vld [vmem:[#allocation13 + $0x330] sm:$0xff] }
 0x1d6   :  { %1451 = vmatprep.subr.mxu0 %v759_v27  ;;  %v1735_v27 = vld [vmem:[#allocation13 + $0x328] sm:$0xff] }
 0x1d7   :  { %1452 = vmatpush2.msra.mxu0 %v758_v28  ;;  %v1734_v28 = vld [vmem:[#allocation13 + $0x320] sm:$0xff] }
 0x1d8   :  { %1453 = vmatprep.subr.mxu0 %v757_v29  ;;  %v1733_v29 = vld [vmem:[#allocation13 + $0x318] sm:$0xff] }
 0x1d9   :  { %1454 = vmatpush2.msra.mxu0 %v756_v30  ;;  %v1732_v30 = vld [vmem:[#allocation13 + $0x310] sm:$0xff] }
 0x1da   :  { %1456 = vmatmul.mubr.f32.vlgmr.msra.gmra.mxu0 %v209_v31  ;;  %2314 = vmatprep.subr.mxu0 %v1729_v32  ;;  %v1731_v31 = vld [vmem:[#allocation13 + $0x308] sm:$0xff]  ;;  %v1730_v32 = vld [vmem:[#allocation13 + $0x300] sm:$0xff] }
 0x1db   :  { %2315 = vmatpush1.msra.mxu0 %v1728_v33  ;;  %v1618_v33 = vld [vmem:[#allocation10 + $0x18] sm:$0xff] }
 0x1dc   :  { %2316 = vmatprep.subr.mxu0 %v1727_v34  ;;  %2378 = vmatprep.mubr.f32.mxu0 %v1618_v33  ;;  %v1617_v34 = vld [vmem:[#allocation10 + $0x10] sm:$0xff] }
 0x1dd   :  { %2317 = vmatpush1.msra.mxu0 %v1726_v35  ;;  %v1857_v35 = vld [vmem:[#allocation13 + $0x6f8] sm:$0xff] }
 0x1de   :  { %2318 = vmatprep.subr.mxu0 %v1725_v36  ;;  %v1856_v36 = vld [vmem:[#allocation13 + $0x6f0] sm:$0xff] }
 0x1df   :  { %2319 = vmatpush1.msra.mxu0 %v1724_v37  ;;  %v1855_v37 = vld [vmem:[#allocation13 + $0x6e8] sm:$0xff] }
 0x1e0   :  { %2320 = vmatprep.subr.mxu0 %v1723_v38  ;;  %v1854_v38 = vld [vmem:[#allocation13 + $0x6e0] sm:$0xff] }
 0x1e1   :  { %2321 = vmatpush1.msra.mxu0 %v1722_v39  ;;  %v1853_v39 = vld [vmem:[#allocation13 + $0x6d8] sm:$0xff] }
 0x1e2   :  { %2322 = vmatprep.subr.mxu0 %v1721_v40  ;;  %v1852_v40 = vld [vmem:[#allocation13 + $0x6d0] sm:$0xff] }
 0x1e3   :  { %2323 = vmatpush1.msra.mxu0 %v1720_v41  ;;  %v1851_v41 = vld [vmem:[#allocation13 + $0x6c8] sm:$0xff] }
 0x1e4   :  { %2324 = vmatprep.subr.mxu0 %v1719_v42  ;;  %v1850_v42 = vld [vmem:[#allocation13 + $0x6c0] sm:$0xff] }
 0x1e5   :  { %2325 = vmatpush1.msra.mxu0 %v1718_v43  ;;  %v1849_v43 = vld [vmem:[#allocation13 + $0x6b8] sm:$0xff] }
 0x1e6   :  { %2326 = vmatprep.subr.mxu0 %v1717_v44  ;;  %v1848_v44 = vld [vmem:[#allocation13 + $0x6b0] sm:$0xff] }
 0x1e7   :  { %2327 = vmatpush1.msra.mxu0 %v1716_v45  ;;  %v1847_v45 = vld [vmem:[#allocation13 + $0x6a8] sm:$0xff] }
 0x1e8   :  { %2328 = vmatprep.subr.mxu0 %v1715_v46  ;;  %v1846_v46 = vld [vmem:[#allocation13 + $0x6a0] sm:$0xff] }
 0x1e9   :  { %2329 = vmatpush1.msra.mxu0 %v1714_v47  ;;  %v1845_v47 = vld [vmem:[#allocation13 + $0x698] sm:$0xff] }
 0x1ea   :  { %2330 = vmatprep.subr.mxu0 %v1713_v48  ;;  %v1844_v48 = vld [vmem:[#allocation13 + $0x690] sm:$0xff] }
 0x1eb   :  { %2331 = vmatpush1.msra.mxu0 %v1712_v49  ;;  %v1843_v49 = vld [vmem:[#allocation13 + $0x688] sm:$0xff] }
 0x1ec   :  { %2332 = vmatprep.subr.mxu0 %v1711_v51  ;;  %v1842_v51 = vld [vmem:[#allocation13 + $0x680] sm:$0xff] }
 0x1ed   :  { %2333 = vmatpush1.msra.mxu0 %v1710_v52  ;;  %v802_v52 = vlaneseq }
 0x1ee   :  { %2334 = vmatprep.subr.mxu0 %v1709_v53  ;;  %v1841_v53 = vld [vmem:[#allocation13 + $0x678] sm:$0xff] }
 0x1ef   :  { %2335 = vmatpush1.msra.mxu0 %v1708_v54  ;;  %v1840_v54 = vld [vmem:[#allocation13 + $0x670] sm:$0xff] }
 0x1f0   :  { %2336 = vmatprep.subr.mxu0 %v1707_v55  ;;  %v1839_v55 = vld [vmem:[#allocation13 + $0x668] sm:$0xff] }
 0x1f1   :  { %2337 = vmatpush1.msra.mxu0 %v1706_v56  ;;  %v1838_v56 = vld [vmem:[#allocation13 + $0x660] sm:$0xff] }
 0x1f2   :  { %2338 = vmatprep.subr.mxu0 %v1705_v57  ;;  %v803_v57 = vshrl.u32 %v802_v52, 7 }
 0x1f3   :  { %2339 = vmatpush1.msra.mxu0 %v1704_v58  ;;  %v1837_v58 = vld [vmem:[#allocation13 + $0x658] sm:$0xff] }
 0x1f4   :  { %2340 = vmatprep.subr.mxu0 %v1703_v59  ;;  %v1836_v59 = vld [vmem:[#allocation13 + $0x650] sm:$0xff] }
 0x1f5   :  { %2341 = vmatpush1.msra.mxu0 %v1702_v60  ;;  %v1835_v60 = vld [vmem:[#allocation13 + $0x648] sm:$0xff] }
 0x1f6   :  { %2342 = vmatprep.subr.mxu0 %v1701_v61  ;;  %v1834_v61 = vld [vmem:[#allocation13 + $0x640] sm:$0xff] }
 0x1f7   :  { %2343 = vmatpush1.msra.mxu0 %v1700_v62  ;;  %v4174_v62 = vsub.s32 0, %v803_v57 }
 0x1f8   :  { %2344 = vmatprep.subr.mxu0 %v1699_v63  ;;  %v1833_v63 = vld [vmem:[#allocation13 + $0x638] sm:$0xff] }
 0x1f9   :  { %2345 = vmatpush1.msra.mxu0 %v1698_v0  ;;  %v800_v0 = vld [vmem:[#allocation8] sm:$0x3] }
 0x1fa   :  { %2346 = vmatprep.subr.mxu0 %v1761_v1  ;;  %v4176_v1 = vsub.s32 1, %v803_v57 }
 0x1fb   :  { %2347 = vmatpush2.msra.mxu0 %v1760_v2  ;;  %v1832_v2 = vld [vmem:[#allocation13 + $0x630] sm:$0xff] }
 0x1fc   :  { %2348 = vmatprep.subr.mxu0 %v1759_v3  ;;  %v889_v3 = vpop.f32.mrf.mxu0 }
 0x1fd   :  { %2349 = vmatpush2.msra.mxu0 %v1758_v4  ;;  %v1831_v4 = vld [vmem:[#allocation13 + $0x628] sm:$0xff] }
 0x1fe   :  { %2350 = vmatprep.subr.mxu0 %v1757_v5  ;;  %v1830_v5 = vld [vmem:[#allocation13 + $0x620] sm:$0xff] }
 0x1ff   :  { %2351 = vmatpush2.msra.mxu0 %v1756_v6  ;;  %v805_v6 = vrot.slane %v800_v0, %v4174_v62 }
 0x200   :  { %2352 = vmatprep.subr.mxu0 %v1755_v7  ;;  %v1829_v7 = vld [vmem:[#allocation13 + $0x618] sm:$0xff] }
 0x201   :  { %2353 = vmatpush2.msra.mxu0 %v1754_v8  ;;  %v809_v8 = vrot.slane %v800_v0, %v4176_v1  ;;  %v1868_v0 = vld [vmem:[#allocation13 + $0x750] sm:$0xff] }
 0x202   :  { %2354 = vmatprep.subr.mxu0 %v1753_v9  ;;  %v1828_v9 = vld [vmem:[#allocation13 + $0x610] sm:$0xff] }
 0x203   :  { %2355 = vmatpush2.msra.mxu0 %v1752_v10  ;;  %v891_v10 = vpop.f32.mrf.mxu0 }
 0x204   :  { %2356 = vmatprep.subr.mxu0 %v1751_v11  ;;  %v960_v11 = vpop.f32.mrf.mxu1 }
 0x205   :  { %2357 = vmatpush2.msra.mxu0 %v1750_v12  ;;  %v1827_v12 = vld [vmem:[#allocation13 + $0x608] sm:$0xff] }
 0x206   :  { %2358 = vmatprep.subr.mxu0 %v1749_v13  ;;  %v1826_v13 = vld [vmem:[#allocation13 + $0x600] sm:$0xff] }
 0x207   :  { %2359 = vmatpush2.msra.mxu0 %v1748_v14  ;;  %v890_v14 = vadd.f32 %v889_v3, %v805_v6 }
 0x208   :  { %2360 = vmatprep.subr.mxu0 %v1747_v15  ;;  %v1031_v15 = vpop.f32.mrf.mxu0 }
 0x209   :  { %2361 = vmatpush2.msra.mxu0 %v1746_v16  ;;  %v1889_v16 = vld [vmem:[#allocation13 + $0x7f8] sm:$0xff] }
 0x20a   :  { %2362 = vmatprep.subr.mxu0 %v1745_v17  ;;  %v892_v17 = vadd.f32 %v891_v10, %v809_v8  ;;  %v1865_v10 = vld [vmem:[#allocation13 + $0x738] sm:$0xff] }
 0x20b   :  { %2363 = vmatpush2.msra.mxu0 %v1744_v18  ;;  %v1888_v18 = vld [vmem:[#allocation13 + $0x7f0] sm:$0xff] }
 0x20c   :  { %2364 = vmatprep.subr.mxu0 %v1743_v19  ;;  %v962_v19 = vpop.f32.mrf.mxu1 }
 0x20d   :  { %2365 = vmatpush2.msra.mxu0 %v1742_v20  ;;  %v1887_v20 = vld [vmem:[#allocation13 + $0x7e8] sm:$0xff] }
 0x20e   :  { %2366 = vmatprep.subr.mxu0 %v1741_v21  ;;  %v1886_v21 = vld [vmem:[#allocation13 + $0x7e0] sm:$0xff] }
 0x20f   :  { %2367 = vmatpush2.msra.mxu0 %v1740_v22  ;;  %v961_v22 = vadd.f32 %v960_v11, %v890_v14  ;;  %v1863_v14 = vld [vmem:[#allocation13 + $0x728] sm:$0xff] }
 0x210   :  { %2368 = vmatprep.subr.mxu0 %v1739_v23  ;;  %v1033_v23 = vpop.f32.mrf.mxu0 }
 0x211   :  { %2369 = vmatpush2.msra.mxu0 %v1738_v24  ;;  %v1102_v24 = vpop.f32.mrf.mxu1 }
 0x212   :  { %2370 = vmatprep.subr.mxu0 %v1737_v25  ;;  %v1885_v25 = vld [vmem:[#allocation13 + $0x7d8] sm:$0xff] }
 0x213   :  { %2371 = vmatpush2.msra.mxu0 %v1736_v26  ;;  %v963_v26 = vadd.f32 %v962_v19, %v892_v17  ;;  %v1104_v33 = vpop.f32.mrf.mxu1  ;;  %v1665_v19 = vld [vmem:[#allocation13 + $0xf8] sm:$0xff] }
 0x214   :  { %2372 = vmatprep.subr.mxu0 %v1735_v27  ;;  %v1884_v27 = vld [vmem:[#allocation13 + $0x7d0] sm:$0xff] }
 0x215   :  { %2373 = vmatpush2.msra.mxu0 %v1734_v28  ;;  %v1032_v28 = vadd.f32 %v1031_v15, %v961_v22  ;;  %v1616_v22 = vld [vmem:[#allocation10 + $0x8] sm:$0xff] }
 0x216   :  { %2374 = vmatprep.subr.mxu0 %v1733_v29 }
 0x217   :  { %2375 = vmatpush2.msra.mxu0 %v1732_v30  ;;  %v1173_v29 = vpop.f32.mrf.mxu0  ;;  %v1883_v30 = vld [vmem:[#allocation13 + $0x7c8] sm:$0xff] }
 0x218   :  { %2376 = vmatprep.subr.mxu0 %v1731_v31  ;;  %v1034_v31 = vadd.f32 %v1033_v23, %v963_v26  ;;  %v1860_v23 = vld [vmem:[#allocation13 + $0x710] sm:$0xff]  ;;  %v1662_v26 = vld [vmem:[#allocation13 + $0xe0] sm:$0xff] }
 0x219   :  { %2377 = vmatpush2.msra.mxu0 %v1730_v32  ;;  %v1882_v32 = vld [vmem:[#allocation13 + $0x7c0] sm:$0xff] }
 0x21a   :  { %2379 = vmatmul.mubr.f32.vlgmr.msra.gmra.mxu0 %v1617_v34  ;;  %2456 = vmatprep.subr.mxu0 %v1857_v35  ;;  %v1881_v34 = vld [vmem:[#allocation13 + $0x7b8] sm:$0xff]  ;;  %v1880_v35 = vld [vmem:[#allocation13 + $0x7b0] sm:$0xff] }
 0x21b   :  { %2457 = vmatpush1.msra.mxu0 %v1856_v36  ;;  %v1103_v36 = vadd.f32 %v1102_v24, %v1032_v28  ;;  %v1663_v24 = vld [vmem:[#allocation13 + $0xe8] sm:$0xff]  ;;  %v1661_v28 = vld [vmem:[#allocation13 + $0xd8] sm:$0xff] }
 0x21c   :  { %2458 = vmatprep.subr.mxu0 %v1855_v37  ;;  %v1175_v37 = vpop.f32.mrf.mxu0 }
 0x21d   :  { %2459 = vmatpush1.msra.mxu0 %v1854_v38  ;;  %v1244_v38 = vpop.f32.mrf.mxu1 }
 0x21e   :  { %2460 = vmatprep.subr.mxu0 %v1853_v39  ;;  %v1879_v39 = vld [vmem:[#allocation13 + $0x7a8] sm:$0xff] }
 0x21f   :  { %2461 = vmatpush1.msra.mxu0 %v1852_v40  ;;  %v1105_v40 = vadd.f32 %v1104_v33, %v1034_v31  ;;  %v1621_v31 = vld [vmem:[#allocation10 + $0x30] sm:$0xff]  ;;  %v1985_v33 = vld [vmem:[#allocation13 + $0xaf8] sm:$0xff] }
 0x220   :  { %2462 = vmatprep.subr.mxu0 %v1851_v41  ;;  %v1878_v41 = vld [vmem:[#allocation13 + $0x7a0] sm:$0xff] }
 0x221   :  { %2463 = vmatpush1.msra.mxu0 %v1850_v42  ;;  %v1174_v42 = vadd.f32 %v1173_v29, %v1103_v36  ;;  %v1622_v29 = vld [vmem:[#allocation10 + $0x38] sm:$0xff] }
 0x222   :  { %2464 = vmatprep.subr.mxu0 %v1849_v43  ;;  %2520 = vmatprep.mubr.f32.mxu0 %v1622_v29  ;;  %v1657_v36 = vld [vmem:[#allocation13 + $0xb8] sm:$0xff]  ;;  %v1694_v29 = vld [vmem:[#allocation13 + $0x1e0] sm:$0xff] }
 0x223   :  { %2465 = vmatpush1.msra.mxu0 %v1848_v44  ;;  %v1877_v44 = vld [vmem:[#allocation13 + $0x798] sm:$0xff] }
 0x224   :  { %2466 = vmatprep.subr.mxu0 %v1847_v45  ;;  %v1176_v45 = vadd.f32 %v1175_v37, %v1105_v40  ;;  %v1983_v37 = vld [vmem:[#allocation13 + $0xae8] sm:$0xff] }
 0x225   :  { %2467 = vmatpush1.msra.mxu0 %v1846_v46  ;;  %v1876_v46 = vld [vmem:[#allocation13 + $0x790] sm:$0xff]  ;;  %v1655_v40 = vld [vmem:[#allocation13 + $0xa8] sm:$0xff] }
 0x226   :  { %2468 = vmatprep.subr.mxu0 %v1845_v47  ;;  %v1246_v47 = vpop.f32.mrf.mxu1 }
 0x227   :  { %2469 = vmatpush1.msra.mxu0 %v1844_v48  ;;  %v1875_v48 = vld [vmem:[#allocation13 + $0x788] sm:$0xff] }
 0x228   :  { %2470 = vmatprep.subr.mxu0 %v1843_v49  ;;  %v1874_v49 = vld [vmem:[#allocation13 + $0x780] sm:$0xff] }
 0x229   :  { %2471 = vmatpush1.msra.mxu0 %v1842_v51  ;;  %v1245_v51 = vadd.f32 %v1244_v38, %v1174_v42  ;;  %v1656_v38 = vld [vmem:[#allocation13 + $0xb0] sm:$0xff]  ;;  %v1654_v42 = vld [vmem:[#allocation13 + $0xa0] sm:$0xff] }
 0x22a   :  { %2472 = vmatprep.subr.mxu0 %v1841_v53 }
 0x22b   :  { %2473 = vmatpush1.msra.mxu0 %v1840_v54  ;;  %v1873_v54 = vld [vmem:[#allocation13 + $0x778] sm:$0xff] }
 0x22c   :  { %2474 = vmatprep.subr.mxu0 %v1839_v55  ;;  %v1247_v55 = vadd.f32 %v1246_v47, %v1176_v45  ;;  %v1979_v45 = vld [vmem:[#allocation13 + $0xac8] sm:$0xff]  ;;  %v1978_v47 = vld [vmem:[#allocation13 + $0xac0] sm:$0xff] }
 0x22d   :  { %2475 = vmatpush1.msra.mxu0 %v1838_v56  ;;  %v1872_v56 = vld [vmem:[#allocation13 + $0x770] sm:$0xff] }
 0x22e   :  { %2476 = vmatprep.subr.mxu0 %v1837_v58  ;;  %v1871_v58 = vld [vmem:[#allocation13 + $0x768] sm:$0xff] }
 0x22f   :  { %2477 = vmatpush1.msra.mxu0 %v1836_v59 }
 0x230   :  { %2478 = vmatprep.subr.mxu0 %v1835_v60  ;;  %v1870_v60 = vld [vmem:[#allocation13 + $0x760] sm:$0xff] }
 0x231   :  { %2479 = vmatpush1.msra.mxu0 %v1834_v61 }
 0x232   :  { %2480 = vmatprep.subr.mxu0 %v1833_v63  ;;  %v1869_v63 = vld [vmem:[#allocation13 + $0x758] sm:$0xff] }
 0x233   :  { %2481 = vmatpush1.msra.mxu0 %v1832_v2 }
 0x234   :  { %2482 = vmatprep.subr.mxu0 %v1831_v4 }
 0x235   :  { %2483 = vmatpush1.msra.mxu0 %v1830_v5  ;;  %v1867_v5 = vld [vmem:[#allocation13 + $0x748] sm:$0xff] }
 0x236   :  { %2484 = vmatprep.subr.mxu0 %v1829_v7  ;;  %v1866_v7 = vld [vmem:[#allocation13 + $0x740] sm:$0xff] }
 0x237   :  { %2485 = vmatpush1.msra.mxu0 %v1828_v9 }
 0x238   :  { %2486 = vmatprep.subr.mxu0 %v1827_v12  ;;  %v1864_v12 = vld [vmem:[#allocation13 + $0x730] sm:$0xff] }
 0x239   :  { %2487 = vmatpush1.msra.mxu0 %v1826_v13 }
 0x23a   :  { %2488 = vmatprep.subr.mxu0 %v1889_v16  ;;  %v1862_v16 = vld [vmem:[#allocation13 + $0x720] sm:$0xff] }
 0x23b   :  { %2489 = vmatpush2.msra.mxu0 %v1888_v18  ;;  %v1533_v18 = vld [vmem:[#allocation5] sm:$0xff] }
 0x23c   :  { %2490 = vmatprep.subr.mxu0 %v1887_v20  ;;  %v1861_v20 = vld [vmem:[#allocation13 + $0x718] sm:$0xff] }
 0x23d   :  { %2491 = vmatpush2.msra.mxu0 %v1886_v21  ;;  %v1664_v21 = vld [vmem:[#allocation13 + $0xf0] sm:$0xff] }
 0x23e   :  { %2492 = vmatprep.subr.mxu0 %v1885_v25  ;;  %v1859_v25 = vld [vmem:[#allocation13 + $0x708] sm:$0xff] }
 0x23f   :  { %2493 = vmatpush2.msra.mxu0 %v1884_v27  ;;  %v1858_v27 = vld [vmem:[#allocation13 + $0x700] sm:$0xff] }
 0x240   :  { %2494 = vmatprep.subr.mxu0 %v1883_v30  ;;  %v1660_v30 = vld [vmem:[#allocation13 + $0xd0] sm:$0xff] }
 0x241   :  { %2495 = vmatpush2.msra.mxu0 %v1882_v32  ;;  %v1659_v32 = vld [vmem:[#allocation13 + $0xc8] sm:$0xff] }
 0x242   :  { %2496 = vmatprep.subr.mxu0 %v1881_v34  ;;  %v1658_v34 = vld [vmem:[#allocation13 + $0xc0] sm:$0xff] }
 0x243   :  { %2497 = vmatpush2.msra.mxu0 %v1880_v35  ;;  %v1984_v35 = vld [vmem:[#allocation13 + $0xaf0] sm:$0xff] }
 0x244   :  { %2498 = vmatprep.subr.mxu0 %v1879_v39  ;;  %v1982_v39 = vld [vmem:[#allocation13 + $0xae0] sm:$0xff] }
 0x245   :  { %2499 = vmatpush2.msra.mxu0 %v1878_v41  ;;  %v1981_v41 = vld [vmem:[#allocation13 + $0xad8] sm:$0xff] }
 0x246   :  { %2500 = vmatprep.subr.mxu0 %v1877_v44  ;;  %v1653_v44 = vld [vmem:[#allocation13 + $0x98] sm:$0xff] }
 0x247   :  { %2501 = vmatpush2.msra.mxu0 %v1876_v46  ;;  %v1652_v46 = vld [vmem:[#allocation13 + $0x90] sm:$0xff] }
 0x248   :  { %2502 = vmatprep.subr.mxu0 %v1875_v48  ;;  %v1651_v48 = vld [vmem:[#allocation13 + $0x88] sm:$0xff] }
 0x249   :  { %2503 = vmatpush2.msra.mxu0 %v1874_v49  ;;  %v1977_v49 = vld [vmem:[#allocation13 + $0xab8] sm:$0xff] }
 0x24a   :  { %2504 = vmatprep.subr.mxu0 %v1873_v54  ;;  %v1975_v54 = vld [vmem:[#allocation13 + $0xaa8] sm:$0xff] }
 0x24b   :  { %2505 = vmatpush2.msra.mxu0 %v1872_v56  ;;  %v1974_v56 = vld [vmem:[#allocation13 + $0xaa0] sm:$0xff] }
 0x24c   :  { %2506 = vmatprep.subr.mxu0 %v1871_v58  ;;  %v1973_v58 = vld [vmem:[#allocation13 + $0xa98] sm:$0xff] }
 0x24d   :  { %2507 = vmatpush2.msra.mxu0 %v1870_v60  ;;  %v1972_v60 = vld [vmem:[#allocation13 + $0xa90] sm:$0xff] }
 0x24e   :  { %2508 = vmatprep.subr.mxu0 %v1869_v63  ;;  %v1971_v63 = vld [vmem:[#allocation13 + $0xa88] sm:$0xff] }
 0x24f   :  { %2509 = vmatpush2.msra.mxu0 %v1868_v0  ;;  %v1644_v0 = vld [vmem:[#allocation13 + $0x50] sm:$0xff] }
 0x250   :  { %2510 = vmatprep.subr.mxu0 %v1867_v5  ;;  %v1642_v5 = vld [vmem:[#allocation13 + $0x40] sm:$0xff] }
 0x251   :  { %2511 = vmatpush2.msra.mxu0 %v1866_v7  ;;  %v1641_v7 = vld [vmem:[#allocation13 + $0x38] sm:$0xff] }
 0x252   :  { %2512 = vmatprep.subr.mxu0 %v1865_v10  ;;  %v1966_v10 = vld [vmem:[#allocation13 + $0xa60] sm:$0xff] }
 0x253   :  { %2513 = vmatpush2.msra.mxu0 %v1864_v12  ;;  %v1965_v12 = vld [vmem:[#allocation13 + $0xa58] sm:$0xff] }
 0x254   :  { %2514 = vmatprep.subr.mxu0 %v1863_v14  ;;  %v1964_v14 = vld [vmem:[#allocation13 + $0xa50] sm:$0xff] }
 0x255   :  { %2515 = vmatpush2.msra.mxu0 %v1862_v16  ;;  %v1963_v16 = vld [vmem:[#allocation13 + $0xa48] sm:$0xff] }
 0x256   :  { %2516 = vmatprep.subr.mxu0 %v1861_v20  ;;  %v1961_v20 = vld [vmem:[#allocation13 + $0xa38] sm:$0xff] }
 0x257   :  { %2517 = vmatpush2.msra.mxu0 %v1860_v23  ;;  %v1697_v23 = vld [vmem:[#allocation13 + $0x1f8] sm:$0xff] }
 0x258   :  { %2518 = vmatprep.subr.mxu0 %v1859_v25  ;;  %v1696_v25 = vld [vmem:[#allocation13 + $0x1f0] sm:$0xff] }
 0x259   :  { %v1315_v43 = vpop.f32.mrf.mxu0  ;;  %2519 = vmatpush2.msra.mxu0 %v1858_v27  ;;  %v1695_v27 = vld [vmem:[#allocation13 + $0x1e8] sm:$0xff] }
 0x25a   :  { %v1316_v57 = vadd.f32 %v1315_v43, %v1245_v51  ;;  %2521 = vmatmul.mubr.f32.vlgmr.msra.gmra.mxu0 %v1621_v31  ;;  %2598 = vmatprep.subr.mxu0 %v1985_v33  ;;  %v1980_v43 = vld [vmem:[#allocation13 + $0xad0] sm:$0xff]  ;;  %v1650_v51 = vld [vmem:[#allocation13 + $0x80] sm:$0xff]  ;;  %v1693_v31 = vld [vmem:[#allocation13 + $0x1d8] sm:$0xff] }
 0x25b   :  { %v1317_v52 = vpop.f32.mrf.mxu0  ;;  %2599 = vmatpush1.msra.mxu0 %v1984_v35  ;;  %v1692_v33 = vld [vmem:[#allocation13 + $0x1d0] sm:$0xff]  ;;  %v1691_v35 = vld [vmem:[#allocation13 + $0x1c8] sm:$0xff] }
 0x25c   :  { %v1386_v53 = vpop.f32.mrf.mxu1  ;;  %v1318_v59 = vadd.f32 %v1317_v52, %v1247_v55  ;;  %2600 = vmatprep.subr.mxu0 %v1983_v37  ;;  %v1976_v52 = vld [vmem:[#allocation13 + $0xab0] sm:$0xff]  ;;  %v1690_v37 = vld [vmem:[#allocation13 + $0x1c0] sm:$0xff] }
 0x25d   :  { %v1387_v2 = vadd.f32 %v1386_v53, %v1316_v57  ;;  %2601 = vmatpush1.msra.mxu0 %v1982_v39  ;;  %v1649_v53 = vld [vmem:[#allocation13 + $0x78] sm:$0xff]  ;;  %v1648_v55 = vld [vmem:[#allocation13 + $0x70] sm:$0xff]  ;;  %v1647_v57 = vld [vmem:[#allocation13 + $0x68] sm:$0xff] }
 0x25e   :  { %v1388_v61 = vpop.f32.mrf.mxu1  ;;  %2602 = vmatprep.subr.mxu0 %v1981_v41  ;;  %v1689_v39 = vld [vmem:[#allocation13 + $0x1b8] sm:$0xff]  ;;  %v1688_v41 = vld [vmem:[#allocation13 + $0x1b0] sm:$0xff] }
 0x25f   :  { %v1389_v6 = vadd.f32 %v1388_v61, %v1318_v59  ;;  %2603 = vmatpush1.msra.mxu0 %v1980_v43  ;;  %v1646_v59 = vld [vmem:[#allocation13 + $0x60] sm:$0xff]  ;;  %v1645_v61 = vld [vmem:[#allocation13 + $0x58] sm:$0xff]  ;;  %v1687_v43 = vld [vmem:[#allocation13 + $0x1a8] sm:$0xff] }
 0x260   :  { %2604 = vmatprep.subr.mxu0 %v1979_v45  ;;  %v1686_v45 = vld [vmem:[#allocation13 + $0x1a0] sm:$0xff] }
 0x261   :  { %2605 = vmatpush1.msra.mxu0 %v1978_v47  ;;  %v1685_v47 = vld [vmem:[#allocation13 + $0x198] sm:$0xff] }
 0x262   :  { %2606 = vmatprep.subr.mxu0 %v1977_v49  ;;  %v1684_v49 = vld [vmem:[#allocation13 + $0x190] sm:$0xff] }
 0x263   :  { %2607 = vmatpush1.msra.mxu0 %v1976_v52  ;;  %v1683_v52 = vld [vmem:[#allocation13 + $0x188] sm:$0xff] }
 0x264   :  { %2608 = vmatprep.subr.mxu0 %v1975_v54  ;;  %v1682_v54 = vld [vmem:[#allocation13 + $0x180] sm:$0xff] }
 0x265   :  { %2609 = vmatpush1.msra.mxu0 %v1974_v56  ;;  %v1681_v56 = vld [vmem:[#allocation13 + $0x178] sm:$0xff] }
 0x266   :  { %2610 = vmatprep.subr.mxu0 %v1973_v58  ;;  %v1680_v58 = vld [vmem:[#allocation13 + $0x170] sm:$0xff] }
 0x267   :  { %2611 = vmatpush1.msra.mxu0 %v1972_v60  ;;  %v1679_v60 = vld [vmem:[#allocation13 + $0x168] sm:$0xff] }
 0x268   :  { %2612 = vmatprep.subr.mxu0 %v1971_v63  ;;  %v1678_v63 = vld [vmem:[#allocation13 + $0x160] sm:$0xff] }
 0x26b   :  { %v1528_v4 = vpop.f32.mrf.mxu1 }
 0x26d   :  { %v1530_v13 = vpop.f32.mrf.mxu1 }
 0x29a   :  { %v1457_v3 = vpop.f32.mrf.mxu0 }
 0x29b   :  { %v1458_v8 = vadd.f32 %v1457_v3, %v1387_v2  ;;  %v1970_v2 = vld [vmem:[#allocation13 + $0xa80] sm:$0xff]  ;;  %v1643_v3 = vld [vmem:[#allocation13 + $0x48] sm:$0xff] }
 0x29c   :  { %v1459_v9 = vpop.f32.mrf.mxu0  ;;  %2613 = vmatpush1.msra.mxu0 %v1970_v2  ;;  %v1677_v2 = vld [vmem:[#allocation13 + $0x158] sm:$0xff] }
 0x29d   :  { %v1460_v11 = vadd.f32 %v1459_v9, %v1389_v6  ;;  %v1529_v17 = vadd.f32 %v1528_v4, %v1458_v8  ;;  %v1969_v4 = vld [vmem:[#allocation13 + $0xa78] sm:$0xff]  ;;  %v1968_v6 = vld [vmem:[#allocation13 + $0xa70] sm:$0xff]  ;;  %v1967_v8 = vld [vmem:[#allocation13 + $0xa68] sm:$0xff] }
 0x29e   :  { %v1640_v9 = vld [vmem:[#allocation13 + $0x30] sm:$0xff]  ;;  %2614 = vmatprep.subr.mxu0 %v1969_v4 }
 0x29f   :  { %v1531_v15 = vadd.f32 %v1530_v13, %v1460_v11  ;;  %v1639_v11 = vld [vmem:[#allocation13 + $0x28] sm:$0xff]  ;;  %2615 = vmatpush1.msra.mxu0 %v1968_v6  ;;  %v1638_v13 = vld [vmem:[#allocation13 + $0x20] sm:$0xff]  ;;  %v1676_v4 = vld [vmem:[#allocation13 + $0x150] sm:$0xff] }
 0x2a0   :  { %2616 = vmatprep.subr.mxu0 %v1967_v8  ;;  %v1675_v6 = vld [vmem:[#allocation13 + $0x148] sm:$0xff]  ;;  %v1674_v8 = vld [vmem:[#allocation13 + $0x140] sm:$0xff] }
 0x2a1   :  { %1568 = vmatprep.subr.mxu1 %v1531_v15  ;;  %v1637_v15 = vld [vmem:[#allocation13 + $0x18] sm:$0xff]  ;;  %2617 = vmatpush1.msra.mxu0 %v1966_v10 }
 0x2a2   :  { %1569 = vmatpush1.msra.mxu1 %v1529_v17  ;;  %v1636_v17 = vld [vmem:[#allocation13 + $0x10] sm:$0xff]  ;;  %2618 = vmatprep.subr.mxu0 %v1965_v12  ;;  %v1673_v10 = vld [vmem:[#allocation13 + $0x138] sm:$0xff] }
 0x2a3   :  { %3625 = vmatmul.mubr.msk.f32.vlgmr.msra.gmra.mxu1 %vm1534_vm2, %v1533_v18  ;;  %2243 = vmatprep.subr.mxu1 %v1665_v19  ;;  %v1962_v18 = vld [vmem:[#allocation13 + $0xa40] sm:$0xff]  ;;  %v1635_v19 = vld [vmem:[#allocation13 + $0x8] sm:$0xff]  ;;  %v1672_v12 = vld [vmem:[#allocation13 + $0x130] sm:$0xff] }
 0x2a4   :  { %2244 = vmatpush1.msra.mxu1 %v1664_v21  ;;  %2307 = vmatprep.mubr.f32.mxu1 %v1616_v22  ;;  %v1634_v21 = vld [vmem:[#allocation13] sm:$0xff]  ;;  %v1960_v22 = vld [vmem:[#allocation13 + $0xa30] sm:$0xff] }
 0x2a5   :  { %2245 = vmatprep.subr.mxu1 %v1663_v24  ;;  %2619 = vmatpush1.msra.mxu0 %v1964_v14  ;;  %v1959_v24 = vld [vmem:[#allocation13 + $0xa28] sm:$0xff] }
 0x2a6   :  { %2246 = vmatpush1.msra.mxu1 %v1662_v26  ;;  %2620 = vmatprep.subr.mxu0 %v1963_v16  ;;  %v1958_v26 = vld [vmem:[#allocation13 + $0xa20] sm:$0xff]  ;;  %v1671_v14 = vld [vmem:[#allocation13 + $0x128] sm:$0xff] }
 0x2a7   :  { %2247 = vmatprep.subr.mxu1 %v1661_v28  ;;  %2621 = vmatpush1.msra.mxu0 %v1962_v18  ;;  %v1957_v28 = vld [vmem:[#allocation13 + $0xa18] sm:$0xff]  ;;  %v1670_v16 = vld [vmem:[#allocation13 + $0x120] sm:$0xff] }
 0x2a8   :  { %2248 = vmatpush1.msra.mxu1 %v1660_v30  ;;  %2622 = vmatprep.subr.mxu0 %v1961_v20  ;;  %v1956_v30 = vld [vmem:[#allocation13 + $0xa10] sm:$0xff]  ;;  %v1669_v18 = vld [vmem:[#allocation13 + $0x118] sm:$0xff] }
 0x2a9   :  { %2249 = vmatprep.subr.mxu1 %v1659_v32  ;;  %2623 = vmatpush1.msra.mxu0 %v1960_v22  ;;  %v1955_v32 = vld [vmem:[#allocation13 + $0xa08] sm:$0xff]  ;;  %v1668_v20 = vld [vmem:[#allocation13 + $0x110] sm:$0xff] }
 0x2aa   :  { %2250 = vmatpush1.msra.mxu1 %v1658_v34  ;;  %2624 = vmatprep.subr.mxu0 %v1959_v24  ;;  %v1954_v34 = vld [vmem:[#allocation13 + $0xa00] sm:$0xff]  ;;  %v1667_v22 = vld [vmem:[#allocation13 + $0x108] sm:$0xff] }
 0x2ab   :  { %2251 = vmatprep.subr.mxu1 %v1657_v36  ;;  %2625 = vmatpush1.msra.mxu0 %v1958_v26  ;;  %v2017_v36 = vld [vmem:[#allocation13 + $0xbf8] sm:$0xff]  ;;  %v1666_v24 = vld [vmem:[#allocation13 + $0x100] sm:$0xff] }
 0x2ac   :  { %2252 = vmatpush1.msra.mxu1 %v1656_v38  ;;  %2626 = vmatprep.subr.mxu0 %v1957_v28  ;;  %v2016_v38 = vld [vmem:[#allocation13 + $0xbf0] sm:$0xff]  ;;  %v1615_v26 = vld [vmem:[#allocation10] sm:$0xff] }
 0x2ad   :  { %2253 = vmatprep.subr.mxu1 %v1655_v40  ;;  %2627 = vmatpush1.msra.mxu0 %v1956_v30  ;;  %v2015_v40 = vld [vmem:[#allocation13 + $0xbe8] sm:$0xff]  ;;  %v1792_v28 = vld [vmem:[#allocation13 + $0x4f0] sm:$0xff] }
 0x2ae   :  { %2254 = vmatpush1.msra.mxu1 %v1654_v42  ;;  %2628 = vmatprep.subr.mxu0 %v1955_v32  ;;  %v2014_v42 = vld [vmem:[#allocation13 + $0xbe0] sm:$0xff]  ;;  %v1791_v30 = vld [vmem:[#allocation13 + $0x4e8] sm:$0xff] }
 0x2af   :  { %2255 = vmatprep.subr.mxu1 %v1653_v44  ;;  %2629 = vmatpush1.msra.mxu0 %v1954_v34  ;;  %v2013_v44 = vld [vmem:[#allocation13 + $0xbd8] sm:$0xff]  ;;  %v1790_v32 = vld [vmem:[#allocation13 + $0x4e0] sm:$0xff] }
 0x2b0   :  { %2256 = vmatpush1.msra.mxu1 %v1652_v46  ;;  %2630 = vmatprep.subr.mxu0 %v2017_v36  ;;  %v2012_v46 = vld [vmem:[#allocation13 + $0xbd0] sm:$0xff]  ;;  %v1789_v34 = vld [vmem:[#allocation13 + $0x4d8] sm:$0xff] }
 0x2b1   :  { %2257 = vmatprep.subr.mxu1 %v1651_v48  ;;  %2631 = vmatpush2.msra.mxu0 %v2016_v38  ;;  %v2011_v48 = vld [vmem:[#allocation13 + $0xbc8] sm:$0xff]  ;;  %v1788_v36 = vld [vmem:[#allocation13 + $0x4d0] sm:$0xff] }
 0x2b2   :  { %2258 = vmatpush1.msra.mxu1 %v1650_v51  ;;  %2632 = vmatprep.subr.mxu0 %v2015_v40  ;;  %v2010_v51 = vld [vmem:[#allocation13 + $0xbc0] sm:$0xff]  ;;  %v1787_v38 = vld [vmem:[#allocation13 + $0x4c8] sm:$0xff] }
 0x2b3   :  { %2259 = vmatprep.subr.mxu1 %v1649_v53  ;;  %2633 = vmatpush2.msra.mxu0 %v2014_v42  ;;  %v2009_v53 = vld [vmem:[#allocation13 + $0xbb8] sm:$0xff]  ;;  %v1786_v40 = vld [vmem:[#allocation13 + $0x4c0] sm:$0xff] }
 0x2b4   :  { %2260 = vmatpush1.msra.mxu1 %v1648_v55  ;;  %2634 = vmatprep.subr.mxu0 %v2013_v44  ;;  %v2008_v55 = vld [vmem:[#allocation13 + $0xbb0] sm:$0xff]  ;;  %v1785_v42 = vld [vmem:[#allocation13 + $0x4b8] sm:$0xff] }
 0x2b5   :  { %2261 = vmatprep.subr.mxu1 %v1647_v57  ;;  %2635 = vmatpush2.msra.mxu0 %v2012_v46  ;;  %v2007_v57 = vld [vmem:[#allocation13 + $0xba8] sm:$0xff]  ;;  %v1784_v44 = vld [vmem:[#allocation13 + $0x4b0] sm:$0xff] }
 0x2b6   :  { %2262 = vmatpush1.msra.mxu1 %v1646_v59  ;;  %2636 = vmatprep.subr.mxu0 %v2011_v48  ;;  %v2006_v59 = vld [vmem:[#allocation13 + $0xba0] sm:$0xff]  ;;  %v1783_v46 = vld [vmem:[#allocation13 + $0x4a8] sm:$0xff] }
 0x2b7   :  { %2263 = vmatprep.subr.mxu1 %v1645_v61  ;;  %2637 = vmatpush2.msra.mxu0 %v2010_v51  ;;  %v2005_v61 = vld [vmem:[#allocation13 + $0xb98] sm:$0xff]  ;;  %v1782_v48 = vld [vmem:[#allocation13 + $0x4a0] sm:$0xff] }
 0x2b8   :  { %2264 = vmatpush1.msra.mxu1 %v1644_v0  ;;  %2638 = vmatprep.subr.mxu0 %v2009_v53  ;;  %v2004_v0 = vld [vmem:[#allocation13 + $0xb90] sm:$0xff]  ;;  %v1781_v51 = vld [vmem:[#allocation13 + $0x498] sm:$0xff] }
 0x2b9   :  { %2265 = vmatprep.subr.mxu1 %v1643_v3  ;;  %2639 = vmatpush2.msra.mxu0 %v2008_v55  ;;  %v2003_v3 = vld [vmem:[#allocation13 + $0xb88] sm:$0xff]  ;;  %v1780_v53 = vld [vmem:[#allocation13 + $0x490] sm:$0xff] }
 0x2ba   :  { %2266 = vmatpush1.msra.mxu1 %v1642_v5  ;;  %2640 = vmatprep.subr.mxu0 %v2007_v57  ;;  %v2002_v5 = vld [vmem:[#allocation13 + $0xb80] sm:$0xff]  ;;  %v1779_v55 = vld [vmem:[#allocation13 + $0x488] sm:$0xff] }
 0x2bb   :  { %2267 = vmatprep.subr.mxu1 %v1641_v7  ;;  %2641 = vmatpush2.msra.mxu0 %v2006_v59  ;;  %v2001_v7 = vld [vmem:[#allocation13 + $0xb78] sm:$0xff]  ;;  %v1778_v57 = vld [vmem:[#allocation13 + $0x480] sm:$0xff] }
 0x2bc   :  { %2268 = vmatpush1.msra.mxu1 %v1640_v9  ;;  %2642 = vmatprep.subr.mxu0 %v2005_v61  ;;  %v2000_v9 = vld [vmem:[#allocation13 + $0xb70] sm:$0xff]  ;;  %v1777_v59 = vld [vmem:[#allocation13 + $0x478] sm:$0xff] }
 0x2bd   :  { %2269 = vmatprep.subr.mxu1 %v1639_v11  ;;  %2643 = vmatpush2.msra.mxu0 %v2004_v0  ;;  %v1999_v11 = vld [vmem:[#allocation13 + $0xb68] sm:$0xff]  ;;  %v1776_v61 = vld [vmem:[#allocation13 + $0x470] sm:$0xff] }
 0x2be   :  { %2270 = vmatpush1.msra.mxu1 %v1638_v13  ;;  %2644 = vmatprep.subr.mxu0 %v2003_v3  ;;  %v1998_v13 = vld [vmem:[#allocation13 + $0xb60] sm:$0xff]  ;;  %v1775_v0 = vld [vmem:[#allocation13 + $0x468] sm:$0xff] }
 0x2bf   :  { %2271 = vmatprep.subr.mxu1 %v1637_v15  ;;  %2645 = vmatpush2.msra.mxu0 %v2002_v5  ;;  %v1997_v15 = vld [vmem:[#allocation13 + $0xb58] sm:$0xff]  ;;  %v1774_v3 = vld [vmem:[#allocation13 + $0x460] sm:$0xff] }
 0x2c0   :  { %2272 = vmatpush1.msra.mxu1 %v1636_v17  ;;  %2646 = vmatprep.subr.mxu0 %v2001_v7  ;;  %v1996_v17 = vld [vmem:[#allocation13 + $0xb50] sm:$0xff]  ;;  %v1773_v5 = vld [vmem:[#allocation13 + $0x458] sm:$0xff] }
 0x2c1   :  { %2273 = vmatprep.subr.mxu1 %v1635_v19  ;;  %2647 = vmatpush2.msra.mxu0 %v2000_v9  ;;  %v1995_v19 = vld [vmem:[#allocation13 + $0xb48] sm:$0xff]  ;;  %v1772_v7 = vld [vmem:[#allocation13 + $0x450] sm:$0xff] }
 0x2c2   :  { %2274 = vmatpush1.msra.mxu1 %v1634_v21  ;;  %2648 = vmatprep.subr.mxu0 %v1999_v11  ;;  %v1994_v21 = vld [vmem:[#allocation13 + $0xb40] sm:$0xff]  ;;  %v1771_v9 = vld [vmem:[#allocation13 + $0x448] sm:$0xff] }
 0x2c3   :  { %2275 = vmatprep.subr.mxu1 %v1697_v23  ;;  %2649 = vmatpush2.msra.mxu0 %v1998_v13  ;;  %v1993_v23 = vld [vmem:[#allocation13 + $0xb38] sm:$0xff]  ;;  %v1770_v11 = vld [vmem:[#allocation13 + $0x440] sm:$0xff] }
 0x2c4   :  { %2276 = vmatpush2.msra.mxu1 %v1696_v25  ;;  %2650 = vmatprep.subr.mxu0 %v1997_v15  ;;  %v1992_v25 = vld [vmem:[#allocation13 + $0xb30] sm:$0xff]  ;;  %v1769_v13 = vld [vmem:[#allocation13 + $0x438] sm:$0xff] }
 0x2c5   :  { %2277 = vmatprep.subr.mxu1 %v1695_v27  ;;  %2651 = vmatpush2.msra.mxu0 %v1996_v17  ;;  %v1793_v27 = vld [vmem:[#allocation13 + $0x4f8] sm:$0xff]  ;;  %v1768_v15 = vld [vmem:[#allocation13 + $0x430] sm:$0xff]  ;;  %v1767_v17 = vld [vmem:[#allocation13 + $0x428] sm:$0xff] }
 0x2c6   :  { %2278 = vmatpush2.msra.mxu1 %v1694_v29  ;;  %2652 = vmatprep.subr.mxu0 %v1995_v19  ;;  %v1620_v29 = vld [vmem:[#allocation10 + $0x28] sm:$0xff]  ;;  %v1766_v19 = vld [vmem:[#allocation13 + $0x420] sm:$0xff] }
 0x2c7   :  { %2279 = vmatprep.subr.mxu1 %v1693_v31  ;;  %2653 = vmatpush2.msra.mxu0 %v1994_v21  ;;  %v1991_v31 = vld [vmem:[#allocation13 + $0xb28] sm:$0xff]  ;;  %v1765_v21 = vld [vmem:[#allocation13 + $0x418] sm:$0xff] }
 0x2c8   :  { %2280 = vmatpush2.msra.mxu1 %v1692_v33  ;;  %2654 = vmatprep.subr.mxu0 %v1993_v23  ;;  %v1990_v33 = vld [vmem:[#allocation13 + $0xb20] sm:$0xff]  ;;  %v1764_v23 = vld [vmem:[#allocation13 + $0x410] sm:$0xff] }
 0x2c9   :  { %2281 = vmatprep.subr.mxu1 %v1691_v35  ;;  %2655 = vmatpush2.msra.mxu0 %v1992_v25  ;;  %v1989_v35 = vld [vmem:[#allocation13 + $0xb18] sm:$0xff]  ;;  %v1763_v25 = vld [vmem:[#allocation13 + $0x408] sm:$0xff] }
 0x2ca   :  { %2282 = vmatpush2.msra.mxu1 %v1690_v37  ;;  %2656 = vmatprep.subr.mxu0 %v1991_v31  ;;  %v1988_v37 = vld [vmem:[#allocation13 + $0xb10] sm:$0xff] }
 0x2cb   :  { %2283 = vmatprep.subr.mxu1 %v1689_v39  ;;  %2657 = vmatpush2.msra.mxu0 %v1990_v33  ;;  %v1987_v39 = vld [vmem:[#allocation13 + $0xb08] sm:$0xff]  ;;  %v1824_v31 = vld [vmem:[#allocation13 + $0x5f0] sm:$0xff] }
 0x2cc   :  { %2284 = vmatpush2.msra.mxu1 %v1688_v41  ;;  %2658 = vmatprep.subr.mxu0 %v1989_v35  ;;  %v1986_v41 = vld [vmem:[#allocation13 + $0xb00] sm:$0xff]  ;;  %v1823_v33 = vld [vmem:[#allocation13 + $0x5e8] sm:$0xff] }
 0x2cd   :  { %2285 = vmatprep.subr.mxu1 %v1687_v43  ;;  %2659 = vmatpush2.msra.mxu0 %v1988_v37  ;;  %v1626_v43 = vld [vmem:[#allocation10 + $0x58] sm:$0xff]  ;;  %v1822_v35 = vld [vmem:[#allocation13 + $0x5e0] sm:$0xff] }
 0x2ce   :  { %2286 = vmatpush2.msra.mxu1 %v1686_v45  ;;  %2660 = vmatprep.subr.mxu0 %v1987_v39  ;;  %v1625_v45 = vld [vmem:[#allocation10 + $0x50] sm:$0xff]  ;;  %v1821_v37 = vld [vmem:[#allocation13 + $0x5d8] sm:$0xff] }
 0x2cf   :  { %2287 = vmatprep.subr.mxu1 %v1685_v47  ;;  %2661 = vmatpush2.msra.mxu0 %v1986_v41  ;;  %v2113_v47 = vld [vmem:[#allocation13 + $0xef8] sm:$0xff]  ;;  %v1820_v39 = vld [vmem:[#allocation13 + $0x5d0] sm:$0xff]  ;;  %v1819_v41 = vld [vmem:[#allocation13 + $0x5c8] sm:$0xff] }
 0x2d0   :  { %2288 = vmatpush2.msra.mxu1 %v1684_v49  ;;  %2662 = vmatprep.mubr.f32.mxu0 %v1626_v43  ;;  %v2112_v49 = vld [vmem:[#allocation13 + $0xef0] sm:$0xff]  ;;  %v1818_v43 = vld [vmem:[#allocation13 + $0x5c0] sm:$0xff] }
 0x2d1   :  { %2289 = vmatprep.subr.mxu1 %v1683_v52  ;;  %2663 = vmatmul.mubr.f32.vlgmr.msra.gmra.mxu0 %v1625_v45  ;;  %v2111_v52 = vld [vmem:[#allocation13 + $0xee8] sm:$0xff]  ;;  %v1817_v45 = vld [vmem:[#allocation13 + $0x5b8] sm:$0xff] }
 0x2d2   :  { %2290 = vmatpush2.msra.mxu1 %v1682_v54  ;;  %2740 = vmatprep.subr.mxu0 %v2113_v47  ;;  %v2110_v54 = vld [vmem:[#allocation13 + $0xee0] sm:$0xff]  ;;  %v1816_v47 = vld [vmem:[#allocation13 + $0x5b0] sm:$0xff] }
 0x2d3   :  { %2291 = vmatprep.subr.mxu1 %v1681_v56  ;;  %2741 = vmatpush1.msra.mxu0 %v2112_v49  ;;  %v2109_v56 = vld [vmem:[#allocation13 + $0xed8] sm:$0xff]  ;;  %v1815_v49 = vld [vmem:[#allocation13 + $0x5a8] sm:$0xff] }
 0x2d4   :  { %2292 = vmatpush2.msra.mxu1 %v1680_v58  ;;  %2742 = vmatprep.subr.mxu0 %v2111_v52  ;;  %v2108_v58 = vld [vmem:[#allocation13 + $0xed0] sm:$0xff]  ;;  %v1814_v52 = vld [vmem:[#allocation13 + $0x5a0] sm:$0xff] }
 0x2d5   :  { %2293 = vmatprep.subr.mxu1 %v1679_v60  ;;  %2743 = vmatpush1.msra.mxu0 %v2110_v54  ;;  %v2107_v60 = vld [vmem:[#allocation13 + $0xec8] sm:$0xff]  ;;  %v1813_v54 = vld [vmem:[#allocation13 + $0x598] sm:$0xff] }
 0x2d6   :  { %2294 = vmatpush2.msra.mxu1 %v1678_v63  ;;  %2744 = vmatprep.subr.mxu0 %v2109_v56  ;;  %v2106_v63 = vld [vmem:[#allocation13 + $0xec0] sm:$0xff]  ;;  %v1812_v56 = vld [vmem:[#allocation13 + $0x590] sm:$0xff] }
 0x2d7   :  { %2295 = vmatprep.subr.mxu1 %v1677_v2  ;;  %2745 = vmatpush1.msra.mxu0 %v2108_v58  ;;  %v2105_v2 = vld [vmem:[#allocation13 + $0xeb8] sm:$0xff]  ;;  %v1811_v58 = vld [vmem:[#allocation13 + $0x588] sm:$0xff] }
 0x2d8   :  { %2296 = vmatpush2.msra.mxu1 %v1676_v4  ;;  %2746 = vmatprep.subr.mxu0 %v2107_v60  ;;  %v2104_v4 = vld [vmem:[#allocation13 + $0xeb0] sm:$0xff]  ;;  %v1810_v60 = vld [vmem:[#allocation13 + $0x580] sm:$0xff] }
 0x2d9   :  { %2297 = vmatprep.subr.mxu1 %v1675_v6  ;;  %2747 = vmatpush1.msra.mxu0 %v2106_v63  ;;  %v2103_v6 = vld [vmem:[#allocation13 + $0xea8] sm:$0xff]  ;;  %v1809_v63 = vld [vmem:[#allocation13 + $0x578] sm:$0xff] }
 0x2da   :  { %2298 = vmatpush2.msra.mxu1 %v1674_v8  ;;  %2748 = vmatprep.subr.mxu0 %v2105_v2  ;;  %v2102_v8 = vld [vmem:[#allocation13 + $0xea0] sm:$0xff]  ;;  %v1808_v2 = vld [vmem:[#allocation13 + $0x570] sm:$0xff] }
 0x2db   :  { %2299 = vmatprep.subr.mxu1 %v1673_v10  ;;  %2749 = vmatpush1.msra.mxu0 %v2104_v4  ;;  %v2101_v10 = vld [vmem:[#allocation13 + $0xe98] sm:$0xff]  ;;  %v1807_v4 = vld [vmem:[#allocation13 + $0x568] sm:$0xff] }
 0x2dc   :  { %2300 = vmatpush2.msra.mxu1 %v1672_v12  ;;  %2750 = vmatprep.subr.mxu0 %v2103_v6  ;;  %v2100_v12 = vld [vmem:[#allocation13 + $0xe90] sm:$0xff]  ;;  %v1806_v6 = vld [vmem:[#allocation13 + $0x560] sm:$0xff] }
 0x2dd   :  { %2301 = vmatprep.subr.mxu1 %v1671_v14  ;;  %2751 = vmatpush1.msra.mxu0 %v2102_v8  ;;  %v2099_v14 = vld [vmem:[#allocation13 + $0xe88] sm:$0xff]  ;;  %v1805_v8 = vld [vmem:[#allocation13 + $0x558] sm:$0xff] }
 0x2de   :  { %2302 = vmatpush2.msra.mxu1 %v1670_v16  ;;  %2752 = vmatprep.subr.mxu0 %v2101_v10  ;;  %v2098_v16 = vld [vmem:[#allocation13 + $0xe80] sm:$0xff]  ;;  %v1804_v10 = vld [vmem:[#allocation13 + $0x550] sm:$0xff] }
 0x2df   :  { %2303 = vmatprep.subr.mxu1 %v1669_v18  ;;  %2753 = vmatpush1.msra.mxu0 %v2100_v12  ;;  %v2097_v18 = vld [vmem:[#allocation13 + $0xe78] sm:$0xff]  ;;  %v1803_v12 = vld [vmem:[#allocation13 + $0x548] sm:$0xff] }
 0x2e0   :  { %2304 = vmatpush2.msra.mxu1 %v1668_v20  ;;  %2754 = vmatprep.subr.mxu0 %v2099_v14  ;;  %v2096_v20 = vld [vmem:[#allocation13 + $0xe70] sm:$0xff]  ;;  %v1802_v14 = vld [vmem:[#allocation13 + $0x540] sm:$0xff] }
 0x2e1   :  { %2305 = vmatprep.subr.mxu1 %v1667_v22  ;;  %2755 = vmatpush1.msra.mxu0 %v2098_v16  ;;  %v2095_v22 = vld [vmem:[#allocation13 + $0xe68] sm:$0xff]  ;;  %v1801_v16 = vld [vmem:[#allocation13 + $0x538] sm:$0xff] }
 0x2e2   :  { %2306 = vmatpush2.msra.mxu1 %v1666_v24  ;;  %2756 = vmatprep.subr.mxu0 %v2097_v18  ;;  %v2094_v24 = vld [vmem:[#allocation13 + $0xe60] sm:$0xff]  ;;  %v1800_v18 = vld [vmem:[#allocation13 + $0x530] sm:$0xff] }
 0x2e3   :  { %2308 = vmatmul.mubr.f32.vlgmr.msra.gmra.mxu1 %v1615_v26  ;;  %2385 = vmatprep.subr.mxu1 %v1793_v27  ;;  %v2093_v26 = vld [vmem:[#allocation13 + $0xe58] sm:$0xff]  ;;  %v1762_v27 = vld [vmem:[#allocation13 + $0x400] sm:$0xff] }
 0x2e4   :  { %2386 = vmatpush1.msra.mxu1 %v1792_v28  ;;  %2449 = vmatprep.mubr.f32.mxu1 %v1620_v29  ;;  %v2092_v28 = vld [vmem:[#allocation13 + $0xe50] sm:$0xff]  ;;  %v1825_v29 = vld [vmem:[#allocation13 + $0x5f8] sm:$0xff] }
 0x2e5   :  { %2387 = vmatprep.subr.mxu1 %v1791_v30  ;;  %2757 = vmatpush1.msra.mxu0 %v2096_v20  ;;  %v2091_v30 = vld [vmem:[#allocation13 + $0xe48] sm:$0xff] }
 0x2e6   :  { %2388 = vmatpush1.msra.mxu1 %v1790_v32  ;;  %2758 = vmatprep.subr.mxu0 %v2095_v22  ;;  %v2090_v32 = vld [vmem:[#allocation13 + $0xe40] sm:$0xff]  ;;  %v1799_v20 = vld [vmem:[#allocation13 + $0x528] sm:$0xff] }
 0x2e7   :  { %2389 = vmatprep.subr.mxu1 %v1789_v34  ;;  %2759 = vmatpush1.msra.mxu0 %v2094_v24  ;;  %v2089_v34 = vld [vmem:[#allocation13 + $0xe38] sm:$0xff]  ;;  %v1798_v22 = vld [vmem:[#allocation13 + $0x520] sm:$0xff] }
 0x2e8   :  { %2390 = vmatpush1.msra.mxu1 %v1788_v36  ;;  %2760 = vmatprep.subr.mxu0 %v2093_v26  ;;  %v2088_v36 = vld [vmem:[#allocation13 + $0xe30] sm:$0xff]  ;;  %v1797_v24 = vld [vmem:[#allocation13 + $0x518] sm:$0xff] }
 0x2e9   :  { %2391 = vmatprep.subr.mxu1 %v1787_v38  ;;  %2761 = vmatpush1.msra.mxu0 %v2092_v28  ;;  %v2087_v38 = vld [vmem:[#allocation13 + $0xe28] sm:$0xff]  ;;  %v1796_v26 = vld [vmem:[#allocation13 + $0x510] sm:$0xff] }
 0x2ea   :  { %2392 = vmatpush1.msra.mxu1 %v1786_v40  ;;  %2762 = vmatprep.subr.mxu0 %v2091_v30  ;;  %v2086_v40 = vld [vmem:[#allocation13 + $0xe20] sm:$0xff]  ;;  %v1795_v28 = vld [vmem:[#allocation13 + $0x508] sm:$0xff] }
 0x2eb   :  { %2393 = vmatprep.subr.mxu1 %v1785_v42  ;;  %2763 = vmatpush1.msra.mxu0 %v2090_v32  ;;  %v2085_v42 = vld [vmem:[#allocation13 + $0xe18] sm:$0xff]  ;;  %v1794_v30 = vld [vmem:[#allocation13 + $0x500] sm:$0xff] }
 0x2ec   :  { %2394 = vmatpush1.msra.mxu1 %v1784_v44  ;;  %2764 = vmatprep.subr.mxu0 %v2089_v34  ;;  %v2084_v44 = vld [vmem:[#allocation13 + $0xe10] sm:$0xff]  ;;  %v1619_v32 = vld [vmem:[#allocation10 + $0x20] sm:$0xff] }
 0x2ed   :  { %2395 = vmatprep.subr.mxu1 %v1783_v46  ;;  %2765 = vmatpush1.msra.mxu0 %v2088_v36  ;;  %v2083_v46 = vld [vmem:[#allocation13 + $0xe08] sm:$0xff]  ;;  %v1920_v34 = vld [vmem:[#allocation13 + $0x8f0] sm:$0xff] }
 0x2ee   :  { %2396 = vmatpush1.msra.mxu1 %v1782_v48  ;;  %2766 = vmatprep.subr.mxu0 %v2087_v38  ;;  %v2082_v48 = vld [vmem:[#allocation13 + $0xe00] sm:$0xff]  ;;  %v1919_v36 = vld [vmem:[#allocation13 + $0x8e8] sm:$0xff] }
 0x2ef   :  { %2397 = vmatprep.subr.mxu1 %v1781_v51  ;;  %2767 = vmatpush1.msra.mxu0 %v2086_v40  ;;  %v2145_v51 = vld [vmem:[#allocation13 + $0xff8] sm:$0xff]  ;;  %v1918_v38 = vld [vmem:[#allocation13 + $0x8e0] sm:$0xff] }
 0x2f0   :  { %2398 = vmatpush1.msra.mxu1 %v1780_v53  ;;  %2768 = vmatprep.subr.mxu0 %v2085_v42  ;;  %v2144_v53 = vld [vmem:[#allocation13 + $0xff0] sm:$0xff]  ;;  %v1917_v40 = vld [vmem:[#allocation13 + $0x8d8] sm:$0xff] }
 0x2f1   :  { %2399 = vmatprep.subr.mxu1 %v1779_v55  ;;  %2769 = vmatpush1.msra.mxu0 %v2084_v44  ;;  %v2143_v55 = vld [vmem:[#allocation13 + $0xfe8] sm:$0xff]  ;;  %v1916_v42 = vld [vmem:[#allocation13 + $0x8d0] sm:$0xff] }
 0x2f2   :  { %2400 = vmatpush1.msra.mxu1 %v1778_v57  ;;  %2770 = vmatprep.subr.mxu0 %v2083_v46  ;;  %v2142_v57 = vld [vmem:[#allocation13 + $0xfe0] sm:$0xff]  ;;  %v1915_v44 = vld [vmem:[#allocation13 + $0x8c8] sm:$0xff] }
 0x2f3   :  { %2401 = vmatprep.subr.mxu1 %v1777_v59  ;;  %2771 = vmatpush1.msra.mxu0 %v2082_v48  ;;  %v2141_v59 = vld [vmem:[#allocation13 + $0xfd8] sm:$0xff]  ;;  %v1914_v46 = vld [vmem:[#allocation13 + $0x8c0] sm:$0xff] }
 0x2f4   :  { %2402 = vmatpush1.msra.mxu1 %v1776_v61  ;;  %2772 = vmatprep.subr.mxu0 %v2145_v51  ;;  %v2140_v61 = vld [vmem:[#allocation13 + $0xfd0] sm:$0xff]  ;;  %v1913_v48 = vld [vmem:[#allocation13 + $0x8b8] sm:$0xff] }
 0x2f5   :  { %2403 = vmatprep.subr.mxu1 %v1775_v0  ;;  %2773 = vmatpush2.msra.mxu0 %v2144_v53  ;;  %v2139_v0 = vld [vmem:[#allocation13 + $0xfc8] sm:$0xff]  ;;  %v1912_v51 = vld [vmem:[#allocation13 + $0x8b0] sm:$0xff] }
 0x2f6   :  { %2404 = vmatpush1.msra.mxu1 %v1774_v3  ;;  %2774 = vmatprep.subr.mxu0 %v2143_v55  ;;  %v2138_v3 = vld [vmem:[#allocation13 + $0xfc0] sm:$0xff]  ;;  %v1911_v53 = vld [vmem:[#allocation13 + $0x8a8] sm:$0xff] }
 0x2f7   :  { %2405 = vmatprep.subr.mxu1 %v1773_v5  ;;  %2775 = vmatpush2.msra.mxu0 %v2142_v57  ;;  %v2137_v5 = vld [vmem:[#allocation13 + $0xfb8] sm:$0xff]  ;;  %v1910_v55 = vld [vmem:[#allocation13 + $0x8a0] sm:$0xff] }
 0x2f8   :  { %2406 = vmatpush1.msra.mxu1 %v1772_v7  ;;  %2776 = vmatprep.subr.mxu0 %v2141_v59  ;;  %v2136_v7 = vld [vmem:[#allocation13 + $0xfb0] sm:$0xff]  ;;  %v1909_v57 = vld [vmem:[#allocation13 + $0x898] sm:$0xff] }
 0x2f9   :  { %2407 = vmatprep.subr.mxu1 %v1771_v9  ;;  %2777 = vmatpush2.msra.mxu0 %v2140_v61  ;;  %v2135_v9 = vld [vmem:[#allocation13 + $0xfa8] sm:$0xff]  ;;  %v1908_v59 = vld [vmem:[#allocation13 + $0x890] sm:$0xff] }
 0x2fa   :  { %2408 = vmatpush1.msra.mxu1 %v1770_v11  ;;  %2778 = vmatprep.subr.mxu0 %v2139_v0  ;;  %v2134_v11 = vld [vmem:[#allocation13 + $0xfa0] sm:$0xff]  ;;  %v1907_v61 = vld [vmem:[#allocation13 + $0x888] sm:$0xff]  ;;  %v1905_v0 = vld [vmem:[#allocation13 + $0x878] sm:$0xff] }
 0x2fb   :  { %2409 = vmatprep.subr.mxu1 %v1769_v13  ;;  %2779 = vmatpush2.msra.mxu0 %v2138_v3  ;;  %v2133_v13 = vld [vmem:[#allocation13 + $0xf98] sm:$0xff]  ;;  %v1903_v3 = vld [vmem:[#allocation13 + $0x868] sm:$0xff] }
 0x2fc   :  { %2410 = vmatpush1.msra.mxu1 %v1768_v15  ;;  %2780 = vmatprep.subr.mxu0 %v2137_v5  ;;  %v2132_v15 = vld [vmem:[#allocation13 + $0xf90] sm:$0xff]  ;;  %v1901_v5 = vld [vmem:[#allocation13 + $0x858] sm:$0xff] }
 0x2fd   :  { %2411 = vmatprep.subr.mxu1 %v1767_v17  ;;  %2781 = vmatpush2.msra.mxu0 %v2136_v7  ;;  %v2131_v17 = vld [vmem:[#allocation13 + $0xf88] sm:$0xff] }
 0x2fe   :  { %2412 = vmatpush1.msra.mxu1 %v1766_v19  ;;  %2782 = vmatprep.subr.mxu0 %v2135_v9  ;;  %v2130_v19 = vld [vmem:[#allocation13 + $0xf80] sm:$0xff]  ;;  %v1899_v7 = vld [vmem:[#allocation13 + $0x848] sm:$0xff]  ;;  %v1897_v9 = vld [vmem:[#allocation13 + $0x838] sm:$0xff] }
 0x2ff   :  { %2413 = vmatprep.subr.mxu1 %v1765_v21  ;;  %2783 = vmatpush2.msra.mxu0 %v2134_v11  ;;  %v2129_v21 = vld [vmem:[#allocation13 + $0xf78] sm:$0xff]  ;;  %v1895_v11 = vld [vmem:[#allocation13 + $0x828] sm:$0xff] }
 0x300   :  { %2414 = vmatpush1.msra.mxu1 %v1764_v23  ;;  %2784 = vmatprep.subr.mxu0 %v2133_v13  ;;  %v2128_v23 = vld [vmem:[#allocation13 + $0xf70] sm:$0xff]  ;;  %v1893_v13 = vld [vmem:[#allocation13 + $0x818] sm:$0xff] }
 0x301   :  { %2415 = vmatprep.subr.mxu1 %v1763_v25  ;;  %2785 = vmatpush2.msra.mxu0 %v2132_v15  ;;  %v2127_v25 = vld [vmem:[#allocation13 + $0xf68] sm:$0xff] }
 0x302   :  { %2416 = vmatpush1.msra.mxu1 %v1762_v27  ;;  %2786 = vmatprep.subr.mxu0 %v2131_v17  ;;  %v2126_v27 = vld [vmem:[#allocation13 + $0xf60] sm:$0xff]  ;;  %v1891_v15 = vld [vmem:[#allocation13 + $0x808] sm:$0xff]  ;;  %v1953_v17 = vld [vmem:[#allocation13 + $0x9f8] sm:$0xff] }
 0x303   :  { %2417 = vmatprep.subr.mxu1 %v1825_v29  ;;  %2787 = vmatpush2.msra.mxu0 %v2130_v19  ;;  %v2125_v29 = vld [vmem:[#allocation13 + $0xf58] sm:$0xff]  ;;  %v1951_v19 = vld [vmem:[#allocation13 + $0x9e8] sm:$0xff] }
 0x304   :  { %2418 = vmatpush2.msra.mxu1 %v1824_v31  ;;  %2788 = vmatprep.subr.mxu0 %v2129_v21  ;;  %v2124_v31 = vld [vmem:[#allocation13 + $0xf50] sm:$0xff]  ;;  %v1949_v21 = vld [vmem:[#allocation13 + $0x9d8] sm:$0xff] }
 0x305   :  { %2419 = vmatprep.subr.mxu1 %v1823_v33  ;;  %2789 = vmatpush2.msra.mxu0 %v2128_v23  ;;  %v1921_v33 = vld [vmem:[#allocation13 + $0x8f8] sm:$0xff]  ;;  %v1947_v23 = vld [vmem:[#allocation13 + $0x9c8] sm:$0xff] }
 0x306   :  { %2420 = vmatpush2.msra.mxu1 %v1822_v35  ;;  %2790 = vmatprep.subr.mxu0 %v2127_v25  ;;  %v1624_v35 = vld [vmem:[#allocation10 + $0x48] sm:$0xff]  ;;  %v1945_v25 = vld [vmem:[#allocation13 + $0x9b8] sm:$0xff] }
 0x307   :  { %2421 = vmatprep.subr.mxu1 %v1821_v37  ;;  %2791 = vmatpush2.msra.mxu0 %v2126_v27  ;;  %v2123_v37 = vld [vmem:[#allocation13 + $0xf48] sm:$0xff] }
 0x308   :  { %2422 = vmatpush2.msra.mxu1 %v1820_v39  ;;  %2792 = vmatprep.subr.mxu0 %v2125_v29  ;;  %v2122_v39 = vld [vmem:[#allocation13 + $0xf40] sm:$0xff]  ;;  %v1943_v27 = vld [vmem:[#allocation13 + $0x9a8] sm:$0xff]  ;;  %v1941_v29 = vld [vmem:[#allocation13 + $0x998] sm:$0xff] }
 0x309   :  { %2423 = vmatprep.subr.mxu1 %v1819_v41  ;;  %2793 = vmatpush2.msra.mxu0 %v2124_v31  ;;  %v2121_v41 = vld [vmem:[#allocation13 + $0xf38] sm:$0xff]  ;;  %v1939_v31 = vld [vmem:[#allocation13 + $0x988] sm:$0xff] }
 0x30a   :  { %2424 = vmatpush2.msra.mxu1 %v1818_v43  ;;  %2794 = vmatprep.subr.mxu0 %v2123_v37  ;;  %v2120_v43 = vld [vmem:[#allocation13 + $0xf30] sm:$0xff]  ;;  %v1933_v37 = vld [vmem:[#allocation13 + $0x958] sm:$0xff] }
 0x30b   :  { %2425 = vmatprep.subr.mxu1 %v1817_v45  ;;  %2795 = vmatpush2.msra.mxu0 %v2122_v39  ;;  %v2119_v45 = vld [vmem:[#allocation13 + $0xf28] sm:$0xff] }
 0x30c   :  { %2426 = vmatpush2.msra.mxu1 %v1816_v47  ;;  %2796 = vmatprep.subr.mxu0 %v2121_v41  ;;  %v2118_v47 = vld [vmem:[#allocation13 + $0xf20] sm:$0xff]  ;;  %v1931_v39 = vld [vmem:[#allocation13 + $0x948] sm:$0xff] }
 0x30d   :  { %2427 = vmatprep.subr.mxu1 %v1815_v49  ;;  %2797 = vmatpush2.msra.mxu0 %v2120_v43  ;;  %v2117_v49 = vld [vmem:[#allocation13 + $0xf18] sm:$0xff]  ;;  %v1930_v41 = vld [vmem:[#allocation13 + $0x940] sm:$0xff] }
 0x30e   :  { %2428 = vmatpush2.msra.mxu1 %v1814_v52  ;;  %2798 = vmatprep.subr.mxu0 %v2119_v45  ;;  %v2116_v52 = vld [vmem:[#allocation13 + $0xf10] sm:$0xff]  ;;  %v1929_v43 = vld [vmem:[#allocation13 + $0x938] sm:$0xff] }
 0x30f   :  { %2429 = vmatprep.subr.mxu1 %v1813_v54  ;;  %2799 = vmatpush2.msra.mxu0 %v2118_v47  ;;  %v2115_v54 = vld [vmem:[#allocation13 + $0xf08] sm:$0xff]  ;;  %v1928_v45 = vld [vmem:[#allocation13 + $0x930] sm:$0xff] }
 0x310   :  { %2430 = vmatpush2.msra.mxu1 %v1812_v56  ;;  %2800 = vmatprep.subr.mxu0 %v2117_v49  ;;  %v2114_v56 = vld [vmem:[#allocation13 + $0xf00] sm:$0xff]  ;;  %v1927_v47 = vld [vmem:[#allocation13 + $0x928] sm:$0xff] }
 0x311   :  { %2431 = vmatprep.subr.mxu1 %v1811_v58  ;;  %2801 = vmatpush2.msra.mxu0 %v2116_v52  ;;  %v1630_v58 = vld [vmem:[#allocation10 + $0x78] sm:$0xff]  ;;  %v1926_v49 = vld [vmem:[#allocation13 + $0x920] sm:$0xff] }
 0x312   :  { %2432 = vmatpush2.msra.mxu1 %v1810_v60  ;;  %2802 = vmatprep.subr.mxu0 %v2115_v54  ;;  %v1629_v60 = vld [vmem:[#allocation10 + $0x70] sm:$0xff]  ;;  %v1925_v52 = vld [vmem:[#allocation13 + $0x918] sm:$0xff] }
 0x313   :  { %2433 = vmatprep.subr.mxu1 %v1809_v63  ;;  %2803 = vmatpush2.msra.mxu0 %v2114_v56  ;;  %v1906_v63 = vld [vmem:[#allocation13 + $0x880] sm:$0xff]  ;;  %v1924_v54 = vld [vmem:[#allocation13 + $0x910] sm:$0xff]  ;;  %v1923_v56 = vld [vmem:[#allocation13 + $0x908] sm:$0xff] }
 0x314   :  { %2434 = vmatpush2.msra.mxu1 %v1808_v2  ;;  %2804 = vmatprep.mubr.f32.mxu0 %v1630_v58  ;;  %v1904_v2 = vld [vmem:[#allocation13 + $0x870] sm:$0xff]  ;;  %v1922_v58 = vld [vmem:[#allocation13 + $0x900] sm:$0xff] }
 0x315   :  { %2435 = vmatprep.subr.mxu1 %v1807_v4  ;;  %2805 = vmatmul.mubr.f32.vlgmr.msra.gmra.mxu0 %v1629_v60  ;;  %v1902_v4 = vld [vmem:[#allocation13 + $0x860] sm:$0xff] }
 0x316   :  { %2436 = vmatpush2.msra.mxu1 %v1806_v6  ;;  %2946 = vmatprep.mubr.f32.mxu0 %v4045_v50  ;;  %v1900_v6 = vld [vmem:[#allocation13 + $0x850] sm:$0xff]  ;;  %v1623_v60 = vld [vmem:[#allocation10 + $0x40] sm:$0xff] }
 0x317   :  { %2437 = vmatprep.subr.mxu1 %v1805_v8  ;;  %v1898_v8 = vld [vmem:[#allocation13 + $0x840] sm:$0xff] }
 0x318   :  { %2438 = vmatpush2.msra.mxu1 %v1804_v10  ;;  %v1896_v10 = vld [vmem:[#allocation13 + $0x830] sm:$0xff] }
 0x319   :  { %2439 = vmatprep.subr.mxu1 %v1803_v12  ;;  %v1894_v12 = vld [vmem:[#allocation13 + $0x820] sm:$0xff] }
 0x31a   :  { %2440 = vmatpush2.msra.mxu1 %v1802_v14  ;;  %v1892_v14 = vld [vmem:[#allocation13 + $0x810] sm:$0xff] }
 0x31b   :  { %2441 = vmatprep.subr.mxu1 %v1801_v16  ;;  %v1890_v16 = vld [vmem:[#allocation13 + $0x800] sm:$0xff] }
 0x31c   :  { %2442 = vmatpush2.msra.mxu1 %v1800_v18  ;;  %v1952_v18 = vld [vmem:[#allocation13 + $0x9f0] sm:$0xff] }
 0x31d   :  { %2443 = vmatprep.subr.mxu1 %v1799_v20  ;;  %v1950_v20 = vld [vmem:[#allocation13 + $0x9e0] sm:$0xff] }
 0x31e   :  { %2444 = vmatpush2.msra.mxu1 %v1798_v22  ;;  %v1948_v22 = vld [vmem:[#allocation13 + $0x9d0] sm:$0xff] }
 0x31f   :  { %2445 = vmatprep.subr.mxu1 %v1797_v24  ;;  %v1946_v24 = vld [vmem:[#allocation13 + $0x9c0] sm:$0xff] }
 0x320   :  { %2446 = vmatpush2.msra.mxu1 %v1796_v26  ;;  %v1944_v26 = vld [vmem:[#allocation13 + $0x9b0] sm:$0xff] }
 0x321   :  { %2447 = vmatprep.subr.mxu1 %v1795_v28  ;;  %v1942_v28 = vld [vmem:[#allocation13 + $0x9a0] sm:$0xff] }
 0x322   :  { %2448 = vmatpush2.msra.mxu1 %v1794_v30  ;;  %v1940_v30 = vld [vmem:[#allocation13 + $0x990] sm:$0xff] }
 0x323   :  { %2450 = vmatmul.mubr.f32.vlgmr.msra.gmra.mxu1 %v1619_v32  ;;  %2527 = vmatprep.subr.mxu1 %v1921_v33  ;;  %v1938_v32 = vld [vmem:[#allocation13 + $0x980] sm:$0xff]  ;;  %v1937_v33 = vld [vmem:[#allocation13 + $0x978] sm:$0xff] }
 0x324   :  { %2528 = vmatpush1.msra.mxu1 %v1920_v34  ;;  %2591 = vmatprep.mubr.f32.mxu1 %v1624_v35  ;;  %v1936_v34 = vld [vmem:[#allocation13 + $0x970] sm:$0xff]  ;;  %v1935_v35 = vld [vmem:[#allocation13 + $0x968] sm:$0xff] }
 0x325   :  { %2529 = vmatprep.subr.mxu1 %v1919_v36  ;;  %v1934_v36 = vld [vmem:[#allocation13 + $0x960] sm:$0xff] }
 0x326   :  { %2530 = vmatpush1.msra.mxu1 %v1918_v38  ;;  %v1932_v38 = vld [vmem:[#allocation13 + $0x950] sm:$0xff] }
 0x327   :  { %2531 = vmatprep.subr.mxu1 %v1917_v40  ;;  %v2221_v40 = vld [vmem:[#allocation13 + $0x1258] sm:$0x3] }
 0x328   :  { %2532 = vmatpush1.msra.mxu1 %v1916_v42  ;;  %3626 = vmatprep.subr.msk.mxu0 %vm816_vm0, %v2221_v40  ;;  %v2220_v42 = vld [vmem:[#allocation13 + $0x1250] sm:$0x3]  ;;  %v2018_v40 = vld [vmem:[#allocation13 + $0xc00] sm:$0xff] }
 0x329   :  { %2533 = vmatprep.subr.mxu1 %v1915_v44  ;;  %3627 = vmatpush1.msk.msra.mxu0 %vm816_vm0, %v2220_v42  ;;  %v2219_v44 = vld [vmem:[#allocation13 + $0x1248] sm:$0xff]  ;;  %v2080_v42 = vld [vmem:[#allocation13 + $0xdf0] sm:$0xff] }
 0x32a   :  { %2534 = vmatpush1.msra.mxu1 %v1914_v46  ;;  %2904 = vmatprep.subr.mxu0 %v2219_v44  ;;  %v2218_v46 = vld [vmem:[#allocation13 + $0x1240] sm:$0xff] }
 0x32b   :  { %2535 = vmatprep.subr.mxu1 %v1913_v48  ;;  %2905 = vmatpush1.msra.mxu0 %v2218_v46  ;;  %v2217_v48 = vld [vmem:[#allocation13 + $0x1238] sm:$0xff]  ;;  %v2078_v44 = vld [vmem:[#allocation13 + $0xde0] sm:$0xff]  ;;  %v2076_v46 = vld [vmem:[#allocation13 + $0xdd0] sm:$0xff] }
 0x32c   :  { %2536 = vmatpush1.msra.mxu1 %v1912_v51  ;;  %2906 = vmatprep.subr.mxu0 %v2217_v48  ;;  %v2216_v51 = vld [vmem:[#allocation13 + $0x1230] sm:$0xff]  ;;  %v2074_v48 = vld [vmem:[#allocation13 + $0xdc0] sm:$0xff] }
 0x32d   :  { %2537 = vmatprep.subr.mxu1 %v1911_v53  ;;  %2907 = vmatpush1.msra.mxu0 %v2216_v51  ;;  %v2215_v53 = vld [vmem:[#allocation13 + $0x1228] sm:$0xff]  ;;  %v2072_v51 = vld [vmem:[#allocation13 + $0xdb0] sm:$0xff] }
 0x32e   :  { %2538 = vmatpush1.msra.mxu1 %v1910_v55  ;;  %2908 = vmatprep.subr.mxu0 %v2215_v53  ;;  %v2214_v55 = vld [vmem:[#allocation13 + $0x1220] sm:$0xff] }
 0x32f   :  { %2539 = vmatprep.subr.mxu1 %v1909_v57  ;;  %2909 = vmatpush1.msra.mxu0 %v2214_v55  ;;  %v2213_v57 = vld [vmem:[#allocation13 + $0x1218] sm:$0xff]  ;;  %v2070_v53 = vld [vmem:[#allocation13 + $0xda0] sm:$0xff]  ;;  %v2068_v55 = vld [vmem:[#allocation13 + $0xd90] sm:$0xff] }
 0x330   :  { %2540 = vmatpush1.msra.mxu1 %v1908_v59  ;;  %2910 = vmatprep.subr.mxu0 %v2213_v57  ;;  %v2212_v59 = vld [vmem:[#allocation13 + $0x1210] sm:$0xff]  ;;  %v2066_v57 = vld [vmem:[#allocation13 + $0xd80] sm:$0xff] }
 0x331   :  { %2541 = vmatprep.subr.mxu1 %v1907_v61  ;;  %v2049_v61 = vld [vmem:[#allocation13 + $0xcf8] sm:$0xff]  ;;  %2911 = vmatpush1.msra.mxu0 %v2212_v59  ;;  %v2064_v59 = vld [vmem:[#allocation13 + $0xd70] sm:$0xff] }
 0x332   :  { %2542 = vmatpush1.msra.mxu1 %v1906_v63  ;;  %v2211_v63 = vld [vmem:[#allocation13 + $0x1208] sm:$0xff] }
 0x333   :  { %2543 = vmatprep.subr.mxu1 %v1905_v0  ;;  %v2048_v0 = vld [vmem:[#allocation13 + $0xcf0] sm:$0xff]  ;;  %2912 = vmatprep.subr.mxu0 %v2211_v63  ;;  %v2061_v63 = vld [vmem:[#allocation13 + $0xd58] sm:$0xff] }
 0x334   :  { %2544 = vmatpush1.msra.mxu1 %v1904_v2  ;;  %v1628_v2 = vld [vmem:[#allocation10 + $0x68] sm:$0xff] }
 0x335   :  { %2545 = vmatprep.subr.mxu1 %v1903_v3  ;;  %v2210_v3 = vld [vmem:[#allocation13 + $0x1200] sm:$0xff] }
 0x336   :  { %2546 = vmatpush1.msra.mxu1 %v1902_v4  ;;  %v2047_v4 = vld [vmem:[#allocation13 + $0xce8] sm:$0xff]  ;;  %2913 = vmatpush1.msra.mxu0 %v2210_v3  ;;  %v2058_v3 = vld [vmem:[#allocation13 + $0xd40] sm:$0xff] }
 0x337   :  { %2547 = vmatprep.subr.mxu1 %v1901_v5  ;;  %v1633_v5 = vld [vmem:[#allocation10 + $0x90] sm:$0xff] }
 0x338   :  { %2548 = vmatpush1.msra.mxu1 %v1900_v6  ;;  %3628 = vmatmul.mubr.msk.f32.vlgmr.msra.gmra.mxu0 %vm812_vm1, %v1633_v5  ;;  %v2056_v5 = vld [vmem:[#allocation13 + $0xd30] sm:$0xff] }
 0x339   :  { %2549 = vmatprep.subr.mxu1 %v1899_v7  ;;  %v2046_v7 = vld [vmem:[#allocation13 + $0xce0] sm:$0xff]  ;;  %3021 = vmatprep.mubr.f32.mxu0 %v4045_v50 }
 0x33a   :  { %2550 = vmatpush1.msra.mxu1 %v1898_v8 }
 0x33b   :  { %2551 = vmatprep.subr.mxu1 %v1897_v9  ;;  %v2045_v9 = vld [vmem:[#allocation13 + $0xcd8] sm:$0xff] }
 0x33c   :  { %2552 = vmatpush1.msra.mxu1 %v1896_v10 }
 0x33d   :  { %2553 = vmatprep.subr.mxu1 %v1895_v11  ;;  %v2044_v11 = vld [vmem:[#allocation13 + $0xcd0] sm:$0xff] }
 0x33e   :  { %2554 = vmatpush1.msra.mxu1 %v1894_v12 }
 0x33f   :  { %2555 = vmatprep.subr.mxu1 %v1893_v13  ;;  %v2043_v13 = vld [vmem:[#allocation13 + $0xcc8] sm:$0xff] }
 0x340   :  { %2556 = vmatpush1.msra.mxu1 %v1892_v14 }
 0x341   :  { %2557 = vmatprep.subr.mxu1 %v1891_v15  ;;  %v2042_v15 = vld [vmem:[#allocation13 + $0xcc0] sm:$0xff] }
 0x342   :  { %2558 = vmatpush1.msra.mxu1 %v1890_v16  ;;  %v2041_v16 = vld [vmem:[#allocation13 + $0xcb8] sm:$0xff] }
 0x343   :  { %2559 = vmatprep.subr.mxu1 %v1953_v17 }
 0x344   :  { %2560 = vmatpush2.msra.mxu1 %v1952_v18  ;;  %v2040_v18 = vld [vmem:[#allocation13 + $0xcb0] sm:$0xff] }
 0x345   :  { %2561 = vmatprep.subr.mxu1 %v1951_v19  ;;  %v2039_v19 = vld [vmem:[#allocation13 + $0xca8] sm:$0xff] }
 0x346   :  { %2562 = vmatpush2.msra.mxu1 %v1950_v20  ;;  %v2038_v20 = vld [vmem:[#allocation13 + $0xca0] sm:$0xff] }
 0x347   :  { %2563 = vmatprep.subr.mxu1 %v1949_v21  ;;  %v2037_v21 = vld [vmem:[#allocation13 + $0xc98] sm:$0xff] }
 0x348   :  { %2564 = vmatpush2.msra.mxu1 %v1948_v22  ;;  %v2036_v22 = vld [vmem:[#allocation13 + $0xc90] sm:$0xff] }
 0x349   :  { %2565 = vmatprep.subr.mxu1 %v1947_v23  ;;  %v2035_v23 = vld [vmem:[#allocation13 + $0xc88] sm:$0xff] }
 0x34a   :  { %2566 = vmatpush2.msra.mxu1 %v1946_v24  ;;  %v2034_v24 = vld [vmem:[#allocation13 + $0xc80] sm:$0xff] }
 0x34b   :  { %2567 = vmatprep.subr.mxu1 %v1945_v25  ;;  %v2033_v25 = vld [vmem:[#allocation13 + $0xc78] sm:$0xff] }
 0x34c   :  { %2568 = vmatpush2.msra.mxu1 %v1944_v26  ;;  %v2032_v26 = vld [vmem:[#allocation13 + $0xc70] sm:$0xff] }
 0x34d   :  { %2569 = vmatprep.subr.mxu1 %v1943_v27  ;;  %v2031_v27 = vld [vmem:[#allocation13 + $0xc68] sm:$0xff] }
 0x34e   :  { %2570 = vmatpush2.msra.mxu1 %v1942_v28  ;;  %v2030_v28 = vld [vmem:[#allocation13 + $0xc60] sm:$0xff] }
 0x34f   :  { %2571 = vmatprep.subr.mxu1 %v1941_v29  ;;  %v2029_v29 = vld [vmem:[#allocation13 + $0xc58] sm:$0xff] }
 0x350   :  { %2572 = vmatpush2.msra.mxu1 %v1940_v30  ;;  %v2028_v30 = vld [vmem:[#allocation13 + $0xc50] sm:$0xff] }
 0x351   :  { %2573 = vmatprep.subr.mxu1 %v1939_v31  ;;  %v2027_v31 = vld [vmem:[#allocation13 + $0xc48] sm:$0xff] }
 0x352   :  { %2574 = vmatpush2.msra.mxu1 %v1938_v32  ;;  %v2026_v32 = vld [vmem:[#allocation13 + $0xc40] sm:$0xff] }
 0x353   :  { %2575 = vmatprep.subr.mxu1 %v1937_v33  ;;  %v2025_v33 = vld [vmem:[#allocation13 + $0xc38] sm:$0xff] }
 0x354   :  { %2576 = vmatpush2.msra.mxu1 %v1936_v34  ;;  %v2024_v34 = vld [vmem:[#allocation13 + $0xc30] sm:$0xff] }
 0x355   :  { %2577 = vmatprep.subr.mxu1 %v1935_v35  ;;  %v2023_v35 = vld [vmem:[#allocation13 + $0xc28] sm:$0xff] }
 0x356   :  { %2578 = vmatpush2.msra.mxu1 %v1934_v36  ;;  %v2022_v36 = vld [vmem:[#allocation13 + $0xc20] sm:$0xff] }
 0x357   :  { %2579 = vmatprep.subr.mxu1 %v1933_v37  ;;  %v2021_v37 = vld [vmem:[#allocation13 + $0xc18] sm:$0xff] }
 0x358   :  { %2580 = vmatpush2.msra.mxu1 %v1932_v38  ;;  %v2020_v38 = vld [vmem:[#allocation13 + $0xc10] sm:$0xff] }
 0x359   :  { %2581 = vmatprep.subr.mxu1 %v1931_v39  ;;  %v2019_v39 = vld [vmem:[#allocation13 + $0xc08] sm:$0xff] }
 0x35a   :  { %2582 = vmatpush2.msra.mxu1 %v1930_v41  ;;  %v2081_v41 = vld [vmem:[#allocation13 + $0xdf8] sm:$0xff] }
 0x35b   :  { %2583 = vmatprep.subr.mxu1 %v1929_v43  ;;  %v2079_v43 = vld [vmem:[#allocation13 + $0xde8] sm:$0xff] }
 0x35c   :  { %2584 = vmatpush2.msra.mxu1 %v1928_v45  ;;  %v2077_v45 = vld [vmem:[#allocation13 + $0xdd8] sm:$0xff] }
 0x35d   :  { %2585 = vmatprep.subr.mxu1 %v1927_v47  ;;  %v2075_v47 = vld [vmem:[#allocation13 + $0xdc8] sm:$0xff] }
 0x35e   :  { %2586 = vmatpush2.msra.mxu1 %v1926_v49  ;;  %v2073_v49 = vld [vmem:[#allocation13 + $0xdb8] sm:$0xff] }
 0x35f   :  { %2587 = vmatprep.subr.mxu1 %v1925_v52  ;;  %v2071_v52 = vld [vmem:[#allocation13 + $0xda8] sm:$0xff] }
 0x360   :  { %2588 = vmatpush2.msra.mxu1 %v1924_v54  ;;  %v2069_v54 = vld [vmem:[#allocation13 + $0xd98] sm:$0xff] }
 0x361   :  { %2589 = vmatprep.subr.mxu1 %v1923_v56  ;;  %v2067_v56 = vld [vmem:[#allocation13 + $0xd88] sm:$0xff] }
 0x362   :  { %2590 = vmatpush2.msra.mxu1 %v1922_v58  ;;  %v2065_v58 = vld [vmem:[#allocation13 + $0xd78] sm:$0xff] }
 0x363   :  { %v1604_v6 = vpop.f32.mrf.mxu1  ;;  %2592 = vmatmul.mubr.f32.vlgmr.msra.gmra.mxu1 %v1623_v60  ;;  %2669 = vmatprep.subr.mxu1 %v2049_v61  ;;  %v2063_v60 = vld [vmem:[#allocation13 + $0xd68] sm:$0xff]  ;;  %v2062_v61 = vld [vmem:[#allocation13 + $0xd60] sm:$0xff] }
 0x364   :  { %vm1609_vm3 = vcmp.ge.f32.partialorder %v1604_v6, 0.0  ;;  %v1611_v8 = vmul.f32 0.25, %v1604_v6  ;;  %2670 = vmatpush1.msra.mxu1 %v2048_v0  ;;  %2733 = vmatprep.mubr.f32.mxu1 %v1628_v2  ;;  %v2060_v0 = vld [vmem:[#allocation13 + $0xd50] sm:$0xff]  ;;  %v2059_v2 = vld [vmem:[#allocation13 + $0xd48] sm:$0xff] }
 0x365   :  { %v1606_v10 = vpop.f32.mrf.mxu1  ;;  %2671 = vmatprep.subr.mxu1 %v2047_v4  ;;  %v2057_v4 = vld [vmem:[#allocation13 + $0xd38] sm:$0xff] }
 0x366   :  { %vm1610_vm4 = vcmp.ge.f32.partialorder %v1606_v10, 0.0  ;;  %v1612_v12 = vmul.f32 0.25, %v1606_v10  ;;  %2672 = vmatpush1.msra.mxu1 %v2046_v7  ;;  %v4186_v14 = vsel %vm1609_vm3, %v1604_v6, %v1611_v8  ;;  %v2055_v6 = vld [vmem:[#allocation13 + $0xd28] sm:$0xff]  ;;  %v2054_v7 = vld [vmem:[#allocation13 + $0xd20] sm:$0xff]  ;;  %v2053_v8 = vld [vmem:[#allocation13 + $0xd18] sm:$0xff] }
 0x367   :  { %2673 = vmatprep.subr.mxu1 %v2045_v9  ;;  %3034 = vst [vmem:[#allocation22] sm:$0xff] %v4186_v14  ;;  %v2052_v9 = vld [vmem:[#allocation13 + $0xd10] sm:$0xff] }
 0x368   :  { %2674 = vmatpush1.msra.mxu1 %v2044_v11  ;;  %v4189_v17 = vsel %vm1610_vm4, %v1606_v10, %v1612_v12  ;;  %v2051_v10 = vld [vmem:[#allocation13 + $0xd08] sm:$0xff]  ;;  %v2050_v11 = vld [vmem:[#allocation13 + $0xd00] sm:$0xff] }
 0x369   :  { %2675 = vmatprep.subr.mxu1 %v2043_v13  ;;  %3035 = vst [vmem:[#allocation22 + $0x8] sm:$0xff] %v4189_v17  ;;  %v1627_v12 = vld [vmem:[#allocation10 + $0x60] sm:$0xff]  ;;  %v2177_v13 = vld [vmem:[#allocation13 + $0x10f8] sm:$0xff] }
 0x36a   :  { %2676 = vmatpush1.msra.mxu1 %v2042_v15  ;;  %v2176_v15 = vld [vmem:[#allocation13 + $0x10f0] sm:$0xff] }
 0x36b   :  { %2677 = vmatprep.subr.mxu1 %v2041_v16  ;;  %v1632_v16 = vld [vmem:[#allocation10 + $0x88] sm:$0xff] }
 0x36c   :  { %2678 = vmatpush1.msra.mxu1 %v2040_v18  ;;  %v2175_v18 = vld [vmem:[#allocation13 + $0x10e8] sm:$0xff] }
 0x36d   :  { %2679 = vmatprep.subr.mxu1 %v2039_v19  ;;  %v2174_v19 = vld [vmem:[#allocation13 + $0x10e0] sm:$0xff] }
 0x36e   :  { %2680 = vmatpush1.msra.mxu1 %v2038_v20  ;;  %v2173_v20 = vld [vmem:[#allocation13 + $0x10d8] sm:$0xff] }
 0x36f   :  { %2681 = vmatprep.subr.mxu1 %v2037_v21  ;;  %v2172_v21 = vld [vmem:[#allocation13 + $0x10d0] sm:$0xff] }
 0x370   :  { %2682 = vmatpush1.msra.mxu1 %v2036_v22  ;;  %v2171_v22 = vld [vmem:[#allocation13 + $0x10c8] sm:$0xff] }
 0x371   :  { %2683 = vmatprep.subr.mxu1 %v2035_v23  ;;  %v2170_v23 = vld [vmem:[#allocation13 + $0x10c0] sm:$0xff] }
 0x372   :  { %2684 = vmatpush1.msra.mxu1 %v2034_v24  ;;  %v2169_v24 = vld [vmem:[#allocation13 + $0x10b8] sm:$0xff] }
 0x373   :  { %2685 = vmatprep.subr.mxu1 %v2033_v25  ;;  %v2168_v25 = vld [vmem:[#allocation13 + $0x10b0] sm:$0xff] }
 0x374   :  { %2686 = vmatpush1.msra.mxu1 %v2032_v26  ;;  %v2167_v26 = vld [vmem:[#allocation13 + $0x10a8] sm:$0xff] }
 0x375   :  { %2687 = vmatprep.subr.mxu1 %v2031_v27  ;;  %v2166_v27 = vld [vmem:[#allocation13 + $0x10a0] sm:$0xff] }
 0x376   :  { %2688 = vmatpush1.msra.mxu1 %v2030_v28  ;;  %v2165_v28 = vld [vmem:[#allocation13 + $0x1098] sm:$0xff] }
 0x377   :  { %2689 = vmatprep.subr.mxu1 %v2029_v29  ;;  %v2164_v29 = vld [vmem:[#allocation13 + $0x1090] sm:$0xff] }
 0x378   :  { %2690 = vmatpush1.msra.mxu1 %v2028_v30  ;;  %v2163_v30 = vld [vmem:[#allocation13 + $0x1088] sm:$0xff] }
 0x379   :  { %2691 = vmatprep.subr.mxu1 %v2027_v31  ;;  %v2162_v31 = vld [vmem:[#allocation13 + $0x1080] sm:$0xff] }
 0x37a   :  { %2692 = vmatpush1.msra.mxu1 %v2026_v32  ;;  %v2161_v32 = vld [vmem:[#allocation13 + $0x1078] sm:$0xff] }
 0x37b   :  { %2693 = vmatprep.subr.mxu1 %v2025_v33  ;;  %v2160_v33 = vld [vmem:[#allocation13 + $0x1070] sm:$0xff] }
 0x37c   :  { %2694 = vmatpush1.msra.mxu1 %v2024_v34  ;;  %v2159_v34 = vld [vmem:[#allocation13 + $0x1068] sm:$0xff] }
 0x37d   :  { %2695 = vmatprep.subr.mxu1 %v2023_v35  ;;  %v2158_v35 = vld [vmem:[#allocation13 + $0x1060] sm:$0xff] }
 0x37e   :  { %2696 = vmatpush1.msra.mxu1 %v2022_v36  ;;  %v2157_v36 = vld [vmem:[#allocation13 + $0x1058] sm:$0xff] }
 0x37f   :  { %2697 = vmatprep.subr.mxu1 %v2021_v37  ;;  %v2156_v37 = vld [vmem:[#allocation13 + $0x1050] sm:$0xff] }
 0x380   :  { %2698 = vmatpush1.msra.mxu1 %v2020_v38  ;;  %v2155_v38 = vld [vmem:[#allocation13 + $0x1048] sm:$0xff] }
 0x381   :  { %2699 = vmatprep.subr.mxu1 %v2019_v39  ;;  %v2154_v39 = vld [vmem:[#allocation13 + $0x1040] sm:$0xff] }
 0x382   :  { %2700 = vmatpush1.msra.mxu1 %v2018_v40  ;;  %v2153_v40 = vld [vmem:[#allocation13 + $0x1038] sm:$0xff] }
 0x383   :  { %2701 = vmatprep.subr.mxu1 %v2081_v41  ;;  %v2152_v41 = vld [vmem:[#allocation13 + $0x1030] sm:$0xff] }
 0x384   :  { %2702 = vmatpush2.msra.mxu1 %v2080_v42  ;;  %v2151_v42 = vld [vmem:[#allocation13 + $0x1028] sm:$0xff] }
 0x385   :  { %2703 = vmatprep.subr.mxu1 %v2079_v43  ;;  %v2150_v43 = vld [vmem:[#allocation13 + $0x1020] sm:$0xff] }
 0x386   :  { %2704 = vmatpush2.msra.mxu1 %v2078_v44  ;;  %v2149_v44 = vld [vmem:[#allocation13 + $0x1018] sm:$0xff] }
 0x387   :  { %2705 = vmatprep.subr.mxu1 %v2077_v45  ;;  %v2148_v45 = vld [vmem:[#allocation13 + $0x1010] sm:$0xff] }
 0x388   :  { %2706 = vmatpush2.msra.mxu1 %v2076_v46  ;;  %v2147_v46 = vld [vmem:[#allocation13 + $0x1008] sm:$0xff] }
 0x389   :  { %2707 = vmatprep.subr.mxu1 %v2075_v47  ;;  %v2146_v47 = vld [vmem:[#allocation13 + $0x1000] sm:$0xff] }
 0x38a   :  { %2708 = vmatpush2.msra.mxu1 %v2074_v48  ;;  %v2209_v48 = vld [vmem:[#allocation13 + $0x11f8] sm:$0xff] }
 0x38b   :  { %2709 = vmatprep.subr.mxu1 %v2073_v49  ;;  %v2208_v49 = vld [vmem:[#allocation13 + $0x11f0] sm:$0xff] }
 0x38c   :  { %2710 = vmatpush2.msra.mxu1 %v2072_v51  ;;  %v2207_v51 = vld [vmem:[#allocation13 + $0x11e8] sm:$0xff] }
 0x38d   :  { %2711 = vmatprep.subr.mxu1 %v2071_v52  ;;  %v2206_v52 = vld [vmem:[#allocation13 + $0x11e0] sm:$0xff] }
 0x38e   :  { %2712 = vmatpush2.msra.mxu1 %v2070_v53  ;;  %v2205_v53 = vld [vmem:[#allocation13 + $0x11d8] sm:$0xff] }
 0x38f   :  { %2713 = vmatprep.subr.mxu1 %v2069_v54  ;;  %v2204_v54 = vld [vmem:[#allocation13 + $0x11d0] sm:$0xff] }
 0x390   :  { %2714 = vmatpush2.msra.mxu1 %v2068_v55  ;;  %v2203_v55 = vld [vmem:[#allocation13 + $0x11c8] sm:$0xff] }
 0x391   :  { %2715 = vmatprep.subr.mxu1 %v2067_v56  ;;  %v2202_v56 = vld [vmem:[#allocation13 + $0x11c0] sm:$0xff] }
 0x392   :  { %2716 = vmatpush2.msra.mxu1 %v2066_v57  ;;  %v2201_v57 = vld [vmem:[#allocation13 + $0x11b8] sm:$0xff] }
 0x393   :  { %2717 = vmatprep.subr.mxu1 %v2065_v58  ;;  %v2200_v58 = vld [vmem:[#allocation13 + $0x11b0] sm:$0xff] }
 0x394   :  { %2718 = vmatpush2.msra.mxu1 %v2064_v59  ;;  %v2199_v59 = vld [vmem:[#allocation13 + $0x11a8] sm:$0xff] }
 0x395   :  { %2719 = vmatprep.subr.mxu1 %v2063_v60  ;;  %v2198_v60 = vld [vmem:[#allocation13 + $0x11a0] sm:$0xff] }
 0x396   :  { %2720 = vmatpush2.msra.mxu1 %v2062_v61  ;;  %v2197_v61 = vld [vmem:[#allocation13 + $0x1198] sm:$0xff] }
 0x397   :  { %2721 = vmatprep.subr.mxu1 %v2061_v63  ;;  %v2196_v63 = vld [vmem:[#allocation13 + $0x1190] sm:$0xff] }
 0x398   :  { %2722 = vmatpush2.msra.mxu1 %v2060_v0  ;;  %v2195_v0 = vld [vmem:[#allocation13 + $0x1188] sm:$0xff] }
 0x399   :  { %2723 = vmatprep.subr.mxu1 %v2059_v2  ;;  %v2194_v2 = vld [vmem:[#allocation13 + $0x1180] sm:$0xff] }
 0x39a   :  { %2724 = vmatpush2.msra.mxu1 %v2058_v3  ;;  %v2193_v3 = vld [vmem:[#allocation13 + $0x1178] sm:$0xff] }
 0x39b   :  { %2725 = vmatprep.subr.mxu1 %v2057_v4  ;;  %v2192_v4 = vld [vmem:[#allocation13 + $0x1170] sm:$0xff] }
 0x39c   :  { %2726 = vmatpush2.msra.mxu1 %v2056_v5  ;;  %v2191_v5 = vld [vmem:[#allocation13 + $0x1168] sm:$0xff] }
 0x39d   :  { %2727 = vmatprep.subr.mxu1 %v2055_v6  ;;  %v2190_v6 = vld [vmem:[#allocation13 + $0x1160] sm:$0xff] }
 0x39e   :  { %2728 = vmatpush2.msra.mxu1 %v2054_v7  ;;  %v2189_v7 = vld [vmem:[#allocation13 + $0x1158] sm:$0xff] }
 0x39f   :  { %2729 = vmatprep.subr.mxu1 %v2053_v8  ;;  %v2188_v8 = vld [vmem:[#allocation13 + $0x1150] sm:$0xff] }
 0x3a0   :  { %2730 = vmatpush2.msra.mxu1 %v2052_v9  ;;  %v2187_v9 = vld [vmem:[#allocation13 + $0x1148] sm:$0xff] }
 0x3a1   :  { %2731 = vmatprep.subr.mxu1 %v2051_v10  ;;  %v2186_v10 = vld [vmem:[#allocation13 + $0x1140] sm:$0xff] }
 0x3a2   :  { %2732 = vmatpush2.msra.mxu1 %v2050_v11  ;;  %v2185_v11 = vld [vmem:[#allocation13 + $0x1138] sm:$0xff] }
 0x3a3   :  { %2734 = vmatmul.mubr.f32.vlgmr.msra.gmra.mxu1 %v1627_v12  ;;  %2811 = vmatprep.subr.mxu1 %v2177_v13  ;;  %v2184_v12 = vld [vmem:[#allocation13 + $0x1130] sm:$0xff]  ;;  %v2183_v13 = vld [vmem:[#allocation13 + $0x1128] sm:$0xff] }
 0x3a4   :  { %2812 = vmatpush1.msra.mxu1 %v2176_v15  ;;  %2875 = vmatprep.mubr.f32.mxu1 %v1632_v16  ;;  %v2182_v15 = vld [vmem:[#allocation13 + $0x1120] sm:$0xff]  ;;  %v2181_v16 = vld [vmem:[#allocation13 + $0x1118] sm:$0xff] }
 0x3a5   :  { %2813 = vmatprep.subr.mxu1 %v2175_v18  ;;  %v2180_v18 = vld [vmem:[#allocation13 + $0x1110] sm:$0xff] }
 0x3a6   :  { %2814 = vmatpush1.msra.mxu1 %v2174_v19  ;;  %v2179_v19 = vld [vmem:[#allocation13 + $0x1108] sm:$0xff] }
 0x3a7   :  { %2815 = vmatprep.subr.mxu1 %v2173_v20  ;;  %v2178_v20 = vld [vmem:[#allocation13 + $0x1100] sm:$0xff] }
 0x3a8   :  { %2816 = vmatpush1.msra.mxu1 %v2172_v21  ;;  %v1631_v21 = vld [vmem:[#allocation10 + $0x80] sm:$0xff] }
 0x3a9   :  { %2817 = vmatprep.subr.mxu1 %v2171_v22  ;;  %v2222_v22 = vld [vmem:[#allocation14] sm:$0x3] }
 0x3aa   :  { %2818 = vmatpush1.msra.mxu1 %v2170_v23  ;;  %v2309_v23 = vpop.f32.mrf.mxu1 }
 0x3ab   :  { %2819 = vmatprep.subr.mxu1 %v2169_v24  ;;  %v2227_v24 = vrot.slane %v2222_v22, %v4174_v62 }
 0x3ac   :  { %2820 = vmatpush1.msra.mxu1 %v2168_v25  ;;  %v2231_v25 = vrot.slane %v2222_v22, %v4176_v1  ;;  %v3061_v22 = vld [vmem:[#allocation16 + $0xb8] sm:$0xff] }
 0x3ad   :  { %2821 = vmatprep.subr.mxu1 %v2167_v26  ;;  %v2311_v26 = vpop.f32.mrf.mxu1 }
 0x3ae   :  { %2822 = vmatpush1.msra.mxu1 %v2166_v27  ;;  %v2380_v27 = vpop.f32.mrf.mxu0 }
 0x3af   :  { %2823 = vmatprep.subr.mxu1 %v2165_v28  ;;  %v2310_v28 = vadd.f32 %v2309_v23, %v2227_v24  ;;  %v3045_v23 = vld [vmem:[#allocation16 + $0x38] sm:$0xff]  ;;  %v3060_v24 = vld [vmem:[#allocation16 + $0xb0] sm:$0xff] }
 0x3b0   :  { %2824 = vmatpush1.msra.mxu1 %v2164_v29 }
 0x3b1   :  { %2825 = vmatprep.subr.mxu1 %v2163_v30  ;;  %v2312_v30 = vadd.f32 %v2311_v26, %v2231_v25  ;;  %v3044_v25 = vld [vmem:[#allocation16 + $0x30] sm:$0xff]  ;;  %v3059_v26 = vld [vmem:[#allocation16 + $0xa8] sm:$0xff] }
 0x3b2   :  { %2826 = vmatpush1.msra.mxu1 %v2162_v31  ;;  %v2382_v31 = vpop.f32.mrf.mxu0 }
 0x3b3   :  { %2827 = vmatprep.subr.mxu1 %v2161_v32  ;;  %v2381_v32 = vadd.f32 %v2380_v27, %v2310_v28  ;;  %v3043_v27 = vld [vmem:[#allocation16 + $0x28] sm:$0xff]  ;;  %v3058_v28 = vld [vmem:[#allocation16 + $0xa0] sm:$0xff] }
 0x3b4   :  { %2828 = vmatpush1.msra.mxu1 %v2160_v33 }
 0x3b5   :  { %2829 = vmatprep.subr.mxu1 %v2159_v34  ;;  %v2522_v34 = vpop.f32.mrf.mxu0 }
 0x3b6   :  { %2830 = vmatpush1.msra.mxu1 %v2158_v35  ;;  %v2383_v35 = vadd.f32 %v2382_v31, %v2312_v30  ;;  %v3057_v30 = vld [vmem:[#allocation16 + $0x98] sm:$0xff] }
 0x3b7   :  { %2831 = vmatprep.subr.mxu1 %v2157_v36  ;;  %v3041_v31 = vld [vmem:[#allocation16 + $0x18] sm:$0xff] }
 0x3b8   :  { %2832 = vmatpush1.msra.mxu1 %v2156_v37 }
 0x3b9   :  { %2833 = vmatprep.subr.mxu1 %v2155_v38 }
 0x3ba   :  { %2834 = vmatpush1.msra.mxu1 %v2154_v39  ;;  %v2524_v39 = vpop.f32.mrf.mxu0 }
 0x3bb   :  { %2835 = vmatprep.subr.mxu1 %v2153_v40 }
 0x3bc   :  { %2836 = vmatpush1.msra.mxu1 %v2152_v41 }
 0x3bd   :  { %2837 = vmatprep.subr.mxu1 %v2151_v42  ;;  %v2664_v42 = vpop.f32.mrf.mxu0 }
 0x3be   :  { %2838 = vmatpush1.msra.mxu1 %v2150_v43 }
 0x3bf   :  { %2839 = vmatprep.subr.mxu1 %v2149_v44 }
 0x3c0   :  { %2840 = vmatpush1.msra.mxu1 %v2148_v45 }
 0x3c1   :  { %2841 = vmatprep.subr.mxu1 %v2147_v46 }
 0x3c2   :  { %2842 = vmatpush1.msra.mxu1 %v2146_v47  ;;  %v2666_v47 = vpop.f32.mrf.mxu0 }
 0x3c3   :  { %2843 = vmatprep.subr.mxu1 %v2209_v48 }
 0x3c4   :  { %2844 = vmatpush2.msra.mxu1 %v2208_v49 }
 0x3c5   :  { %2845 = vmatprep.subr.mxu1 %v2207_v51 }
 0x3c6   :  { %2846 = vmatpush2.msra.mxu1 %v2206_v52 }
 0x3c7   :  { %2847 = vmatprep.subr.mxu1 %v2205_v53 }
 0x3c8   :  { %2848 = vmatpush2.msra.mxu1 %v2204_v54 }
 0x3c9   :  { %2849 = vmatprep.subr.mxu1 %v2203_v55 }
 0x3ca   :  { %2850 = vmatpush2.msra.mxu1 %v2202_v56 }
 0x3cb   :  { %2851 = vmatprep.subr.mxu1 %v2201_v57 }
 0x3cc   :  { %2852 = vmatpush2.msra.mxu1 %v2200_v58 }
 0x3cd   :  { %2853 = vmatprep.subr.mxu1 %v2199_v59 }
 0x3ce   :  { %2854 = vmatpush2.msra.mxu1 %v2198_v60 }
 0x3cf   :  { %2855 = vmatprep.subr.mxu1 %v2197_v61 }
 0x3d0   :  { %2856 = vmatpush2.msra.mxu1 %v2196_v63 }
 0x3d1   :  { %2857 = vmatprep.subr.mxu1 %v2195_v0 }
 0x3d2   :  { %2858 = vmatpush2.msra.mxu1 %v2194_v2 }
 0x3d3   :  { %2859 = vmatprep.subr.mxu1 %v2193_v3 }
 0x3d4   :  { %2860 = vmatpush2.msra.mxu1 %v2192_v4  ;;  %v2953_v4 = vld [vmem:[#allocation11] sm:$0xff] }
 0x3d5   :  { %2861 = vmatprep.subr.mxu1 %v2191_v5  ;;  %v2806_v51 = vpop.f32.mrf.mxu0  ;;  %v3069_v5 = vld [vmem:[#allocation16 + $0xf8] sm:$0xff] }
 0x3d6   :  { %2862 = vmatpush2.msra.mxu1 %v2190_v6  ;;  %v3053_v6 = vld [vmem:[#allocation16 + $0x78] sm:$0xff] }
 0x3d7   :  { %2863 = vmatprep.subr.mxu1 %v2189_v7  ;;  %v2808_v55 = vpop.f32.mrf.mxu0  ;;  %v3068_v7 = vld [vmem:[#allocation16 + $0xf0] sm:$0xff] }
 0x3d8   :  { %2864 = vmatpush2.msra.mxu1 %v2188_v8  ;;  %v3052_v8 = vld [vmem:[#allocation16 + $0x70] sm:$0xff] }
 0x3d9   :  { %2865 = vmatprep.subr.mxu1 %v2187_v9  ;;  %v3067_v9 = vld [vmem:[#allocation16 + $0xe8] sm:$0xff] }
 0x3da   :  { %2866 = vmatpush2.msra.mxu1 %v2186_v10  ;;  %v3051_v10 = vld [vmem:[#allocation16 + $0x68] sm:$0xff] }
 0x3db   :  { %2867 = vmatprep.subr.mxu1 %v2185_v11  ;;  %v3066_v11 = vld [vmem:[#allocation16 + $0xe0] sm:$0xff] }
 0x3dc   :  { %2868 = vmatpush2.msra.mxu1 %v2184_v12  ;;  %v3050_v12 = vld [vmem:[#allocation16 + $0x60] sm:$0xff] }
 0x3dd   :  { %2869 = vmatprep.subr.mxu1 %v2183_v13  ;;  %v3065_v13 = vld [vmem:[#allocation16 + $0xd8] sm:$0xff] }
 0x3de   :  { %2870 = vmatpush2.msra.mxu1 %v2182_v15  ;;  %v3049_v15 = vld [vmem:[#allocation16 + $0x58] sm:$0xff] }
 0x3df   :  { %2871 = vmatprep.subr.mxu1 %v2181_v16  ;;  %v3064_v16 = vld [vmem:[#allocation16 + $0xd0] sm:$0xff] }
 0x3e0   :  { %2872 = vmatpush2.msra.mxu1 %v2180_v18  ;;  %v3048_v18 = vld [vmem:[#allocation16 + $0x50] sm:$0xff] }
 0x3e1   :  { %2873 = vmatprep.subr.mxu1 %v2179_v19  ;;  %v3063_v19 = vld [vmem:[#allocation16 + $0xc8] sm:$0xff] }
 0x3e2   :  { %2874 = vmatpush2.msra.mxu1 %v2178_v20  ;;  %v3047_v20 = vld [vmem:[#allocation16 + $0x48] sm:$0xff] }
 0x3e3   :  { %2876 = vmatmul.mubr.f32.vlgmr.msra.gmra.mxu1 %v1631_v21  ;;  %v2451_v29 = vpop.f32.mrf.mxu1  ;;  %v3046_v21 = vld [vmem:[#allocation16 + $0x40] sm:$0xff] }
 0x3e4   :  { %3270 = vmatprep.mubr.f32.mxu1 %v4045_v50  ;;  %v2452_v36 = vadd.f32 %v2451_v29, %v2381_v32  ;;  %v3042_v29 = vld [vmem:[#allocation16 + $0x20] sm:$0xff]  ;;  %v3056_v32 = vld [vmem:[#allocation16 + $0x90] sm:$0xff] }
 0x3e5   :  { %v2453_v33 = vpop.f32.mrf.mxu1 }
 0x3e6   :  { %v2454_v38 = vadd.f32 %v2453_v33, %v2383_v35  ;;  %v2523_v40 = vadd.f32 %v2522_v34, %v2452_v36  ;;  %v3040_v33 = vld [vmem:[#allocation16 + $0x10] sm:$0xff]  ;;  %v3055_v34 = vld [vmem:[#allocation16 + $0x88] sm:$0xff]  ;;  %v3054_v36 = vld [vmem:[#allocation16 + $0x80] sm:$0xff] }
 0x3e7   :  { %v3039_v35 = vld [vmem:[#allocation16 + $0x8] sm:$0xff] }
 0x3e8   :  { %v2525_v43 = vadd.f32 %v2524_v39, %v2454_v38  ;;  %v3193_v38 = vld [vmem:[#allocation19 + $0xf8] sm:$0xff]  ;;  %v3192_v39 = vld [vmem:[#allocation19 + $0xf0] sm:$0xff] }
 0x3e9   :  { %3206 = vmatprep.subr.mxu1 %v3193_v38 }
 0x3ea   :  { %3207 = vmatpush1.msra.mxu1 %v3192_v39 }
 0x3f8   :  { %v2948_v58 = vpop.f32.mrf.mxu0 }
 0x3fa   :  { %v2950_v0 = vpop.f32.mrf.mxu0 }
 0x423   :  { %v2593_v37 = vpop.f32.mrf.mxu1 }
 0x424   :  { %v2594_v44 = vadd.f32 %v2593_v37, %v2523_v40  ;;  %v3038_v37 = vld [vmem:[#allocation16] sm:$0xff]  ;;  %v3191_v40 = vld [vmem:[#allocation19 + $0xe8] sm:$0xff] }
 0x425   :  { %v2595_v41 = vpop.f32.mrf.mxu1  ;;  %3208 = vmatprep.subr.mxu1 %v3191_v40 }
 0x426   :  { %v2596_v46 = vadd.f32 %v2595_v41, %v2525_v43  ;;  %v2665_v48 = vadd.f32 %v2664_v42, %v2594_v44  ;;  %v3190_v41 = vld [vmem:[#allocation19 + $0xe0] sm:$0xff]  ;;  %v3189_v42 = vld [vmem:[#allocation19 + $0xd8] sm:$0xff]  ;;  %v3188_v43 = vld [vmem:[#allocation19 + $0xd0] sm:$0xff] }
 0x427   :  { %3209 = vmatpush1.msra.mxu1 %v3190_v41  ;;  %v3187_v44 = vld [vmem:[#allocation19 + $0xc8] sm:$0xff] }
 0x428   :  { %v2667_v52 = vadd.f32 %v2666_v47, %v2596_v46  ;;  %3210 = vmatprep.subr.mxu1 %v3189_v42  ;;  %v3185_v46 = vld [vmem:[#allocation19 + $0xb8] sm:$0xff]  ;;  %v3184_v47 = vld [vmem:[#allocation19 + $0xb0] sm:$0xff] }
 0x429   :  { %3211 = vmatpush1.msra.mxu1 %v3188_v43 }
 0x42a   :  { %3212 = vmatprep.subr.mxu1 %v3187_v44 }
 0x463   :  { %v2735_v45 = vpop.f32.mrf.mxu1 }
 0x464   :  { %v2736_v53 = vadd.f32 %v2735_v45, %v2665_v48  ;;  %v3186_v45 = vld [vmem:[#allocation19 + $0xc0] sm:$0xff] }
 0x465   :  { %v2737_v49 = vpop.f32.mrf.mxu1  ;;  %3213 = vmatpush1.msra.mxu1 %v3186_v45  ;;  %v3182_v48 = vld [vmem:[#allocation19 + $0xa0] sm:$0xff] }
 0x466   :  { %v2738_v54 = vadd.f32 %v2737_v49, %v2667_v52  ;;  %v2807_v56 = vadd.f32 %v2806_v51, %v2736_v53  ;;  %3214 = vmatprep.subr.mxu1 %v3185_v46  ;;  %v3181_v49 = vld [vmem:[#allocation19 + $0x98] sm:$0xff]  ;;  %v3180_v51 = vld [vmem:[#allocation19 + $0x90] sm:$0xff]  ;;  %v3179_v52 = vld [vmem:[#allocation19 + $0x88] sm:$0xff] }
 0x467   :  { %3215 = vmatpush1.msra.mxu1 %v3184_v47  ;;  %v3178_v53 = vld [vmem:[#allocation19 + $0x80] sm:$0xff] }
 0x468   :  { %v2809_v59 = vadd.f32 %v2808_v55, %v2738_v54  ;;  %v3177_v54 = vld [vmem:[#allocation19 + $0x78] sm:$0xff]  ;;  %v3176_v55 = vld [vmem:[#allocation19 + $0x70] sm:$0xff] }
 0x4a3   :  { %v2877_v57 = vpop.f32.mrf.mxu1 }
 0x4a4   :  { %v2878_v60 = vadd.f32 %v2877_v57, %v2807_v56  ;;  %v3175_v56 = vld [vmem:[#allocation19 + $0x68] sm:$0xff]  ;;  %v3174_v57 = vld [vmem:[#allocation19 + $0x60] sm:$0xff] }
 0x4a5   :  { %v2879_v61 = vpop.f32.mrf.mxu1 }
 0x4a6   :  { %v2880_v63 = vadd.f32 %v2879_v61, %v2809_v59  ;;  %v2949_v3 = vadd.f32 %v2948_v58, %v2878_v60  ;;  %v3173_v58 = vld [vmem:[#allocation19 + $0x58] sm:$0xff]  ;;  %v3172_v59 = vld [vmem:[#allocation19 + $0x50] sm:$0xff]  ;;  %v3171_v60 = vld [vmem:[#allocation19 + $0x48] sm:$0xff] }
 0x4a7   :  { %v3170_v61 = vld [vmem:[#allocation19 + $0x40] sm:$0xff] }
 0x4a8   :  { %v2951_v2 = vadd.f32 %v2950_v0, %v2880_v63  ;;  %v3169_v63 = vld [vmem:[#allocation19 + $0x38] sm:$0xff]  ;;  %v3168_v0 = vld [vmem:[#allocation19 + $0x30] sm:$0xff] }
 0x4aa   :  { %2987 = vmatprep.subr.mxu0 %v2951_v2  ;;  %v3167_v2 = vld [vmem:[#allocation19 + $0x28] sm:$0xff] }
 0x4ab   :  { %2988 = vmatpush1.msra.mxu0 %v2949_v3  ;;  %v3166_v3 = vld [vmem:[#allocation19 + $0x20] sm:$0xff] }
 0x4ac   :  { %3629 = vmatmul.mubr.msk.f32.vlgmr.msra.gmra.mxu0 %vm1534_vm2, %v2953_v4  ;;  %3635 = vmatprep.subr.mxu0 %v3069_v5  ;;  %v3165_v4 = vld [vmem:[#allocation19 + $0x18] sm:$0xff]  ;;  %v3164_v5 = vld [vmem:[#allocation19 + $0x10] sm:$0xff] }
 0x4ad   :  { %3636 = vmatpush3.msra.mxu0 %v3053_v6  ;;  %3141 = vmatprep.mubr.f32.mxu0 %v4189_v17  ;;  %v3062_v17 = vld [vmem:[#allocation16 + $0xc0] sm:$0xff]  ;;  %v3163_v6 = vld [vmem:[#allocation19 + $0x8] sm:$0xff] }
 0x4ae   :  { %3637 = vmatprep.subr.mxu0 %v3068_v7  ;;  %v3162_v7 = vld [vmem:[#allocation19] sm:$0xff] }
 0x4af   :  { %3638 = vmatpush3.msra.mxu0 %v3052_v8 }
 0x4b0   :  { %3639 = vmatprep.subr.mxu0 %v3067_v9 }
 0x4b1   :  { %3640 = vmatpush3.msra.mxu0 %v3051_v10 }
 0x4b2   :  { %3641 = vmatprep.subr.mxu0 %v3066_v11 }
 0x4b3   :  { %3642 = vmatpush3.msra.mxu0 %v3050_v12 }
 0x4b4   :  { %3643 = vmatprep.subr.mxu0 %v3065_v13 }
 0x4b5   :  { %3644 = vmatpush3.msra.mxu0 %v3049_v15 }
 0x4b6   :  { %3645 = vmatprep.subr.mxu0 %v3064_v16  ;;  %v3630_v16 = vld [vmem:[#allocation17] ss:$0 sm:$0xff] }
 0x4b7   :  { %3646 = vmatpush3.msra.mxu0 %v3048_v18 }
 0x4b8   :  { %3647 = vmatprep.subr.mxu0 %v3063_v19 }
 0x4b9   :  { %3648 = vmatpush3.msra.mxu0 %v3047_v20 }
 0x4ba   :  { %3649 = vmatprep.subr.mxu0 %v3062_v17 }
 0x4bb   :  { %3650 = vmatpush3.msra.mxu0 %v3046_v21 }
 0x4bc   :  { %3651 = vmatprep.subr.mxu0 %v3061_v22 }
 0x4bd   :  { %3652 = vmatpush3.msra.mxu0 %v3045_v23 }
 0x4be   :  { %3653 = vmatprep.subr.mxu0 %v3060_v24 }
 0x4bf   :  { %3654 = vmatpush3.msra.mxu0 %v3044_v25 }
 0x4c0   :  { %3655 = vmatprep.subr.mxu0 %v3059_v26 }
 0x4c1   :  { %3656 = vmatpush3.msra.mxu0 %v3043_v27 }
 0x4c2   :  { %3657 = vmatprep.subr.mxu0 %v3058_v28 }
 0x4c3   :  { %3658 = vmatpush3.msra.mxu0 %v3042_v29 }
 0x4c4   :  { %3659 = vmatprep.subr.mxu0 %v3057_v30 }
 0x4c5   :  { %3660 = vmatpush3.msra.mxu0 %v3041_v31 }
 0x4c6   :  { %3661 = vmatprep.subr.mxu0 %v3056_v32  ;;  %v3194_v32 = vld [vmem:[#allocation20] sm:$0x3] }
 0x4c7   :  { %3662 = vmatpush3.msra.mxu0 %v3040_v33  ;;  %v3199_v33 = vrot.slane %v3194_v32, %v4174_v62 }
 0x4c8   :  { %3663 = vmatprep.subr.mxu0 %v3055_v34  ;;  %v3203_v34 = vrot.slane %v3194_v32, %v4176_v1 }
 0x4c9   :  { %3664 = vmatpush3.msra.mxu0 %v3039_v35 }
 0x4ca   :  { %3665 = vmatprep.subr.mxu0 %v3054_v36 }
 0x4cb   :  { %3666 = vmatpush3.msra.mxu0 %v3038_v37 }
 0x4cc   :  { %3142 = vmatmul.mubr.f32.vlgmr.msra.gmra.mxu0 %v4186_v14  ;;  %v3183_v14 = vld [vmem:[#allocation19 + $0xa8] sm:$0xff] }
 0x4cd   :  { %3216 = vmatprep.subr.mxu1 %v3183_v14 }
 0x4ce   :  { %3217 = vmatpush1.msra.mxu1 %v3182_v48 }
 0x4cf   :  { %3218 = vmatprep.subr.mxu1 %v3181_v49 }
 0x4d0   :  { %3219 = vmatpush1.msra.mxu1 %v3180_v51 }
 0x4d1   :  { %3220 = vmatprep.subr.mxu1 %v3179_v52 }
 0x4d2   :  { %3221 = vmatpush1.msra.mxu1 %v3178_v53 }
 0x4d3   :  { %3222 = vmatprep.subr.mxu1 %v3177_v54 }
 0x4d4   :  { %3223 = vmatpush1.msra.mxu1 %v3176_v55 }
 0x4d5   :  { %3224 = vmatprep.subr.mxu1 %v3175_v56 }
 0x4d6   :  { %3225 = vmatpush1.msra.mxu1 %v3174_v57 }
 0x4d7   :  { %3226 = vmatprep.subr.mxu1 %v3173_v58 }
 0x4d8   :  { %3227 = vmatpush1.msra.mxu1 %v3172_v59 }
 0x4d9   :  { %3228 = vmatprep.subr.mxu1 %v3171_v60 }
 0x4da   :  { %3229 = vmatpush1.msra.mxu1 %v3170_v61 }
 0x4db   :  { %3230 = vmatprep.subr.mxu1 %v3169_v63 }
 0x4dc   :  { %3231 = vmatpush1.msra.mxu1 %v3168_v0 }
 0x4dd   :  { %3232 = vmatprep.subr.mxu1 %v3167_v2 }
 0x4de   :  { %3233 = vmatpush1.msra.mxu1 %v3166_v3 }
 0x4df   :  { %3234 = vmatprep.subr.mxu1 %v3165_v4 }
 0x4e0   :  { %3235 = vmatpush1.msra.mxu1 %v3164_v5 }
 0x4e1   :  { %3236 = vmatprep.subr.mxu1 %v3163_v6 }
 0x4e2   :  { %3237 = vmatpush1.msra.mxu1 %v3162_v7 }
 0x56c   :  { %v3023_v8 = vpop.f32.mrf.mxu0 }
 0x56d   :  { %vm3028_vm5 = vcmp.ge.f32.partialorder %v3023_v8, 0.0  ;;  %v3030_v9 = vmul.f32 0.25, %v3023_v8 }
 0x56e   :  { %v3025_v10 = vpop.f32.mrf.mxu0 }
 0x56f   :  { %vm3029_vm6 = vcmp.ge.f32.partialorder %v3025_v10, 0.0  ;;  %v3031_v11 = vmul.f32 0.25, %v3025_v10  ;;  %v3032_v12 = vsel %vm3028_vm5, %v3023_v8, %v3030_v9 }
 0x570   :  { %3036 = vst [vmem:[#allocation23] sm:$0xff] %v3032_v12 }
 0x571   :  { %v3033_v13 = vsel %vm3029_vm6, %v3025_v10, %v3031_v11 }
 0x572   :  { %3037 = vst [vmem:[#allocation23 + $0x8] sm:$0xff] %v3033_v13  ;;  %3146 = vmatprep.mubr.f32.mxu0 %v3033_v13 }
 0x573   :  { %3147 = vmatmul.mubr.f32.gmra.mxu0 %v3032_v12 }
 0x58c   :  { %v3667_v15 = vpop.f32.mrf.mxu0 }
 0x58e   :  { %v3668_v18 = vpop.f32.mrf.mxu0 }
 0x58f   :  { %v3669_v19 = vadd.f32 %v3668_v18, %v3667_v15 }
 0x591   :  { %v3144_v20 = vadd.f32 %v3669_v19, %v3630_v16 }
 0x593   :  { %v3154_v17 = vmul.f32 1.442695, %v3144_v20  ;;  %vm3152_vm7 = vcmp.gt.f32.partialorder %v3144_v20, 0.0 }
 0x595   :  { %3693 = vpow2.f32 %v3154_v17 }
 0x5a2   :  { %v3694_v21 = vpop.eup %3693 }
 0x5a3   :  { %v3631_v22 = vadd.f32 -1.0, %v3694_v21 }
 0x5a5   :  { %v3160_v23 = vsel %vm3152_vm7, %v3144_v20, %v3631_v22 }
 0x5a6   :  { %3271 = vmatmul.mubr.f32.vlgmr.msra.gmra.mxu1 %v3160_v23 }
 0x5a7   :  { %3276 = vmatprep.mubr.f32.mxu1 %v4045_v50 }
 0x633   :  { %v3670_v24 = vpop.f32.mrf.mxu0 }
 0x635   :  { %v3671_v25 = vpop.f32.mrf.mxu0 }
 0x636   :  { %v3672_v26 = vadd.f32 %v3671_v25, %v3670_v24 }
 0x638   :  { %v3149_v27 = vadd.f32 %v3672_v26, %v3630_v16 }
 0x63a   :  { %v3156_v28 = vmul.f32 1.442695, %v3149_v27  ;;  %vm3153_vm8 = vcmp.gt.f32.partialorder %v3149_v27, 0.0 }
 0x63c   :  { %3695 = vpow2.f32 %v3156_v28 }
 0x649   :  { %v3696_v29 = vpop.eup %3695 }
 0x64a   :  { %v3632_v30 = vadd.f32 -1.0, %v3696_v29 }
 0x64c   :  { %v3161_v31 = vsel %vm3153_vm8, %v3149_v27, %v3632_v30 }
 0x64d   :  { %3277 = vmatmul.mubr.f32.gmra.mxu1 %v3161_v31 }
 0x666   :  { %v3272_v35 = vpop.f32.mrf.mxu1 }
 0x667   :  { %v3273_v36 = vadd.f32 %v3272_v35, %v3199_v33 }
 0x668   :  { %v3274_v37 = vpop.f32.mrf.mxu1 }
 0x669   :  { %v3275_v50 = vadd.f32 %v3274_v37, %v3203_v34  ;;  %v3283_v38 = vmul.f32 %v3273_v36, %v3273_v36 }
 0x66b   :  { %v3284_v39 = vmul.f32 %v3275_v50, %v3275_v50 }
 0x66d   :  { %v3287_v40 = vadd.f32 %v3284_v39, %v3283_v38 }
 0x66f   :  { %3288 = vadd.xlane.f32.xlu0 %v3287_v40 }
 0x6f8   :  { %v3289_v41 = vpop.xlane.xlu0 %3288 }
 0x6f9   :  { %v3293_v42 = vmax.f32 %v3289_v41, 1e-24 }
 0x6fb   :  { %3697 = vrsqrt.f32 %v3293_v42 }
 0x708   :  { %v3698_v43 = vpop.eup %3697 }
 0x709   :  { %v3298_v44 = vmul.f32 %v3698_v43, %v3275_v50  ;;  %v3297_v45 = vmul.f32 %v3698_v43, %v3273_v36 }
 0x70b   :  { %3331 = vmatprep.subr.mxu0 %v3298_v44  ;;  %3365 = vmatprep.mubr.f32.mxu0 %v3298_v44 }
 0x70c   :  { %3332 = vmatpush1.xpose.msra.mxu0 %v3297_v45 }
 0x70d   :  { %v3278_v62 = vpop.f32.mrf.mxu1 }
 0x70e   :  { %v3279_v46 = vadd.f32 %v3278_v62, %v3199_v33 }
 0x70f   :  { %v3280_v1 = vpop.f32.mrf.mxu1  ;;  %3366 = vmatmul.mubr.f32.vlgmr.msra.gmra.mxu0 %v3297_v45 }
 0x710   :  { %v3281_v47 = vadd.f32 %v3280_v1, %v3203_v34  ;;  %3511 = vmatprep.mubr.f32.mxu0 %v3298_v44  ;;  %v3285_v14 = vmul.f32 %v3279_v46, %v3279_v46 }
 0x712   :  { %v3286_v48 = vmul.f32 %v3281_v47, %v3281_v47 }
 0x714   :  { %v3290_v49 = vadd.f32 %v3286_v48, %v3285_v14 }
 0x716   :  { %3291 = vadd.xlane.f32.xlu0 %v3290_v49 }
 0x79f   :  { %v3292_v51 = vpop.xlane.xlu0 %3291 }
 0x7a0   :  { %v3294_v52 = vmax.f32 %v3292_v51, 1e-24 }
 0x7a2   :  { %3699 = vrsqrt.f32 %v3294_v52 }
 0x7af   :  { %v3700_v53 = vpop.eup %3699 }
 0x7b0   :  { %v3300_v54 = vmul.f32 %v3700_v53, %v3281_v47  ;;  %v3299_v55 = vmul.f32 %v3700_v53, %v3279_v46 }
 0x7b2   :  { %3404 = vmatprep.subr.mxu1 %v3300_v54  ;;  %3438 = vmatprep.mubr.f32.mxu1 %v3300_v54  ;;  %v3539_v56 = vmul.f32 %v3299_v55, %v3297_v45  ;;  %v3540_v57 = vmul.f32 %v3300_v54, %v3298_v44 }
 0x7b3   :  { %3477 = vmatprep.subr.mxu0 %v3300_v54  ;;  %3405 = vmatpush1.xpose.msra.mxu1 %v3299_v55 }
 0x7b4   :  { %3478 = vmatpush1.xpose.msra.mxu0 %v3299_v55  ;;  %v3541_v58 = vadd.f32 %v3540_v57, %v3539_v56 }
 0x7b6   :  { %3542 = vadd.xlane.f32.xlu0 %v3541_v58  ;;  %3439 = vmatmul.mubr.f32.vlgmr.msra.gmra.mxu1 %v3299_v55 }
 0x7b7   :  { %3512 = vmatmul.mubr.f32.vlgmr.msra.gmra.mxu0 %v3297_v45 }
 0x7cf   :  { %v3367_v59 = vpop.f32.mrf.mxu0 }
 0x7d0   :  { %v3371_v60 = vmul.f32 2.0, %v3367_v59 }
 0x7d1   :  { %v3369_v61 = vpop.f32.mrf.mxu0 }
 0x7d2   :  { %v3372_v63 = vmul.f32 1.442695, %v3371_v60 }
 0x7d4   :  { %3701 = vpow2.f32 %v3372_v63 }
 0x7e1   :  { %v3702_v0 = vpop.eup %3701 }
 0x7e2   :  { %v3520_v2 = vsel %vm1534_vm2, %v3702_v0, 0.0 }
 0x7e3   :  { %3521 = vadd.xlane.f32.xlu1 %v3520_v2 }
 0x876   :  { %v3440_v3 = vpop.f32.mrf.mxu1 }
 0x877   :  { %v3444_v4 = vmul.f32 2.0, %v3440_v3  ;;  %v3513_v5 = vpop.f32.mrf.mxu0 }
 0x878   :  { %v3517_v6 = vmul.f32 2.0, %v3513_v5  ;;  %v3442_v7 = vpop.f32.mrf.mxu1 }
 0x879   :  { %v3445_v8 = vmul.f32 1.442695, %v3444_v4  ;;  %v3515_v9 = vpop.f32.mrf.mxu0 }
 0x87a   :  { %v3518_v10 = vmul.f32 1.442695, %v3517_v6 }
 0x87b   :  { %3703 = vpow2.f32 %v3445_v8 }
 0x87c   :  { %3705 = vpow2.f32 %v3518_v10 }
 0x888   :  { %v3704_v11 = vpop.eup %3703 }
 0x889   :  { %v3706_v12 = vpop.eup %3705  ;;  %v3526_v13 = vsel %vm1534_vm2, %v3704_v11, 0.0 }
 0x88a   :  { %v3523_v15 = vsel %vm1534_vm2, %v3706_v12, 0.0  ;;  %v3527_v16 = vrot.slane %v3526_v13, 4 }
 0x88b   :  { %3524 = vadd.xlane.f32.xlu1 %v3523_v15  ;;  %v3533_v18 = vrot.slane %v3523_v15, 4 }
 0x88c   :  { %v3528_v19 = vadd.f32 %v3527_v16, %v3526_v13 }
 0x88d   :  { %v3534_v20 = vadd.f32 %v3533_v18, %v3523_v15 }
 0x88e   :  { %v3529_v17 = vrot.slane %v3528_v19, 2 }
 0x88f   :  { %v3535_v21 = vrot.slane %v3534_v20, 2 }
 0x890   :  { %v3530_v22 = vadd.f32 %v3529_v17, %v3528_v19 }
 0x891   :  { %v3536_v23 = vadd.f32 %v3535_v21, %v3534_v20 }
 0x892   :  { %v3531_v24 = vrot.slane %v3530_v22, 1 }
 0x893   :  { %v3537_v25 = vrot.slane %v3536_v23, 1 }
 0x894   :  { %v3532_v26 = vadd.f32 %v3531_v24, %v3530_v22 }
 0x895   :  { %v3538_v27 = vadd.f32 %v3537_v25, %v3536_v23 }
 0x897   :  { %v3561_v28 = vadd.f32 %v3538_v27, %v3532_v26 }
 0x899   :  { %v3634_v29 = vadd.f32 -7.389056, %v3561_v28 }
 0x89b   :  { %3707 = vlog2.f32 %v3634_v29 }
 0x8a8   :  { %v3708_v30 = vpop.eup %3707 }
 0x8a9   :  { %v3564_v31 = vmul.f32 0.6931472, %v3708_v30 }
 0x8ab   :  { %v3565_v32 = vsel %vm1534_vm2, %v3564_v31, 0.0 }
 0x8ac   :  { %3566 = vadd.xlane.f32.xlu1 %v3565_v32 }
 0x8ad   :  { %3962 = shalt.err (!%p3959_p8)
}
 0x8ae   :  { %3593 = dma.vmem_to_hbm [thread:$0]  %s3591_s11, 256, %s4227_s13, [#allocation24]  }
 0x8af   :  { %s3971_s17 = scalar_lea.vmem %s3581_s27, 256  ;;  %p3976_p10 = scmp.lt.s32.totalorder %s3581_s27, %s3581_s27 }
 0x8b0   :  { %p3972_p9 = scmp.ne.s32.totalorder %s3581_s27, %s3971_s17  ;;  %p3977_p11 = scmp.lt.s32.totalorder %s3971_s17, %s3971_s17 }
 0x8b2   :  { %p3978_p12 = por %p3977_p11, %p3976_p10 }
 0x8b4   :  { %p3979_p13 = pnand %p3978_p12, %p3972_p9 }
 0x8b6   :  { %3982 = shalt.err (!%p3979_p13)
}
 0x8b7   :  { %3583 = dma.vmem_to_hbm [thread:$0]  %s3581_s27, 256, %s4226_s12, [#allocation4]   ;;  %v3522_v33 = vpop.xlane.xlu1 %3521  ;;  %v3543_v37 = vpop.xlane.xlu0 %3542  ;;  %vm3572_vm9 = vcmask 0  }
 0x8b8   :  { %v3544_v50 = vrot.slane %v3543_v37, 4  ;;  %s4048_s12 = smov [#allocation25]  }
 0x8b9   :  { %s3600_s13 = sshll.u32 %s4048_s12, 4  ;;  %s3601_s13 = int_to_ptr.vmem [resolvable:$true] %s3600_s13 }
 0x8ba   :  { %v3545_v38 = vadd.f32 %v3544_v50, %v3543_v37  ;;  %s3991_s19 = scalar_lea.vmem %s3601_s13, 16  ;;  %s3995_s5 = scalar_lea.vmem %s3601_s13, 32 }
 0x8bb   :  { %p3992_p0 = scmp.ne.s32.totalorder %s3601_s13, %s3991_s19  ;;  %p3996_p1 = scmp.lt.s32.totalorder %s3601_s13, %s3601_s13 }
 0x8bc   :  { %v3546_v41 = vrot.slane %v3545_v38, 2  ;;  %p3997_p2 = scmp.lt.s32.totalorder %s3995_s5, %s3991_s19 }
 0x8be   :  { %v3547_v44 = vadd.f32 %v3546_v41, %v3545_v38  ;;  %p3998_p3 = por %p3997_p2, %p3996_p1 }
 0x8c0   :  { %v3548_v46 = vrot.slane %v3547_v44, 1  ;;  %p3999_p4 = pnand %p3998_p3, %p3992_p0 }
 0x8c2   :  { %v3549_v14 = vadd.f32 %v3548_v46, %v3547_v44 }
 0x8c4   :  { %v3550_v52 = vmul.f32 2.0, %v3549_v14 }
 0x914   :  { %v3525_v34 = vpop.xlane.xlu1 %3524 }
 0x915   :  { %v3551_v35 = vadd.f32 %v3525_v34, %v3522_v33 }
 0x917   :  { %v3633_v36 = vadd.f32 -7.389056, %v3551_v35 }
 0x919   :  { %3709 = vlog2.f32 %v3633_v36 }
 0x926   :  { %v3710_v39 = vpop.eup %3709 }
 0x927   :  { %v3554_v40 = vmul.f32 0.6931472, %v3710_v39 }
 0x929   :  { %v3555_v42 = vrot.slane %v3554_v40, 4 }
 0x92b   :  { %v3556_v43 = vadd.f32 %v3555_v42, %v3554_v40 }
 0x92d   :  { %v3557_v45 = vrot.slane %v3556_v43, 2 }
 0x92f   :  { %v3558_v62 = vadd.f32 %v3557_v45, %v3556_v43 }
 0x931   :  { %v3559_v1 = vrot.slane %v3558_v62, 1 }
 0x933   :  { %v3560_v47 = vadd.f32 %v3559_v1, %v3558_v62 }
 0x935   :  { %v3568_v48 = vmul.f32 0.5, %v3560_v47  ;;  %v3567_v49 = vpop.xlane.xlu1 %3566 }
 0x936   :  { %v3569_v51 = vmul.f32 0.5, %v3567_v49 }
 0x938   :  { %v3570_v53 = vadd.f32 %v3569_v51, %v3568_v48 }
 0x93a   :  { %v3571_v54 = vsub.f32 %v3570_v53, %v3550_v52 }
 0x93c   :  { %3573 = vst.msk [vmem:[#allocation25] sm:$0x1] %vm3572_vm9, %v3571_v54 }
 0x93d   :  { %4002 = shalt.err (!%p3999_p4)
}
 0x93e   :  { %3603 = dma.vmem_to_hbm [thread:$0]  %s3601_s13, 16, %s4228_s14, [#allocation24]  }
 0x93f   :  { %4025 = dma.done.wait [#allocation4], 256  }
 0x940   :  { %4026 = vsyncadd [#allocation4], 4294967040 }
 0x941   :  { %4027 = dma.done.wait [#allocation24], 272  }
 0x942   :  { %4028 = vsyncadd [#allocation24], 4294967024 }
 0x943   :  { %3613 = vsyncpa [#allocation3], 1 }
 0x944   :  { %3614 = vsyncpa [#allocation6], 1 }
 0x945   :  { %3615 = vsyncpa [#allocation9], 1 }
 0x946   :  { %3616 = vsyncpa [#allocation12], 1 }
 0x947   :  { %3617 = vsyncpa [#allocation15], 1 }
 0x948   :  { %3618 = vsyncpa [#allocation18], 1 }
 0x949   :  { %3619 = vsyncpa [#allocation21], 1 }
 0x94a   :  { %3620 = vsyncpa [#allocation4], 1 }
 0x94b   :  { %3621 = vsyncpa [#allocation24], 1 }

</bundles_post_ra>
